<compile_context>
chip_gen: v7x
topology: tpu7x:2x2x1
jax: 0.10.0
libtpu: 0.0.40
codegen_flags: <defaults>
</compile_context>

<pallas_src>
import math

import numpy as np

import jax
import jax.numpy as jnp
from jax import lax
from jax.experimental import pallas as pl
from jax.experimental.pallas import tpu as pltpu


# Static branch configuration of MulResBlock: (kernel_size, padding) of the
# four MulResBranch's.  All are realised as one 7x7 "same" conv whose smaller
# kernels are zero-padded (centered) to the common footprint.
BRANCH_KP = ((1, 0), (3, 1), (5, 2), (7, 3))
KMAX = max(k for k, _ in BRANCH_KP)          # 7
PAD = (KMAX - 1) // 2                        # 3


# ---------------------------------------------------------------------------
# cheap transcendentals: one exp (EUP) + approximate reciprocal
# ---------------------------------------------------------------------------
def _mish(x):
    # mish(x) = x * tanh(softplus(x)) = x * ((1+e^x)^2 - 1) / ((1+e^x)^2 + 1)
    ex = jnp.exp(jnp.minimum(x, 20.0))       # clamp so (1+e^x)^2 stays finite
    t2 = (1.0 + ex) * (1.0 + ex)
    y = x * (t2 - 1.0) * pl.reciprocal(t2 + 1.0, approx=True)
    return jnp.where(x > 20.0, x, y)         # tanh(softplus(x)) ~= 1 above 20


def _sigmoid(x):
    ex = jnp.exp(-jnp.abs(x))                # in (0, 1], never overflows
    p = pl.reciprocal(1.0 + ex, approx=True)
    return jnp.where(x >= 0.0, p, 1.0 - p)


# ---------------------------------------------------------------------------
# Fused MulResBlock kernel (one grid step = one image, layout (H, W*C))
# ---------------------------------------------------------------------------
def _make_kernel(H, W, C):
    WC = W * C
    HW = H * W

    def kernel(x_ref, w1_ref, b1_ref, w2_ref, b2_ref, w3_ref, b3_ref,
               cgw1_ref, cgb1_ref, cgw2_ref, cgb2_ref, sg_ref, sgb_ref,
               ewa_ref, ewb_ref, ecb_ref,
               o_ref, pad_ref):
        f32 = jnp.float32
        bf16 = jnp.bfloat16

        # Halo scratch: border rows must stay zero; the interior is fully
        # overwritten before every conv, so one zero-fill per image suffices.
        pad_ref[...] = jnp.zeros_like(pad_ref)

        x = x_ref[0].astype(f32)                                  # (H, W*C)

        def conv7x7(inp, w_ref, bias):
            """7x7 'same' conv in (H, W*C) layout: 7 per-row-offset MXU dots
            against (W*C, W*C) matrices (W-padding + channel mixing baked into
            the weights); H-padding via the zero-border scratch."""
            pad_ref[PAD:PAD + H, :] = inp
            acc = jnp.zeros((H, WC), f32)
            for dh in range(KMAX):                                # static unroll
                acc = acc + jnp.dot(pad_ref[dh:dh + H, :].astype(bf16),
                                    w_ref[dh],
                                    preferred_element_type=f32)
            return acc + bias

        # ---- 4x (1x1 "hold" conv + Mish): one block-diagonal dot ------------
        hold = _mish(jnp.dot(x.astype(bf16), w1_ref[...],
                             preferred_element_type=f32) + b1_ref[...])

        # ---- 4x (conv2 + Mish, conv3, + hold): fused over branches ----------
        step = _mish(conv7x7(hold, w2_ref, b2_ref[...]))
        cat = conv7x7(step, w3_ref, b3_ref[...]) + hold           # branch concat

        # ---- CBAM ChannelGate ------------------------------------------------
        # Lane folds over the W channel-groups: afterwards every lane w*C+c
        # holds the full per-channel spatial reduction (already lane-tiled).
        g_sum = cat
        g_max = cat
        sh = C
        while sh < WC:                                            # log2(W) folds
            g_sum = g_sum + pltpu.roll(g_sum, sh, axis=1)
            g_max = jnp.maximum(g_max, pltpu.roll(g_max, sh, axis=1))
            sh *= 2
        s_sum = jnp.sum(g_sum, axis=0, keepdims=True)             # (1, W*C)
        s_max = jnp.max(g_max, axis=0, keepdims=True)             # (1, W*C)
        avg_t = s_sum * (1.0 / HW)

        row_id = lax.broadcasted_iota(jnp.int32, (2, WC), 0)
        pooled = jnp.where(row_id == 0,
                           jnp.broadcast_to(avg_t, (2, WC)),
                           jnp.broadcast_to(s_max, (2, WC)))      # (2, W*C)
        hid = jnp.maximum(
            jnp.dot(pooled, cgw1_ref[...], preferred_element_type=f32)
            + cgb1_ref[...], 0.0)                                 # shared MLP, ReLU
        z = jnp.dot(hid, cgw2_ref[...], preferred_element_type=f32) + cgb2_ref[...]
        ch_scale = _sigmoid(z[0:1, :] + z[1:2, :])                # (1, W*C) tiled
        step_cg = cat * ch_scale

        # ---- CBAM SpatialGate (ChannelPool folded into the conv weights) ----
        # Within-group lane folds: channel sum valid at lane w*C, channel max
        # valid at lane w*C + (C-1); all other lanes hit zero weight rows.
        csum = step_cg
        cmax = step_cg
        sh = 1
        while sh < C:                                             # log2(C) folds
            csum = csum + pltpu.roll(csum, WC - sh, axis=1)
            cmax = jnp.maximum(cmax, pltpu.roll(cmax, sh, axis=1))
            sh *= 2
        lane_mod = lax.broadcasted_iota(jnp.int32, (H, WC), 1) % C
        pooled_hw = jnp.where(lane_mod == C - 1, cmax, csum * (1.0 / C))
        att = conv7x7(pooled_hw, sg_ref, sgb_ref[...])            # lane-replicated
        step_sg = step_cg * _sigmoid(att)

        # ---- ECBAM final 1x1 conv over concat([gated, cat]) + Mish + residual
        out = jnp.dot(step_sg.astype(bf16), ewa_ref[...], preferred_element_type=f32)
        out = out + jnp.dot(cat.astype(bf16), ewb_ref[...], preferred_element_type=f32)
        out = _mish(out + ecb_ref[...]) + x
        o_ref[0] = out.astype(o_ref.dtype)

    return kernel


# ---------------------------------------------------------------------------
# pallas_call wrapper
# ---------------------------------------------------------------------------
def _mulres_pallas(x_hwc, p, H, W, C):
    B = x_hwc.shape[0]
    WC = W * C

    args = [x_hwc,
            p["w1"], p["b1"], p["w2"], p["b2"], p["w3"], p["b3"],
            p["cg_w1"], p["cg_b1"], p["cg_w2"], p["cg_b2"],
            p["sg"], p["sg_b"], p["ew_a"], p["ew_b"], p["ec_b"]]

    def full_spec(a):
        nd = a.ndim
        return pl.BlockSpec(a.shape, lambda i, _nd=nd: (0,) * _nd)

    in_specs = ([pl.BlockSpec((1, H, WC), lambda i: (i, 0, 0))]
                + [full_spec(a) for a in args[1:]])

    return pl.pallas_call(
        _make_kernel(H, W, C),
        out_shape=jax.ShapeDtypeStruct((B, H, WC), x_hwc.dtype),
        grid_spec=pltpu.PrefetchScalarGridSpec(
            num_scalar_prefetch=0,
            grid=(B,),                       # one image per step; >=2 parallel
            in_specs=in_specs,               # steps keep both v7x TCs busy
            out_specs=pl.BlockSpec((1, H, WC), lambda i: (i, 0, 0)),
            scratch_shapes=[pltpu.VMEM((H + 2 * PAD, WC), jnp.float32)]),
        compiler_params=pltpu.CompilerParams(
            dimension_semantics=("parallel",),
            vmem_limit_bytes=32 * 1024 * 1024),
    )(*args)


def mulres_block_nhwc(x_nhwc, packed):
    """MulResBlock forward on NHWC input (no HBM transposes around the kernel)."""
    B, H, W, C = x_nhwc.shape
    y = _mulres_pallas(x_nhwc.reshape(B, H, W * C), packed, H, W, C)
    return y.reshape(B, H, W, C)


def mulres_block(x_nchw, packed):
    """PyTorch-layout (NCHW) entry point (transposes to NHWC around the kernel).
    Callers that can keep activations in NHWC should use mulres_block_nhwc and
    skip the two full-tensor transposes."""
    B, C, H, W = x_nchw.shape
    y = mulres_block_nhwc(jnp.transpose(x_nchw, (0, 2, 3, 1)), packed)
    return jnp.transpose(y, (0, 3, 1, 2))


# ---------------------------------------------------------------------------
# One-time (eager, numpy) parameter repacking into the fused lane-dense layout
# ---------------------------------------------------------------------------
def pack_mulres_params(params, H, W):
    br = [params[f"branch{i}"] for i in (1, 2, 3, 4)]
    C = int(np.asarray(br[0]["w1"]).shape[2])          # w1: (1, 1, C, Cn)
    Cn = C // 4
    assert C % 4 == 0
    assert (C & (C - 1)) == 0 and (W & (W - 1)) == 0, \
        "C and W must be powers of two (lane-fold reductions)"
    WC = W * C

    def tile_row(v):                                    # (C,) -> (1, W*C)
        return np.tile(np.asarray(v, np.float32), W).reshape(1, WC)

    def block_diag_tile(m):                             # (C, C) -> (W*C, W*C)
        out = np.zeros((WC, WC), np.float32)
        for w in range(W):
            out[w * C:(w + 1) * C, w * C:(w + 1) * C] = m
        return out

    # fused 1x1 "hold" conv: concat the four (C, Cn) matrices on the output axis
    w1_cc = np.concatenate(
        [np.asarray(b["w1"], np.float32).reshape(C, Cn) for b in br], axis=1)
    b1 = np.concatenate([np.asarray(b["b1"], np.float32) for b in br], axis=0)

    # branch conv2/conv3: zero-pad every kernel to 7x7 (centered) and make the
    # channel mixing block-diagonal over branches.
    def branch_taps(name):
        taps = np.zeros((KMAX, KMAX, C, C), np.float32)
        for bi, (k, _p) in enumerate(BRANCH_KP):
            wk = np.asarray(br[bi][name], np.float32)   # (k, k, Cn, Cn)
            off = (KMAX - k) // 2
            lo = bi * Cn
            taps[off:off + k, off:off + k, lo:lo + Cn, lo:lo + Cn] = wk
        return taps

    # per-row-offset big matrices: the W-direction padding is baked in by
    # simply not placing out-of-range blocks.
    def big_conv(taps):                                 # (7,7,C,C) -> (7,WC,WC)
        big = np.zeros((KMAX, WC, WC), np.float32)
        for dh in range(KMAX):
            for dw in range(KMAX):
                for w in range(W):
                    ws = w + dw - PAD
                    if 0 <= ws < W:
                        big[dh, ws * C:(ws + 1) * C, w * C:(w + 1) * C] = taps[dh, dw]
        return big

    w2_big = big_conv(branch_taps("w2"))
    w3_big = big_conv(branch_taps("w3"))
    b2 = np.concatenate([np.asarray(b["b2"], np.float32) for b in br], axis=0)
    b3 = np.concatenate([np.asarray(b["b3"], np.float32) for b in br], axis=0)

    ep = params["ecbam"]
    Cr = int(np.asarray(ep["cg_w1"]).shape[1])

    # ChannelGate MLP in the lane-tiled (W*C) space
    cg_w1 = np.asarray(ep["cg_w1"], np.float32)         # (C, Cr)
    cg_w2 = np.asarray(ep["cg_w2"], np.float32)         # (Cr, C)
    cg_w1_big = np.tile(cg_w1 / float(W), (W, 1))       # (W*C, Cr)
    cg_w2_big = np.tile(cg_w2, (1, W))                  # (Cr, W*C)
    cg_b1 = np.asarray(ep["cg_b1"], np.float32).reshape(1, Cr)
    cg_b2_big = tile_row(ep["cg_b2"])

    # SpatialGate: ChannelPool (rows at lane offsets C-1 = max, 0 = mean) and
    # the eval-mode BN scale are folded into the big conv matrices.
    sg_w = np.asarray(ep["sg_w"], np.float32).reshape(KMAX, KMAX, 2)  # 0=max, 1=mean
    bn_scale = float(ep["bn_scale"])
    sg_big = np.zeros((KMAX, WC, WC), np.float32)
    for dh in range(KMAX):
        for dw in range(KMAX):
            for w in range(W):
                ws = w + dw - PAD
                if 0 <= ws < W:
                    sg_big[dh, ws * C + (C - 1), w * C:(w + 1) * C] = sg_w[dh, dw, 0] * bn_scale
                    sg_big[dh, ws * C + 0,       w * C:(w + 1) * C] = sg_w[dh, dw, 1] * bn_scale
    sg_bias = np.asarray(float(ep["bn_bias"]), np.float32).reshape(1, 1)

    # final 1x1 (2C -> C): rows [0:C] act on the gated path, [C:2C] on the concat
    ec_w = np.asarray(ep["ec_w"], np.float32).reshape(2 * C, C)
    ew_a = block_diag_tile(ec_w[:C, :])
    ew_b = block_diag_tile(ec_w[C:, :])
    ec_b = tile_row(ep["ec_b"])

    bf = jnp.bfloat16
    return dict(
        w1=jnp.asarray(block_diag_tile(w1_cc), bf), b1=jnp.asarray(tile_row(b1)),
        w2=jnp.asarray(w2_big, bf), b2=jnp.asarray(tile_row(b2)),
        w3=jnp.asarray(w3_big, bf), b3=jnp.asarray(tile_row(b3)),
        cg_w1=jnp.asarray(cg_w1_big), cg_b1=jnp.asarray(cg_b1),
        cg_w2=jnp.asarray(cg_w2_big), cg_b2=jnp.asarray(cg_b2_big),
        sg=jnp.asarray(sg_big, bf), sg_b=jnp.asarray(sg_bias),
        ew_a=jnp.asarray(ew_a, bf), ew_b=jnp.asarray(ew_b, bf),
        ec_b=jnp.asarray(ec_b),
    )


# ---------------------------------------------------------------------------
# Parameter init (deterministic, PyTorch-style uniform fan-in scaling)
# ---------------------------------------------------------------------------
def init_conv(key, kh, kw, cin, cout, bias=True):
    kw_key, kb_key = jax.random.split(key)
    bound = 1.0 / math.sqrt(kh * kw * cin)
    w = jax.random.uniform(kw_key, (kh, kw, cin, cout), jnp.float32, -bound, bound)
    b = (jax.random.uniform(kb_key, (cout,), jnp.float32, -bound, bound)
         if bias else None)
    return w, b


def init_linear(key, cin, cout):
    kw_key, kb_key = jax.random.split(key)
    bound = 1.0 / math.sqrt(cin)
    w = jax.random.uniform(kw_key, (cin, cout), jnp.float32, -bound, bound)
    b = jax.random.uniform(kb_key, (cout,), jnp.float32, -bound, bound)
    return w, b


def init_mulres_block_params(key, C):
    Cn = C // 4      # nested branch channels
    Cr = C // 4      # channel-gate reduction (reduction_ratio=4)
    keys = jax.random.split(key, 16)
    params = {}
    for bi, (k, _p) in enumerate(BRANCH_KP):
        kb = jax.random.split(keys[bi], 3)
        w1, b1 = init_conv(kb[0], 1, 1, C, Cn)
        w2, b2 = init_conv(kb[1], k, k, Cn, Cn)
        w3, b3 = init_conv(kb[2], k, k, Cn, Cn)
        params[f"branch{bi + 1}"] = dict(w1=w1, b1=b1, w2=w2, b2=b2, w3=w3, b3=b3)
    cg_w1, cg_b1 = init_linear(keys[10], C, Cr)
    cg_w2, cg_b2 = init_linear(keys[11], Cr, C)
    sg_w, _ = init_conv(keys[12], 7, 7, 2, 1, bias=False)   # channel 0=max, 1=mean
    ec_w, ec_b = init_conv(keys[13], 1, 1, 2 * C, C)
    params["ecbam"] = dict(cg_w1=cg_w1, cg_b1=cg_b1, cg_w2=cg_w2, cg_b2=cg_b2,
                           sg_w=sg_w.reshape(7, 7, 2, 1), ec_w=ec_w, ec_b=ec_b,
                           # eval-mode BatchNorm2d(1) with default running stats:
                           bn_scale=1.0 / math.sqrt(1.0 + 1e-5), bn_bias=0.0)
    return params


# ---------------------------------------------------------------------------
if __name__ == "__main__":
    B, C, H, W = 2, 16, 16, 16          # branch_chan = 16 (divisible by 4)
    key = jax.random.PRNGKey(0)
    kx, kp = jax.random.split(key)
    x = jax.random.normal(kx, (B, C, H, W), jnp.float32)   # NCHW like PyTorch
    params = init_mulres_block_params(kp, C)

    packed = pack_mulres_params(params, H, W)   # one-time eager weight repack

    out = jax.jit(mulres_block)(x, packed)
    out = jax.block_until_ready(out)

    assert out.shape == (B, C, H, W), out.shape
    assert bool(jnp.all(jnp.isfinite(out)))
    print("KERNEL_OK")
</pallas_src>

<mosaic_0001>
module attributes {stable_mosaic.version = 11 : i64} {
  func.func @kernel(%arg0: i32, %arg1: memref<1x16x256xf32, #tpu.memory_space<vmem>>, %arg2: memref<256x256xbf16, #tpu.memory_space<vmem>>, %arg3: memref<1x256xf32, #tpu.memory_space<vmem>>, %arg4: memref<7x256x256xbf16, #tpu.memory_space<vmem>>, %arg5: memref<1x256xf32, #tpu.memory_space<vmem>>, %arg6: memref<7x256x256xbf16, #tpu.memory_space<vmem>>, %arg7: memref<1x256xf32, #tpu.memory_space<vmem>>, %arg8: memref<256x4xf32, #tpu.memory_space<vmem>>, %arg9: memref<1x4xf32, #tpu.memory_space<vmem>>, %arg10: memref<4x256xf32, #tpu.memory_space<vmem>>, %arg11: memref<1x256xf32, #tpu.memory_space<vmem>>, %arg12: memref<7x256x256xbf16, #tpu.memory_space<vmem>>, %arg13: memref<1x1xf32, #tpu.memory_space<vmem>>, %arg14: memref<256x256xbf16, #tpu.memory_space<vmem>>, %arg15: memref<256x256xbf16, #tpu.memory_space<vmem>>, %arg16: memref<1x256xf32, #tpu.memory_space<vmem>>, %arg17: memref<1x16x256xf32, #tpu.memory_space<vmem>>, %arg18: memref<22x256xf32, #tpu.memory_space<vmem>>) attributes {dimension_semantics = [#tpu.dimension_semantics<parallel>], iteration_bounds = array<i64: 2>, scalar_prefetch = 0 : i64, scratch_operands = 1 : i64, tpu.core_type = #tpu.core_type<tc>, window_params = [{transform_indices = @transform_0, window_bounds = array<i64: 1, 16, 256>}, {pipeline_mode = #tpu.pipeline_mode<synchronous>, transform_indices = @transform_1, window_bounds = array<i64: 256, 256>}, {pipeline_mode = #tpu.pipeline_mode<synchronous>, transform_indices = @transform_2, window_bounds = array<i64: 1, 256>}, {pipeline_mode = #tpu.pipeline_mode<synchronous>, transform_indices = @transform_3, window_bounds = array<i64: 7, 256, 256>}, {pipeline_mode = #tpu.pipeline_mode<synchronous>, transform_indices = @transform_4, window_bounds = array<i64: 1, 256>}, {pipeline_mode = #tpu.pipeline_mode<synchronous>, transform_indices = @transform_5, window_bounds = array<i64: 7, 256, 256>}, {pipeline_mode = #tpu.pipeline_mode<synchronous>, transform_indices = @transform_6, window_bounds = array<i64: 1, 256>}, {pipeline_mode = #tpu.pipeline_mode<synchronous>, transform_indices = @transform_7, window_bounds = array<i64: 256, 4>}, {pipeline_mode = #tpu.pipeline_mode<synchronous>, transform_indices = @transform_8, window_bounds = array<i64: 1, 4>}, {pipeline_mode = #tpu.pipeline_mode<synchronous>, transform_indices = @transform_9, window_bounds = array<i64: 4, 256>}, {pipeline_mode = #tpu.pipeline_mode<synchronous>, transform_indices = @transform_10, window_bounds = array<i64: 1, 256>}, {pipeline_mode = #tpu.pipeline_mode<synchronous>, transform_indices = @transform_11, window_bounds = array<i64: 7, 256, 256>}, {pipeline_mode = #tpu.pipeline_mode<synchronous>, transform_indices = @transform_12, window_bounds = array<i64: 1, 1>}, {pipeline_mode = #tpu.pipeline_mode<synchronous>, transform_indices = @transform_13, window_bounds = array<i64: 256, 256>}, {pipeline_mode = #tpu.pipeline_mode<synchronous>, transform_indices = @transform_14, window_bounds = array<i64: 256, 256>}, {pipeline_mode = #tpu.pipeline_mode<synchronous>, transform_indices = @transform_15, window_bounds = array<i64: 1, 256>}, {transform_indices = @transform_16, window_bounds = array<i64: 1, 16, 256>}]} {
    %cst = arith.constant 0.000000e+00 : f32
    %0 = vector.broadcast %cst : f32 to vector<22x256xf32>
    %c0 = arith.constant 0 : index
    %c0_0 = arith.constant 0 : index
    %1 = vector.load %arg18[%c0, %c0_0] : memref<22x256xf32, #tpu.memory_space<vmem>>, vector<22x256xf32>
    tpu.vector_store %arg18[%c0, %c0_0], %0 {strides = array<i32>} : memref<22x256xf32, #tpu.memory_space<vmem>>, vector<22x256xf32>,
    %c0_1 = arith.constant 0 : index
    %c0_2 = arith.constant 0 : index
    %c0_3 = arith.constant 0 : index
    %2 = vector.load %arg1[%c0_1, %c0_2, %c0_3] : memref<1x16x256xf32, #tpu.memory_space<vmem>>, vector<1x16x256xf32>
    %3 = vector.shape_cast %2 : vector<1x16x256xf32> to vector<16x256xf32>
    %4 = arith.truncf %3 : vector<16x256xf32> to vector<16x256xbf16>
    %c0_4 = arith.constant 0 : index
    %c0_5 = arith.constant 0 : index
    %5 = vector.load %arg2[%c0_4, %c0_5] : memref<256x256xbf16, #tpu.memory_space<vmem>>, vector<256x256xbf16>
    %cst_6 = arith.constant dense<0.000000e+00> : vector<16x256xf32>
    %6 = tpu.matmul %4, %5, %cst_6 {dimension_numbers = #tpu.dot_dimension_numbers<[1], [0], [0], [1], [0, 0, 1, 1], [], []>} : vector<16x256xbf16>, vector<256x256xbf16>, vector<16x256xf32> -> vector<16x256xf32>
    %c0_7 = arith.constant 0 : index
    %c0_8 = arith.constant 0 : index
    %7 = vector.load %arg3[%c0_7, %c0_8] : memref<1x256xf32, #tpu.memory_space<vmem>>, vector<1x256xf32>
    %8 = vector.broadcast %7 : vector<1x256xf32> to vector<16x256xf32>
    %9 = arith.addf %6, %8 : vector<16x256xf32>
    %cst_9 = arith.constant 2.000000e+01 : f32
    %10 = vector.broadcast %cst_9 : f32 to vector<16x256xf32>
    %11 = arith.minimumf %9, %10 : vector<16x256xf32>
    %12 = math.exp %11 : vector<16x256xf32>
    %cst_10 = arith.constant 1.000000e+00 : f32
    %13 = vector.broadcast %cst_10 : f32 to vector<16x256xf32>
    %14 = arith.addf %13, %12 : vector<16x256xf32>
    %cst_11 = arith.constant 1.000000e+00 : f32
    %15 = vector.broadcast %cst_11 : f32 to vector<16x256xf32>
    %16 = arith.addf %15, %12 : vector<16x256xf32>
    %17 = arith.mulf %14, %16 : vector<16x256xf32>
    %cst_12 = arith.constant 1.000000e+00 : f32
    %18 = vector.broadcast %cst_12 : f32 to vector<16x256xf32>
    %19 = arith.subf %17, %18 : vector<16x256xf32>
    %20 = arith.mulf %9, %19 : vector<16x256xf32>
    %cst_13 = arith.constant 1.000000e+00 : f32
    %21 = vector.broadcast %cst_13 : f32 to vector<16x256xf32>
    %22 = arith.addf %17, %21 : vector<16x256xf32>
    %23 = tpu.reciprocal %22 {approx = true} : vector<16x256xf32> -> vector<16x256xf32>
    %24 = arith.mulf %20, %23 : vector<16x256xf32>
    %cst_14 = arith.constant 2.000000e+01 : f32
    %25 = vector.broadcast %cst_14 : f32 to vector<16x256xf32>
    %26 = arith.cmpf ogt, %9, %25 : vector<16x256xf32>
    %27 = arith.select %26, %9, %24 : vector<16x256xi1>, vector<16x256xf32>
    %c0_15 = arith.constant 0 : index
    %c0_16 = arith.constant 0 : index
    %28 = vector.load %arg5[%c0_15, %c0_16] : memref<1x256xf32, #tpu.memory_space<vmem>>, vector<1x256xf32>
    %c3 = arith.constant 3 : index
    %c0_17 = arith.constant 0 : index
    %29 = vector.load %arg18[%c3, %c0_17] : memref<22x256xf32, #tpu.memory_space<vmem>>, vector<16x256xf32>
    tpu.vector_store %arg18[%c3, %c0_17], %27 {strides = array<i32>} : memref<22x256xf32, #tpu.memory_space<vmem>>, vector<16x256xf32>,
    %cst_18 = arith.constant 0.000000e+00 : f32
    %30 = vector.broadcast %cst_18 : f32 to vector<16x256xf32>
    %c0_19 = arith.constant 0 : index
    %c0_20 = arith.constant 0 : index
    %31 = vector.load %arg18[%c0_19, %c0_20] : memref<22x256xf32, #tpu.memory_space<vmem>>, vector<16x256xf32>
    %32 = arith.truncf %31 : vector<16x256xf32> to vector<16x256xbf16>
    %c0_21 = arith.constant 0 : index
    %c0_22 = arith.constant 0 : index
    %c0_23 = arith.constant 0 : index
    %33 = vector.load %arg4[%c0_21, %c0_22, %c0_23] : memref<7x256x256xbf16, #tpu.memory_space<vmem>>, vector<1x256x256xbf16>
    %34 = vector.shape_cast %33 : vector<1x256x256xbf16> to vector<256x256xbf16>
    %cst_24 = arith.constant dense<0.000000e+00> : vector<16x256xf32>
    %35 = tpu.matmul %32, %34, %cst_24 {dimension_numbers = #tpu.dot_dimension_numbers<[1], [0], [0], [1], [0, 0, 1, 1], [], []>} : vector<16x256xbf16>, vector<256x256xbf16>, vector<16x256xf32> -> vector<16x256xf32>
    %36 = arith.addf %30, %35 : vector<16x256xf32>
    %c1 = arith.constant 1 : index
    %c0_25 = arith.constant 0 : index
    %37 = vector.load %arg18[%c1, %c0_25] : memref<22x256xf32, #tpu.memory_space<vmem>>, vector<16x256xf32>
    %38 = arith.truncf %37 : vector<16x256xf32> to vector<16x256xbf16>
    %c1_26 = arith.constant 1 : index
    %c0_27 = arith.constant 0 : index
    %c0_28 = arith.constant 0 : index
    %39 = vector.load %arg4[%c1_26, %c0_27, %c0_28] : memref<7x256x256xbf16, #tpu.memory_space<vmem>>, vector<1x256x256xbf16>
    %40 = vector.shape_cast %39 : vector<1x256x256xbf16> to vector<256x256xbf16>
    %cst_29 = arith.constant dense<0.000000e+00> : vector<16x256xf32>
    %41 = tpu.matmul %38, %40, %cst_29 {dimension_numbers = #tpu.dot_dimension_numbers<[1], [0], [0], [1], [0, 0, 1, 1], [], []>} : vector<16x256xbf16>, vector<256x256xbf16>, vector<16x256xf32> -> vector<16x256xf32>
    %42 = arith.addf %36, %41 : vector<16x256xf32>
    %c2 = arith.constant 2 : index
    %c0_30 = arith.constant 0 : index
    %43 = vector.load %arg18[%c2, %c0_30] : memref<22x256xf32, #tpu.memory_space<vmem>>, vector<16x256xf32>
    %44 = arith.truncf %43 : vector<16x256xf32> to vector<16x256xbf16>
    %c2_31 = arith.constant 2 : index
    %c0_32 = arith.constant 0 : index
    %c0_33 = arith.constant 0 : index
    %45 = vector.load %arg4[%c2_31, %c0_32, %c0_33] : memref<7x256x256xbf16, #tpu.memory_space<vmem>>, vector<1x256x256xbf16>
    %46 = vector.shape_cast %45 : vector<1x256x256xbf16> to vector<256x256xbf16>
    %cst_34 = arith.constant dense<0.000000e+00> : vector<16x256xf32>
    %47 = tpu.matmul %44, %46, %cst_34 {dimension_numbers = #tpu.dot_dimension_numbers<[1], [0], [0], [1], [0, 0, 1, 1], [], []>} : vector<16x256xbf16>, vector<256x256xbf16>, vector<16x256xf32> -> vector<16x256xf32>
    %48 = arith.addf %42, %47 : vector<16x256xf32>
    %c3_35 = arith.constant 3 : index
    %c0_36 = arith.constant 0 : index
    %49 = vector.load %arg18[%c3_35, %c0_36] : memref<22x256xf32, #tpu.memory_space<vmem>>, vector<16x256xf32>
    %50 = arith.truncf %49 : vector<16x256xf32> to vector<16x256xbf16>
    %c3_37 = arith.constant 3 : index
    %c0_38 = arith.constant 0 : index
    %c0_39 = arith.constant 0 : index
    %51 = vector.load %arg4[%c3_37, %c0_38, %c0_39] : memref<7x256x256xbf16, #tpu.memory_space<vmem>>, vector<1x256x256xbf16>
    %52 = vector.shape_cast %51 : vector<1x256x256xbf16> to vector<256x256xbf16>
    %cst_40 = arith.constant dense<0.000000e+00> : vector<16x256xf32>
    %53 = tpu.matmul %50, %52, %cst_40 {dimension_numbers = #tpu.dot_dimension_numbers<[1], [0], [0], [1], [0, 0, 1, 1], [], []>} : vector<16x256xbf16>, vector<256x256xbf16>, vector<16x256xf32> -> vector<16x256xf32>
    %54 = arith.addf %48, %53 : vector<16x256xf32>
    %c4 = arith.constant 4 : index
    %c0_41 = arith.constant 0 : index
    %55 = vector.load %arg18[%c4, %c0_41] : memref<22x256xf32, #tpu.memory_space<vmem>>, vector<16x256xf32>
    %56 = arith.truncf %55 : vector<16x256xf32> to vector<16x256xbf16>
    %c4_42 = arith.constant 4 : index
    %c0_43 = arith.constant 0 : index
    %c0_44 = arith.constant 0 : index
    %57 = vector.load %arg4[%c4_42, %c0_43, %c0_44] : memref<7x256x256xbf16, #tpu.memory_space<vmem>>, vector<1x256x256xbf16>
    %58 = vector.shape_cast %57 : vector<1x256x256xbf16> to vector<256x256xbf16>
    %cst_45 = arith.constant dense<0.000000e+00> : vector<16x256xf32>
    %59 = tpu.matmul %56, %58, %cst_45 {dimension_numbers = #tpu.dot_dimension_numbers<[1], [0], [0], [1], [0, 0, 1, 1], [], []>} : vector<16x256xbf16>, vector<256x256xbf16>, vector<16x256xf32> -> vector<16x256xf32>
    %60 = arith.addf %54, %59 : vector<16x256xf32>
    %c5 = arith.constant 5 : index
    %c0_46 = arith.constant 0 : index
    %61 = vector.load %arg18[%c5, %c0_46] : memref<22x256xf32, #tpu.memory_space<vmem>>, vector<16x256xf32>
    %62 = arith.truncf %61 : vector<16x256xf32> to vector<16x256xbf16>
    %c5_47 = arith.constant 5 : index
    %c0_48 = arith.constant 0 : index
    %c0_49 = arith.constant 0 : index
    %63 = vector.load %arg4[%c5_47, %c0_48, %c0_49] : memref<7x256x256xbf16, #tpu.memory_space<vmem>>, vector<1x256x256xbf16>
    %64 = vector.shape_cast %63 : vector<1x256x256xbf16> to vector<256x256xbf16>
    %cst_50 = arith.constant dense<0.000000e+00> : vector<16x256xf32>
    %65 = tpu.matmul %62, %64, %cst_50 {dimension_numbers = #tpu.dot_dimension_numbers<[1], [0], [0], [1], [0, 0, 1, 1], [], []>} : vector<16x256xbf16>, vector<256x256xbf16>, vector<16x256xf32> -> vector<16x256xf32>
    %66 = arith.addf %60, %65 : vector<16x256xf32>
    %c6 = arith.constant 6 : index
    %c0_51 = arith.constant 0 : index
    %67 = vector.load %arg18[%c6, %c0_51] : memref<22x256xf32, #tpu.memory_space<vmem>>, vector<16x256xf32>
    %68 = arith.truncf %67 : vector<16x256xf32> to vector<16x256xbf16>
    %c6_52 = arith.constant 6 : index
    %c0_53 = arith.constant 0 : index
    %c0_54 = arith.constant 0 : index
    %69 = vector.load %arg4[%c6_52, %c0_53, %c0_54] : memref<7x256x256xbf16, #tpu.memory_space<vmem>>, vector<1x256x256xbf16>
    %70 = vector.shape_cast %69 : vector<1x256x256xbf16> to vector<256x256xbf16>
    %cst_55 = arith.constant dense<0.000000e+00> : vector<16x256xf32>
    %71 = tpu.matmul %68, %70, %cst_55 {dimension_numbers = #tpu.dot_dimension_numbers<[1], [0], [0], [1], [0, 0, 1, 1], [], []>} : vector<16x256xbf16>, vector<256x256xbf16>, vector<16x256xf32> -> vector<16x256xf32>
    %72 = arith.addf %66, %71 : vector<16x256xf32>
    %73 = vector.broadcast %28 : vector<1x256xf32> to vector<16x256xf32>
    %74 = arith.addf %72, %73 : vector<16x256xf32>
    %cst_56 = arith.constant 2.000000e+01 : f32
    %75 = vector.broadcast %cst_56 : f32 to vector<16x256xf32>
    %76 = arith.minimumf %74, %75 : vector<16x256xf32>
    %77 = math.exp %76 : vector<16x256xf32>
    %cst_57 = arith.constant 1.000000e+00 : f32
    %78 = vector.broadcast %cst_57 : f32 to vector<16x256xf32>
    %79 = arith.addf %78, %77 : vector<16x256xf32>
    %cst_58 = arith.constant 1.000000e+00 : f32
    %80 = vector.broadcast %cst_58 : f32 to vector<16x256xf32>
    %81 = arith.addf %80, %77 : vector<16x256xf32>
    %82 = arith.mulf %79, %81 : vector<16x256xf32>
    %cst_59 = arith.constant 1.000000e+00 : f32
    %83 = vector.broadcast %cst_59 : f32 to vector<16x256xf32>
    %84 = arith.subf %82, %83 : vector<16x256xf32>
    %85 = arith.mulf %74, %84 : vector<16x256xf32>
    %cst_60 = arith.constant 1.000000e+00 : f32
    %86 = vector.broadcast %cst_60 : f32 to vector<16x256xf32>
    %87 = arith.addf %82, %86 : vector<16x256xf32>
    %88 = tpu.reciprocal %87 {approx = true} : vector<16x256xf32> -> vector<16x256xf32>
    %89 = arith.mulf %85, %88 : vector<16x256xf32>
    %cst_61 = arith.constant 2.000000e+01 : f32
    %90 = vector.broadcast %cst_61 : f32 to vector<16x256xf32>
    %91 = arith.cmpf ogt, %74, %90 : vector<16x256xf32>
    %92 = arith.select %91, %74, %89 : vector<16x256xi1>, vector<16x256xf32>
    %c0_62 = arith.constant 0 : index
    %c0_63 = arith.constant 0 : index
    %93 = vector.load %arg7[%c0_62, %c0_63] : memref<1x256xf32, #tpu.memory_space<vmem>>, vector<1x256xf32>
    %c3_64 = arith.constant 3 : index
    %c0_65 = arith.constant 0 : index
    %94 = vector.load %arg18[%c3_64, %c0_65] : memref<22x256xf32, #tpu.memory_space<vmem>>, vector<16x256xf32>
    tpu.vector_store %arg18[%c3_64, %c0_65], %92 {strides = array<i32>} : memref<22x256xf32, #tpu.memory_space<vmem>>, vector<16x256xf32>,
    %cst_66 = arith.constant 0.000000e+00 : f32
    %95 = vector.broadcast %cst_66 : f32 to vector<16x256xf32>
    %c0_67 = arith.constant 0 : index
    %c0_68 = arith.constant 0 : index
    %96 = vector.load %arg18[%c0_67, %c0_68] : memref<22x256xf32, #tpu.memory_space<vmem>>, vector<16x256xf32>
    %97 = arith.truncf %96 : vector<16x256xf32> to vector<16x256xbf16>
    %c0_69 = arith.constant 0 : index
    %c0_70 = arith.constant 0 : index
    %c0_71 = arith.constant 0 : index
    %98 = vector.load %arg6[%c0_69, %c0_70, %c0_71] : memref<7x256x256xbf16, #tpu.memory_space<vmem>>, vector<1x256x256xbf16>
    %99 = vector.shape_cast %98 : vector<1x256x256xbf16> to vector<256x256xbf16>
    %cst_72 = arith.constant dense<0.000000e+00> : vector<16x256xf32>
    %100 = tpu.matmul %97, %99, %cst_72 {dimension_numbers = #tpu.dot_dimension_numbers<[1], [0], [0], [1], [0, 0, 1, 1], [], []>} : vector<16x256xbf16>, vector<256x256xbf16>, vector<16x256xf32> -> vector<16x256xf32>
    %101 = arith.addf %95, %100 : vector<16x256xf32>
    %c1_73 = arith.constant 1 : index
    %c0_74 = arith.constant 0 : index
    %102 = vector.load %arg18[%c1_73, %c0_74] : memref<22x256xf32, #tpu.memory_space<vmem>>, vector<16x256xf32>
    %103 = arith.truncf %102 : vector<16x256xf32> to vector<16x256xbf16>
    %c1_75 = arith.constant 1 : index
    %c0_76 = arith.constant 0 : index
    %c0_77 = arith.constant 0 : index
    %104 = vector.load %arg6[%c1_75, %c0_76, %c0_77] : memref<7x256x256xbf16, #tpu.memory_space<vmem>>, vector<1x256x256xbf16>
    %105 = vector.shape_cast %104 : vector<1x256x256xbf16> to vector<256x256xbf16>
    %cst_78 = arith.constant dense<0.000000e+00> : vector<16x256xf32>
    %106 = tpu.matmul %103, %105, %cst_78 {dimension_numbers = #tpu.dot_dimension_numbers<[1], [0], [0], [1], [0, 0, 1, 1], [], []>} : vector<16x256xbf16>, vector<256x256xbf16>, vector<16x256xf32> -> vector<16x256xf32>
    %107 = arith.addf %101, %106 : vector<16x256xf32>
    %c2_79 = arith.constant 2 : index
    %c0_80 = arith.constant 0 : index
    %108 = vector.load %arg18[%c2_79, %c0_80] : memref<22x256xf32, #tpu.memory_space<vmem>>, vector<16x256xf32>
    %109 = arith.truncf %108 : vector<16x256xf32> to vector<16x256xbf16>
    %c2_81 = arith.constant 2 : index
    %c0_82 = arith.constant 0 : index
    %c0_83 = arith.constant 0 : index
    %110 = vector.load %arg6[%c2_81, %c0_82, %c0_83] : memref<7x256x256xbf16, #tpu.memory_space<vmem>>, vector<1x256x256xbf16>
    %111 = vector.shape_cast %110 : vector<1x256x256xbf16> to vector<256x256xbf16>
    %cst_84 = arith.constant dense<0.000000e+00> : vector<16x256xf32>
    %112 = tpu.matmul %109, %111, %cst_84 {dimension_numbers = #tpu.dot_dimension_numbers<[1], [0], [0], [1], [0, 0, 1, 1], [], []>} : vector<16x256xbf16>, vector<256x256xbf16>, vector<16x256xf32> -> vector<16x256xf32>
    %113 = arith.addf %107, %112 : vector<16x256xf32>
    %c3_85 = arith.constant 3 : index
    %c0_86 = arith.constant 0 : index
    %114 = vector.load %arg18[%c3_85, %c0_86] : memref<22x256xf32, #tpu.memory_space<vmem>>, vector<16x256xf32>
    %115 = arith.truncf %114 : vector<16x256xf32> to vector<16x256xbf16>
    %c3_87 = arith.constant 3 : index
    %c0_88 = arith.constant 0 : index
    %c0_89 = arith.constant 0 : index
    %116 = vector.load %arg6[%c3_87, %c0_88, %c0_89] : memref<7x256x256xbf16, #tpu.memory_space<vmem>>, vector<1x256x256xbf16>
    %117 = vector.shape_cast %116 : vector<1x256x256xbf16> to vector<256x256xbf16>
    %cst_90 = arith.constant dense<0.000000e+00> : vector<16x256xf32>
    %118 = tpu.matmul %115, %117, %cst_90 {dimension_numbers = #tpu.dot_dimension_numbers<[1], [0], [0], [1], [0, 0, 1, 1], [], []>} : vector<16x256xbf16>, vector<256x256xbf16>, vector<16x256xf32> -> vector<16x256xf32>
    %119 = arith.addf %113, %118 : vector<16x256xf32>
    %c4_91 = arith.constant 4 : index
    %c0_92 = arith.constant 0 : index
    %120 = vector.load %arg18[%c4_91, %c0_92] : memref<22x256xf32, #tpu.memory_space<vmem>>, vector<16x256xf32>
    %121 = arith.truncf %120 : vector<16x256xf32> to vector<16x256xbf16>
    %c4_93 = arith.constant 4 : index
    %c0_94 = arith.constant 0 : index
    %c0_95 = arith.constant 0 : index
    %122 = vector.load %arg6[%c4_93, %c0_94, %c0_95] : memref<7x256x256xbf16, #tpu.memory_space<vmem>>, vector<1x256x256xbf16>
    %123 = vector.shape_cast %122 : vector<1x256x256xbf16> to vector<256x256xbf16>
    %cst_96 = arith.constant dense<0.000000e+00> : vector<16x256xf32>
    %124 = tpu.matmul %121, %123, %cst_96 {dimension_numbers = #tpu.dot_dimension_numbers<[1], [0], [0], [1], [0, 0, 1, 1], [], []>} : vector<16x256xbf16>, vector<256x256xbf16>, vector<16x256xf32> -> vector<16x256xf32>
    %125 = arith.addf %119, %124 : vector<16x256xf32>
    %c5_97 = arith.constant 5 : index
    %c0_98 = arith.constant 0 : index
    %126 = vector.load %arg18[%c5_97, %c0_98] : memref<22x256xf32, #tpu.memory_space<vmem>>, vector<16x256xf32>
    %127 = arith.truncf %126 : vector<16x256xf32> to vector<16x256xbf16>
    %c5_99 = arith.constant 5 : index
    %c0_100 = arith.constant 0 : index
    %c0_101 = arith.constant 0 : index
    %128 = vector.load %arg6[%c5_99, %c0_100, %c0_101] : memref<7x256x256xbf16, #tpu.memory_space<vmem>>, vector<1x256x256xbf16>
    %129 = vector.shape_cast %128 : vector<1x256x256xbf16> to vector<256x256xbf16>
    %cst_102 = arith.constant dense<0.000000e+00> : vector<16x256xf32>
    %130 = tpu.matmul %127, %129, %cst_102 {dimension_numbers = #tpu.dot_dimension_numbers<[1], [0], [0], [1], [0, 0, 1, 1], [], []>} : vector<16x256xbf16>, vector<256x256xbf16>, vector<16x256xf32> -> vector<16x256xf32>
    %131 = arith.addf %125, %130 : vector<16x256xf32>
    %c6_103 = arith.constant 6 : index
    %c0_104 = arith.constant 0 : index
    %132 = vector.load %arg18[%c6_103, %c0_104] : memref<22x256xf32, #tpu.memory_space<vmem>>, vector<16x256xf32>
    %133 = arith.truncf %132 : vector<16x256xf32> to vector<16x256xbf16>
    %c6_105 = arith.constant 6 : index
    %c0_106 = arith.constant 0 : index
    %c0_107 = arith.constant 0 : index
    %134 = vector.load %arg6[%c6_105, %c0_106, %c0_107] : memref<7x256x256xbf16, #tpu.memory_space<vmem>>, vector<1x256x256xbf16>
    %135 = vector.shape_cast %134 : vector<1x256x256xbf16> to vector<256x256xbf16>
    %cst_108 = arith.constant dense<0.000000e+00> : vector<16x256xf32>
    %136 = tpu.matmul %133, %135, %cst_108 {dimension_numbers = #tpu.dot_dimension_numbers<[1], [0], [0], [1], [0, 0, 1, 1], [], []>} : vector<16x256xbf16>, vector<256x256xbf16>, vector<16x256xf32> -> vector<16x256xf32>
    %137 = arith.addf %131, %136 : vector<16x256xf32>
    %138 = vector.broadcast %93 : vector<1x256xf32> to vector<16x256xf32>
    %139 = arith.addf %137, %138 : vector<16x256xf32>
    %140 = arith.addf %139, %27 : vector<16x256xf32>
    %c16_i32 = arith.constant 16 : i32
    %141 = tpu.dynamic_rotate %140 by %c16_i32 dim 1 : vector<16x256xf32>, i32 -> vector<16x256xf32>
    %142 = arith.addf %140, %141 : vector<16x256xf32>
    %c16_i32_109 = arith.constant 16 : i32
    %143 = tpu.dynamic_rotate %140 by %c16_i32_109 dim 1 : vector<16x256xf32>, i32 -> vector<16x256xf32>
    %144 = arith.maximumf %140, %143 : vector<16x256xf32>
    %c32_i32 = arith.constant 32 : i32
    %145 = tpu.dynamic_rotate %142 by %c32_i32 dim 1 : vector<16x256xf32>, i32 -> vector<16x256xf32>
    %146 = arith.addf %142, %145 : vector<16x256xf32>
    %c32_i32_110 = arith.constant 32 : i32
    %147 = tpu.dynamic_rotate %144 by %c32_i32_110 dim 1 : vector<16x256xf32>, i32 -> vector<16x256xf32>
    %148 = arith.maximumf %144, %147 : vector<16x256xf32>
    %c64_i32 = arith.constant 64 : i32
    %149 = tpu.dynamic_rotate %146 by %c64_i32 dim 1 : vector<16x256xf32>, i32 -> vector<16x256xf32>
    %150 = arith.addf %146, %149 : vector<16x256xf32>
    %c64_i32_111 = arith.constant 64 : i32
    %151 = tpu.dynamic_rotate %148 by %c64_i32_111 dim 1 : vector<16x256xf32>, i32 -> vector<16x256xf32>
    %152 = arith.maximumf %148, %151 : vector<16x256xf32>
    %c128_i32 = arith.constant 128 : i32
    %153 = tpu.dynamic_rotate %150 by %c128_i32 dim 1 : vector<16x256xf32>, i32 -> vector<16x256xf32>
    %154 = arith.addf %150, %153 : vector<16x256xf32>
    %c128_i32_112 = arith.constant 128 : i32
    %155 = tpu.dynamic_rotate %152 by %c128_i32_112 dim 1 : vector<16x256xf32>, i32 -> vector<16x256xf32>
    %156 = arith.maximumf %152, %155 : vector<16x256xf32>
    %cst_113 = arith.constant dense<0.000000e+00> : vector<256xf32>
    %157 = vector.multi_reduction <add>, %154, %cst_113 [0] : vector<16x256xf32> to vector<256xf32>
    %158 = vector.shape_cast %157 : vector<256xf32> to vector<1x256xf32>
    %cst_114 = arith.constant dense<0xFF800000> : vector<256xf32>
    %159 = vector.multi_reduction <maximumf>, %156, %cst_114 [0] : vector<16x256xf32> to vector<256xf32>
    %160 = vector.shape_cast %159 : vector<256xf32> to vector<1x256xf32>
    %cst_115 = arith.constant 3.906250e-03 : f32
    %161 = vector.broadcast %cst_115 : f32 to vector<1x256xf32>
    %162 = arith.mulf %158, %161 : vector<1x256xf32>
    %163 = tpu.iota {dimensions = array<i32: 0>} : vector<2x256xi32>
    %c0_i32 = arith.constant 0 : i32
    %164 = vector.broadcast %c0_i32 : i32 to vector<2x256xi32>
    %165 = arith.cmpi eq, %163, %164 : vector<2x256xi32>
    %166 = vector.shape_cast %162 : vector<1x256xf32> to vector<1x256xf32>
    %167 = vector.broadcast %166 : vector<1x256xf32> to vector<2x256xf32>
    %168 = vector.shape_cast %160 : vector<1x256xf32> to vector<1x256xf32>
    %169 = vector.broadcast %168 : vector<1x256xf32> to vector<2x256xf32>
    %170 = arith.select %165, %167, %169 : vector<2x256xi1>, vector<2x256xf32>
    %c0_116 = arith.constant 0 : index
    %c0_117 = arith.constant 0 : index
    %171 = vector.load %arg8[%c0_116, %c0_117] : memref<256x4xf32, #tpu.memory_space<vmem>>, vector<256x4xf32>
    %cst_118 = arith.constant dense<0.000000e+00> : vector<2x4xf32>
    %172 = tpu.matmul %170, %171, %cst_118 {dimension_numbers = #tpu.dot_dimension_numbers<[1], [0], [0], [1], [0, 0, 1, 1], [], []>} : vector<2x256xf32>, vector<256x4xf32>, vector<2x4xf32> -> vector<2x4xf32>
    %c0_119 = arith.constant 0 : index
    %c0_120 = arith.constant 0 : index
    %173 = vector.load %arg9[%c0_119, %c0_120] : memref<1x4xf32, #tpu.memory_space<vmem>>, vector<1x4xf32>
    %174 = vector.broadcast %173 : vector<1x4xf32> to vector<2x4xf32>
    %175 = arith.addf %172, %174 : vector<2x4xf32>
    %cst_121 = arith.constant 0.000000e+00 : f32
    %176 = vector.broadcast %cst_121 : f32 to vector<2x4xf32>
    %177 = arith.maximumf %175, %176 : vector<2x4xf32>
    %c0_122 = arith.constant 0 : index
    %c0_123 = arith.constant 0 : index
    %178 = vector.load %arg10[%c0_122, %c0_123] : memref<4x256xf32, #tpu.memory_space<vmem>>, vector<4x256xf32>
    %cst_124 = arith.constant dense<0.000000e+00> : vector<2x256xf32>
    %179 = tpu.matmul %177, %178, %cst_124 {dimension_numbers = #tpu.dot_dimension_numbers<[1], [0], [0], [1], [0, 0, 1, 1], [], []>} : vector<2x4xf32>, vector<4x256xf32>, vector<2x256xf32> -> vector<2x256xf32>
    %c0_125 = arith.constant 0 : index
    %c0_126 = arith.constant 0 : index
    %180 = vector.load %arg11[%c0_125, %c0_126] : memref<1x256xf32, #tpu.memory_space<vmem>>, vector<1x256xf32>
    %181 = vector.broadcast %180 : vector<1x256xf32> to vector<2x256xf32>
    %182 = arith.addf %179, %181 : vector<2x256xf32>
    %183 = vector.extract_strided_slice %182 {offsets = [0, 0], sizes = [1, 256], strides = [1, 1]} : vector<2x256xf32> to vector<1x256xf32>
    %184 = vector.extract_strided_slice %182 {offsets = [1, 0], sizes = [1, 256], strides = [1, 1]} : vector<2x256xf32> to vector<1x256xf32>
    %185 = arith.addf %183, %184 : vector<1x256xf32>
    %186 = math.absf %185 : vector<1x256xf32>
    %cst_127 = arith.constant 0.000000e+00 : f32
    %187 = vector.broadcast %cst_127 : f32 to vector<1x256xf32>
    %188 = arith.subf %187, %186 : vector<1x256xf32>
    %189 = math.exp %188 : vector<1x256xf32>
    %cst_128 = arith.constant 1.000000e+00 : f32
    %190 = vector.broadcast %cst_128 : f32 to vector<1x256xf32>
    %191 = arith.addf %190, %189 : vector<1x256xf32>
    %192 = tpu.reciprocal %191 {approx = true} : vector<1x256xf32> -> vector<1x256xf32>
    %cst_129 = arith.constant 0.000000e+00 : f32
    %193 = vector.broadcast %cst_129 : f32 to vector<1x256xf32>
    %194 = arith.cmpf oge, %185, %193 : vector<1x256xf32>
    %cst_130 = arith.constant 1.000000e+00 : f32
    %195 = vector.broadcast %cst_130 : f32 to vector<1x256xf32>
    %196 = arith.subf %195, %192 : vector<1x256xf32>
    %197 = arith.select %194, %192, %196 : vector<1x256xi1>, vector<1x256xf32>
    %198 = vector.broadcast %197 : vector<1x256xf32> to vector<16x256xf32>
    %199 = arith.mulf %140, %198 : vector<16x256xf32>
    %c255_i32 = arith.constant 255 : i32
    %200 = tpu.dynamic_rotate %199 by %c255_i32 dim 1 : vector<16x256xf32>, i32 -> vector<16x256xf32>
    %201 = arith.addf %199, %200 : vector<16x256xf32>
    %c1_i32 = arith.constant 1 : i32
    %202 = tpu.dynamic_rotate %199 by %c1_i32 dim 1 : vector<16x256xf32>, i32 -> vector<16x256xf32>
    %203 = arith.maximumf %199, %202 : vector<16x256xf32>
    %c254_i32 = arith.constant 254 : i32
    %204 = tpu.dynamic_rotate %201 by %c254_i32 dim 1 : vector<16x256xf32>, i32 -> vector<16x256xf32>
    %205 = arith.addf %201, %204 : vector<16x256xf32>
    %c2_i32 = arith.constant 2 : i32
    %206 = tpu.dynamic_rotate %203 by %c2_i32 dim 1 : vector<16x256xf32>, i32 -> vector<16x256xf32>
    %207 = arith.maximumf %203, %206 : vector<16x256xf32>
    %c252_i32 = arith.constant 252 : i32
    %208 = tpu.dynamic_rotate %205 by %c252_i32 dim 1 : vector<16x256xf32>, i32 -> vector<16x256xf32>
    %209 = arith.addf %205, %208 : vector<16x256xf32>
    %c4_i32 = arith.constant 4 : i32
    %210 = tpu.dynamic_rotate %207 by %c4_i32 dim 1 : vector<16x256xf32>, i32 -> vector<16x256xf32>
    %211 = arith.maximumf %207, %210 : vector<16x256xf32>
    %c248_i32 = arith.constant 248 : i32
    %212 = tpu.dynamic_rotate %209 by %c248_i32 dim 1 : vector<16x256xf32>, i32 -> vector<16x256xf32>
    %213 = arith.addf %209, %212 : vector<16x256xf32>
    %c8_i32 = arith.constant 8 : i32
    %214 = tpu.dynamic_rotate %211 by %c8_i32 dim 1 : vector<16x256xf32>, i32 -> vector<16x256xf32>
    %215 = arith.maximumf %211, %214 : vector<16x256xf32>
    %216 = tpu.iota {dimensions = array<i32: 1>} : vector<16x256xi32>
    %c16_i32_131 = arith.constant 16 : i32
    %c0_i32_132 = arith.constant 0 : i32
    %217 = arith.cmpi eq, %c16_i32_131, %c0_i32_132 : i32
    %c1_i32_133 = arith.constant 1 : i32
    %218 = arith.select %217, %c1_i32_133, %c16_i32_131 : i32
    %219 = vector.broadcast %218 : i32 to vector<16x256xi32>
    %220 = arith.remsi %216, %219 : vector<16x256xi32>
    %c0_i32_134 = arith.constant 0 : i32
    %221 = vector.broadcast %c0_i32_134 : i32 to vector<16x256xi32>
    %222 = arith.cmpi ne, %220, %221 : vector<16x256xi32>
    %c0_i32_135 = arith.constant 0 : i32
    %223 = vector.broadcast %c0_i32_135 : i32 to vector<16x256xi32>
    %224 = arith.cmpi slt, %220, %223 : vector<16x256xi32>
    %c0_i32_136 = arith.constant 0 : i32
    %225 = arith.cmpi slt, %218, %c0_i32_136 : i32
    %226 = vector.broadcast %225 : i1 to vector<16x256xi1>
    %227 = vector.broadcast %226 : vector<16x256xi1> to vector<16x256xi1>
    %228 = arith.xori %224, %227 : vector<16x256xi1>
    %229 = arith.andi %228, %222 : vector<16x256xi1>
    %230 = vector.broadcast %218 : i32 to vector<16x256xi32>
    %231 = arith.addi %220, %230 : vector<16x256xi32>
    %232 = arith.select %229, %231, %220 : vector<16x256xi1>, vector<16x256xi32>
    %c15_i32 = arith.constant 15 : i32
    %233 = vector.broadcast %c15_i32 : i32 to vector<16x256xi32>
    %234 = arith.cmpi eq, %232, %233 : vector<16x256xi32>
    %cst_137 = arith.constant 6.250000e-02 : f32
    %235 = vector.broadcast %cst_137 : f32 to vector<16x256xf32>
    %236 = arith.mulf %213, %235 : vector<16x256xf32>
    %237 = arith.select %234, %215, %236 : vector<16x256xi1>, vector<16x256xf32>
    %c0_138 = arith.constant 0 : index
    %c0_139 = arith.constant 0 : index
    %238 = vector.load %arg13[%c0_138, %c0_139] : memref<1x1xf32, #tpu.memory_space<vmem>>, vector<1x1xf32>
    %c3_140 = arith.constant 3 : index
    %c0_141 = arith.constant 0 : index
    %239 = vector.load %arg18[%c3_140, %c0_141] : memref<22x256xf32, #tpu.memory_space<vmem>>, vector<16x256xf32>
    tpu.vector_store %arg18[%c3_140, %c0_141], %237 {strides = array<i32>} : memref<22x256xf32, #tpu.memory_space<vmem>>, vector<16x256xf32>,
    %cst_142 = arith.constant 0.000000e+00 : f32
    %240 = vector.broadcast %cst_142 : f32 to vector<16x256xf32>
    %c0_143 = arith.constant 0 : index
    %c0_144 = arith.constant 0 : index
    %241 = vector.load %arg18[%c0_143, %c0_144] : memref<22x256xf32, #tpu.memory_space<vmem>>, vector<16x256xf32>
    %242 = arith.truncf %241 : vector<16x256xf32> to vector<16x256xbf16>
    %c0_145 = arith.constant 0 : index
    %c0_146 = arith.constant 0 : index
    %c0_147 = arith.constant 0 : index
    %243 = vector.load %arg12[%c0_145, %c0_146, %c0_147] : memref<7x256x256xbf16, #tpu.memory_space<vmem>>, vector<1x256x256xbf16>
    %244 = vector.shape_cast %243 : vector<1x256x256xbf16> to vector<256x256xbf16>
    %cst_148 = arith.constant dense<0.000000e+00> : vector<16x256xf32>
    %245 = tpu.matmul %242, %244, %cst_148 {dimension_numbers = #tpu.dot_dimension_numbers<[1], [0], [0], [1], [0, 0, 1, 1], [], []>} : vector<16x256xbf16>, vector<256x256xbf16>, vector<16x256xf32> -> vector<16x256xf32>
    %246 = arith.addf %240, %245 : vector<16x256xf32>
    %c1_149 = arith.constant 1 : index
    %c0_150 = arith.constant 0 : index
    %247 = vector.load %arg18[%c1_149, %c0_150] : memref<22x256xf32, #tpu.memory_space<vmem>>, vector<16x256xf32>
    %248 = arith.truncf %247 : vector<16x256xf32> to vector<16x256xbf16>
    %c1_151 = arith.constant 1 : index
    %c0_152 = arith.constant 0 : index
    %c0_153 = arith.constant 0 : index
    %249 = vector.load %arg12[%c1_151, %c0_152, %c0_153] : memref<7x256x256xbf16, #tpu.memory_space<vmem>>, vector<1x256x256xbf16>
    %250 = vector.shape_cast %249 : vector<1x256x256xbf16> to vector<256x256xbf16>
    %cst_154 = arith.constant dense<0.000000e+00> : vector<16x256xf32>
    %251 = tpu.matmul %248, %250, %cst_154 {dimension_numbers = #tpu.dot_dimension_numbers<[1], [0], [0], [1], [0, 0, 1, 1], [], []>} : vector<16x256xbf16>, vector<256x256xbf16>, vector<16x256xf32> -> vector<16x256xf32>
    %252 = arith.addf %246, %251 : vector<16x256xf32>
    %c2_155 = arith.constant 2 : index
    %c0_156 = arith.constant 0 : index
    %253 = vector.load %arg18[%c2_155, %c0_156] : memref<22x256xf32, #tpu.memory_space<vmem>>, vector<16x256xf32>
    %254 = arith.truncf %253 : vector<16x256xf32> to vector<16x256xbf16>
    %c2_157 = arith.constant 2 : index
    %c0_158 = arith.constant 0 : index
    %c0_159 = arith.constant 0 : index
    %255 = vector.load %arg12[%c2_157, %c0_158, %c0_159] : memref<7x256x256xbf16, #tpu.memory_space<vmem>>, vector<1x256x256xbf16>
    %256 = vector.shape_cast %255 : vector<1x256x256xbf16> to vector<256x256xbf16>
    %cst_160 = arith.constant dense<0.000000e+00> : vector<16x256xf32>
    %257 = tpu.matmul %254, %256, %cst_160 {dimension_numbers = #tpu.dot_dimension_numbers<[1], [0], [0], [1], [0, 0, 1, 1], [], []>} : vector<16x256xbf16>, vector<256x256xbf16>, vector<16x256xf32> -> vector<16x256xf32>
    %258 = arith.addf %252, %257 : vector<16x256xf32>
    %c3_161 = arith.constant 3 : index
    %c0_162 = arith.constant 0 : index
    %259 = vector.load %arg18[%c3_161, %c0_162] : memref<22x256xf32, #tpu.memory_space<vmem>>, vector<16x256xf32>
    %260 = arith.truncf %259 : vector<16x256xf32> to vector<16x256xbf16>
    %c3_163 = arith.constant 3 : index
    %c0_164 = arith.constant 0 : index
    %c0_165 = arith.constant 0 : index
    %261 = vector.load %arg12[%c3_163, %c0_164, %c0_165] : memref<7x256x256xbf16, #tpu.memory_space<vmem>>, vector<1x256x256xbf16>
    %262 = vector.shape_cast %261 : vector<1x256x256xbf16> to vector<256x256xbf16>
    %cst_166 = arith.constant dense<0.000000e+00> : vector<16x256xf32>
    %263 = tpu.matmul %260, %262, %cst_166 {dimension_numbers = #tpu.dot_dimension_numbers<[1], [0], [0], [1], [0, 0, 1, 1], [], []>} : vector<16x256xbf16>, vector<256x256xbf16>, vector<16x256xf32> -> vector<16x256xf32>
    %264 = arith.addf %258, %263 : vector<16x256xf32>
    %c4_167 = arith.constant 4 : index
    %c0_168 = arith.constant 0 : index
    %265 = vector.load %arg18[%c4_167, %c0_168] : memref<22x256xf32, #tpu.memory_space<vmem>>, vector<16x256xf32>
    %266 = arith.truncf %265 : vector<16x256xf32> to vector<16x256xbf16>
    %c4_169 = arith.constant 4 : index
    %c0_170 = arith.constant 0 : index
    %c0_171 = arith.constant 0 : index
    %267 = vector.load %arg12[%c4_169, %c0_170, %c0_171] : memref<7x256x256xbf16, #tpu.memory_space<vmem>>, vector<1x256x256xbf16>
    %268 = vector.shape_cast %267 : vector<1x256x256xbf16> to vector<256x256xbf16>
    %cst_172 = arith.constant dense<0.000000e+00> : vector<16x256xf32>
    %269 = tpu.matmul %266, %268, %cst_172 {dimension_numbers = #tpu.dot_dimension_numbers<[1], [0], [0], [1], [0, 0, 1, 1], [], []>} : vector<16x256xbf16>, vector<256x256xbf16>, vector<16x256xf32> -> vector<16x256xf32>
    %270 = arith.addf %264, %269 : vector<16x256xf32>
    %c5_173 = arith.constant 5 : index
    %c0_174 = arith.constant 0 : index
    %271 = vector.load %arg18[%c5_173, %c0_174] : memref<22x256xf32, #tpu.memory_space<vmem>>, vector<16x256xf32>
    %272 = arith.truncf %271 : vector<16x256xf32> to vector<16x256xbf16>
    %c5_175 = arith.constant 5 : index
    %c0_176 = arith.constant 0 : index
    %c0_177 = arith.constant 0 : index
    %273 = vector.load %arg12[%c5_175, %c0_176, %c0_177] : memref<7x256x256xbf16, #tpu.memory_space<vmem>>, vector<1x256x256xbf16>
    %274 = vector.shape_cast %273 : vector<1x256x256xbf16> to vector<256x256xbf16>
    %cst_178 = arith.constant dense<0.000000e+00> : vector<16x256xf32>
    %275 = tpu.matmul %272, %274, %cst_178 {dimension_numbers = #tpu.dot_dimension_numbers<[1], [0], [0], [1], [0, 0, 1, 1], [], []>} : vector<16x256xbf16>, vector<256x256xbf16>, vector<16x256xf32> -> vector<16x256xf32>
    %276 = arith.addf %270, %275 : vector<16x256xf32>
    %c6_179 = arith.constant 6 : index
    %c0_180 = arith.constant 0 : index
    %277 = vector.load %arg18[%c6_179, %c0_180] : memref<22x256xf32, #tpu.memory_space<vmem>>, vector<16x256xf32>
    %278 = arith.truncf %277 : vector<16x256xf32> to vector<16x256xbf16>
    %c6_181 = arith.constant 6 : index
    %c0_182 = arith.constant 0 : index
    %c0_183 = arith.constant 0 : index
    %279 = vector.load %arg12[%c6_181, %c0_182, %c0_183] : memref<7x256x256xbf16, #tpu.memory_space<vmem>>, vector<1x256x256xbf16>
    %280 = vector.shape_cast %279 : vector<1x256x256xbf16> to vector<256x256xbf16>
    %cst_184 = arith.constant dense<0.000000e+00> : vector<16x256xf32>
    %281 = tpu.matmul %278, %280, %cst_184 {dimension_numbers = #tpu.dot_dimension_numbers<[1], [0], [0], [1], [0, 0, 1, 1], [], []>} : vector<16x256xbf16>, vector<256x256xbf16>, vector<16x256xf32> -> vector<16x256xf32>
    %282 = arith.addf %276, %281 : vector<16x256xf32>
    %283 = vector.broadcast %238 : vector<1x1xf32> to vector<16x256xf32>
    %284 = arith.addf %282, %283 : vector<16x256xf32>
    %285 = math.absf %284 : vector<16x256xf32>
    %cst_185 = arith.constant 0.000000e+00 : f32
    %286 = vector.broadcast %cst_185 : f32 to vector<16x256xf32>
    %287 = arith.subf %286, %285 : vector<16x256xf32>
    %288 = math.exp %287 : vector<16x256xf32>
    %cst_186 = arith.constant 1.000000e+00 : f32
    %289 = vector.broadcast %cst_186 : f32 to vector<16x256xf32>
    %290 = arith.addf %289, %288 : vector<16x256xf32>
    %291 = tpu.reciprocal %290 {approx = true} : vector<16x256xf32> -> vector<16x256xf32>
    %cst_187 = arith.constant 0.000000e+00 : f32
    %292 = vector.broadcast %cst_187 : f32 to vector<16x256xf32>
    %293 = arith.cmpf oge, %284, %292 : vector<16x256xf32>
    %cst_188 = arith.constant 1.000000e+00 : f32
    %294 = vector.broadcast %cst_188 : f32 to vector<16x256xf32>
    %295 = arith.subf %294, %291 : vector<16x256xf32>
    %296 = arith.select %293, %291, %295 : vector<16x256xi1>, vector<16x256xf32>
    %297 = arith.mulf %199, %296 : vector<16x256xf32>
    %298 = arith.truncf %297 : vector<16x256xf32> to vector<16x256xbf16>
    %c0_189 = arith.constant 0 : index
    %c0_190 = arith.constant 0 : index
    %299 = vector.load %arg14[%c0_189, %c0_190] : memref<256x256xbf16, #tpu.memory_space<vmem>>, vector<256x256xbf16>
    %cst_191 = arith.constant dense<0.000000e+00> : vector<16x256xf32>
    %300 = tpu.matmul %298, %299, %cst_191 {dimension_numbers = #tpu.dot_dimension_numbers<[1], [0], [0], [1], [0, 0, 1, 1], [], []>} : vector<16x256xbf16>, vector<256x256xbf16>, vector<16x256xf32> -> vector<16x256xf32>
    %301 = arith.truncf %140 : vector<16x256xf32> to vector<16x256xbf16>
    %c0_192 = arith.constant 0 : index
    %c0_193 = arith.constant 0 : index
    %302 = vector.load %arg15[%c0_192, %c0_193] : memref<256x256xbf16, #tpu.memory_space<vmem>>, vector<256x256xbf16>
    %cst_194 = arith.constant dense<0.000000e+00> : vector<16x256xf32>
    %303 = tpu.matmul %301, %302, %cst_194 {dimension_numbers = #tpu.dot_dimension_numbers<[1], [0], [0], [1], [0, 0, 1, 1], [], []>} : vector<16x256xbf16>, vector<256x256xbf16>, vector<16x256xf32> -> vector<16x256xf32>
    %304 = arith.addf %300, %303 : vector<16x256xf32>
    %c0_195 = arith.constant 0 : index
    %c0_196 = arith.constant 0 : index
    %305 = vector.load %arg16[%c0_195, %c0_196] : memref<1x256xf32, #tpu.memory_space<vmem>>, vector<1x256xf32>
    %306 = vector.broadcast %305 : vector<1x256xf32> to vector<16x256xf32>
    %307 = arith.addf %304, %306 : vector<16x256xf32>
    %cst_197 = arith.constant 2.000000e+01 : f32
    %308 = vector.broadcast %cst_197 : f32 to vector<16x256xf32>
    %309 = arith.minimumf %307, %308 : vector<16x256xf32>
    %310 = math.exp %309 : vector<16x256xf32>
    %cst_198 = arith.constant 1.000000e+00 : f32
    %311 = vector.broadcast %cst_198 : f32 to vector<16x256xf32>
    %312 = arith.addf %311, %310 : vector<16x256xf32>
    %cst_199 = arith.constant 1.000000e+00 : f32
    %313 = vector.broadcast %cst_199 : f32 to vector<16x256xf32>
    %314 = arith.addf %313, %310 : vector<16x256xf32>
    %315 = arith.mulf %312, %314 : vector<16x256xf32>
    %cst_200 = arith.constant 1.000000e+00 : f32
    %316 = vector.broadcast %cst_200 : f32 to vector<16x256xf32>
    %317 = arith.subf %315, %316 : vector<16x256xf32>
    %318 = arith.mulf %307, %317 : vector<16x256xf32>
    %cst_201 = arith.constant 1.000000e+00 : f32
    %319 = vector.broadcast %cst_201 : f32 to vector<16x256xf32>
    %320 = arith.addf %315, %319 : vector<16x256xf32>
    %321 = tpu.reciprocal %320 {approx = true} : vector<16x256xf32> -> vector<16x256xf32>
    %322 = arith.mulf %318, %321 : vector<16x256xf32>
    %cst_202 = arith.constant 2.000000e+01 : f32
    %323 = vector.broadcast %cst_202 : f32 to vector<16x256xf32>
    %324 = arith.cmpf ogt, %307, %323 : vector<16x256xf32>
    %325 = arith.select %324, %307, %322 : vector<16x256xi1>, vector<16x256xf32>
    %326 = arith.addf %325, %3 : vector<16x256xf32>
    %c0_203 = arith.constant 0 : index
    %c0_204 = arith.constant 0 : index
    %c0_205 = arith.constant 0 : index
    %327 = vector.load %arg17[%c0_203, %c0_204, %c0_205] : memref<1x16x256xf32, #tpu.memory_space<vmem>>, vector<1x16x256xf32>
    %328 = vector.shape_cast %327 : vector<1x16x256xf32> to vector<16x256xf32>
    %329 = vector.shape_cast %326 : vector<16x256xf32> to vector<1x16x256xf32>
    tpu.vector_store %arg17[%c0_203, %c0_204, %c0_205], %329 {strides = array<i32>} : memref<1x16x256xf32, #tpu.memory_space<vmem>>, vector<1x16x256xf32>,
    return
  }
  func.func @transform_0(%arg0: i32) -> (i32, i32, i32) {
    %c0_i32 = arith.constant 0 : i32
    %c0_i32_0 = arith.constant 0 : i32
    %c0_i32_1 = arith.constant 0 : i32
    return %arg0, %c0_i32, %c0_i32_0 : i32, i32, i32
  }
  func.func @transform_1(%arg0: i32) -> (i32, i32) {
    %c0_i32 = arith.constant 0 : i32
    %c0_i32_0 = arith.constant 0 : i32
    %c0_i32_1 = arith.constant 0 : i32
    return %c0_i32, %c0_i32_0 : i32, i32
  }
  func.func @transform_2(%arg0: i32) -> (i32, i32) {
    %c0_i32 = arith.constant 0 : i32
    %c0_i32_0 = arith.constant 0 : i32
    %c0_i32_1 = arith.constant 0 : i32
    return %c0_i32, %c0_i32_0 : i32, i32
  }
  func.func @transform_3(%arg0: i32) -> (i32, i32, i32) {
    %c0_i32 = arith.constant 0 : i32
    %c0_i32_0 = arith.constant 0 : i32
    %c0_i32_1 = arith.constant 0 : i32
    %c0_i32_2 = arith.constant 0 : i32
    return %c0_i32, %c0_i32_0, %c0_i32_1 : i32, i32, i32
  }
  func.func @transform_4(%arg0: i32) -> (i32, i32) {
    %c0_i32 = arith.constant 0 : i32
    %c0_i32_0 = arith.constant 0 : i32
    %c0_i32_1 = arith.constant 0 : i32
    return %c0_i32, %c0_i32_0 : i32, i32
  }
  func.func @transform_5(%arg0: i32) -> (i32, i32, i32) {
    %c0_i32 = arith.constant 0 : i32
    %c0_i32_0 = arith.constant 0 : i32
    %c0_i32_1 = arith.constant 0 : i32
    %c0_i32_2 = arith.constant 0 : i32
    return %c0_i32, %c0_i32_0, %c0_i32_1 : i32, i32, i32
  }
  func.func @transform_6(%arg0: i32) -> (i32, i32) {
    %c0_i32 = arith.constant 0 : i32
    %c0_i32_0 = arith.constant 0 : i32
    %c0_i32_1 = arith.constant 0 : i32
    return %c0_i32, %c0_i32_0 : i32, i32
  }
  func.func @transform_7(%arg0: i32) -> (i32, i32) {
    %c0_i32 = arith.constant 0 : i32
    %c0_i32_0 = arith.constant 0 : i32
    %c0_i32_1 = arith.constant 0 : i32
    return %c0_i32, %c0_i32_0 : i32, i32
  }
  func.func @transform_8(%arg0: i32) -> (i32, i32) {
    %c0_i32 = arith.constant 0 : i32
    %c0_i32_0 = arith.constant 0 : i32
    %c0_i32_1 = arith.constant 0 : i32
    return %c0_i32, %c0_i32_0 : i32, i32
  }
  func.func @transform_9(%arg0: i32) -> (i32, i32) {
    %c0_i32 = arith.constant 0 : i32
    %c0_i32_0 = arith.constant 0 : i32
    %c0_i32_1 = arith.constant 0 : i32
    return %c0_i32, %c0_i32_0 : i32, i32
  }
  func.func @transform_10(%arg0: i32) -> (i32, i32) {
    %c0_i32 = arith.constant 0 : i32
    %c0_i32_0 = arith.constant 0 : i32
    %c0_i32_1 = arith.constant 0 : i32
    return %c0_i32, %c0_i32_0 : i32, i32
  }
  func.func @transform_11(%arg0: i32) -> (i32, i32, i32) {
    %c0_i32 = arith.constant 0 : i32
    %c0_i32_0 = arith.constant 0 : i32
    %c0_i32_1 = arith.constant 0 : i32
    %c0_i32_2 = arith.constant 0 : i32
    return %c0_i32, %c0_i32_0, %c0_i32_1 : i32, i32, i32
  }
  func.func @transform_12(%arg0: i32) -> (i32, i32) {
    %c0_i32 = arith.constant 0 : i32
    %c0_i32_0 = arith.constant 0 : i32
    %c0_i32_1 = arith.constant 0 : i32
    return %c0_i32, %c0_i32_0 : i32, i32
  }
  func.func @transform_13(%arg0: i32) -> (i32, i32) {
    %c0_i32 = arith.constant 0 : i32
    %c0_i32_0 = arith.constant 0 : i32
    %c0_i32_1 = arith.constant 0 : i32
    return %c0_i32, %c0_i32_0 : i32, i32
  }
  func.func @transform_14(%arg0: i32) -> (i32, i32) {
    %c0_i32 = arith.constant 0 : i32
    %c0_i32_0 = arith.constant 0 : i32
    %c0_i32_1 = arith.constant 0 : i32
    return %c0_i32, %c0_i32_0 : i32, i32
  }
  func.func @transform_15(%arg0: i32) -> (i32, i32) {
    %c0_i32 = arith.constant 0 : i32
    %c0_i32_0 = arith.constant 0 : i32
    %c0_i32_1 = arith.constant 0 : i32
    return %c0_i32, %c0_i32_0 : i32, i32
  }
  func.func @transform_16(%arg0: i32) -> (i32, i32, i32) {
    %c0_i32 = arith.constant 0 : i32
    %c0_i32_0 = arith.constant 0 : i32
    %c0_i32_1 = arith.constant 0 : i32
    return %arg0, %c0_i32, %c0_i32_0 : i32, i32, i32
  }
}

</mosaic_0001>

<bundles_post_ra>
// kernel: mulres_block.1
= control target key start
LH: loop header
LB: loop body
LE: loop exit
PB: predicated region body
PF: predicated region fallthrough
CT: control target
= control target key end

     0   :  { %s11977_s0 = inlined_call_operand.vmem [shape: f32[2,16,256], index: 0, kind: input, shape index: {}]   ;;  %s11978_s1 = inlined_call_operand.hbm [shape: bf16[256,256], index: 1, kind: input, shape index: {}]   ;;  %s11979_s2 = inlined_call_operand.vmem [shape: f32[1,256], index: 2, kind: input, shape index: {}]   ;;  %s11980_s3 = inlined_call_operand.vmem [shape: bf16[7,256,256], index: 3, kind: input, shape index: {}]   ;;  %s11981_s4 = inlined_call_operand.vmem [shape: f32[1,256], index: 4, kind: input, shape index: {}]   ;;  %s11982_s5 = inlined_call_operand.hbm [shape: bf16[7,256,256], index: 5, kind: input, shape index: {}]   ;;  %s11983_s6 = inlined_call_operand.vmem [shape: f32[1,256], index: 6, kind: input, shape index: {}]   ;;  %s11984_s7 = inlined_call_operand.vmem [shape: f32[256,4], index: 7, kind: input, shape index: {}]   ;;  %s11985_s8 = inlined_call_operand.vmem [shape: f32[1,4], index: 8, kind: input, shape index: {}]   ;;  %s11986_s9 = inlined_call_operand.vmem [shape: f32[4,256], index: 9, kind: input, shape index: {}]   ;;  %s11987_s10 = inlined_call_operand.vmem [shape: f32[1,256], index: 10, kind: input, shape index: {}]   ;;  %s11988_s11 = inlined_call_operand.hbm [shape: bf16[7,256,256], index: 11, kind: input, shape index: {}]   ;;  %s11989_s12 = inlined_call_operand.<no memory space> [shape: f32[1,1], index: 12, kind: input, shape index: {}]   ;;  %s11990_s13 = inlined_call_operand.hbm [shape: bf16[256,256], index: 13, kind: input, shape index: {}]   ;;  %s11991_s14 = inlined_call_operand.hbm [shape: bf16[256,256], index: 14, kind: input, shape index: {}]   ;;  %s11992_s15 = inlined_call_operand.vmem [shape: f32[1,256], index: 15, kind: input, shape index: {}]   ;;  %s11993_s16 = inlined_call_operand.vmem [shape: f32[2,16,256], index: 16, kind: output, shape index: {}]  }
   0x1   :  { %11997 = sst [smem:[#allocation16_spill]] %s11977_s0  ;;  %v21_v0 = vstv %s11989_s12 }
   0x2   :  { %11998 = sst [smem:[#allocation17_spill]] %s11987_s10  ;;  %22 = vst [vmem:[#allocation3] sm:$0x1] %v21_v0 }
   0x3   :  { %11999 = sst [smem:[#allocation18_spill]] %s11992_s15 }
   0x4   :  { %12000 = sst [smem:[#allocation19_spill]] %s11993_s16 }
   0x5   :  { %23 = vsyncpa [#allocation5], 0 }
   0x6   :  { %24 = vsyncpa [#allocation7], 0 }
   0x7   :  { %25 = vsyncpa [#allocation10], 0  ;;  %s10605_s23 = smov 0  }
   0x8 LB: > { %12001 = sst [smem:[#allocation15_spill]] %s10495_s23  ;;  %s10611_s24 = sadd.s32 4294967295, %s10495_s23   ;;  %s10495_s23 = sphi %s10605_s23, %s31_s23  }
   0x9   : > { %p7871_p0 = scmp.ge.s32.totalorder %s10495_s23, 1  ;;  %p403_p1 = scmp.lt.s32.totalorder %s10495_s23, 3 }
   0xa   : > { %p11995_p2 = scmp.eq.s32.totalorder %s10611_s24, 0  ;;  %s10497_s25 = smov [#allocation6]  }
   0xb   : > { %p10616_p3 = pnand %p7871_p0, %p403_p1  ;;  %s437_s26 = sshll.u32 %s10497_s25, 4  ;;  %s10620_s26 = int_to_ptr.vmem [resolvable:$true] %s437_s26 }
   0xc   : > { %s10498_s27 = smov [#allocation9]   ;;  %s10499_s30 = smov [#allocation4]  }
   0xd   : > { %s12002_s12 = scalar_select %p10616_p3, 1, 0 }
   0xe   : > { %p9032_p4 = pneg %p10616_p3  ;;  %s481_s28 = sshll.u32 %s10498_s27, 4  ;;  %s10624_s28 = int_to_ptr.vmem [resolvable:$true] %s481_s28 }
   0xf   : > { %s415_s0 = sshll.u32 %s10499_s30, 4  ;;  %s10500_s17 = smov [#allocation8]   ;;  %s10632_s0 = int_to_ptr.vmem [resolvable:$true] %s415_s0 }
  0x10   : > { %p10628_p5 = pnand %p11995_p2, %p9032_p4  ;;  %s10634_s18 = sshll.u32 %s10500_s17, 4  ;;  %s466_s18 = int_to_ptr.vmem [resolvable:$true] %s10634_s18 }
  0x11   : > { %s10337_s21 = scalar_lea.hbm %s11982_s5, 28672 }
  0x12   : > { %p10338_p6 = scmp.ne.s32.totalorder %s11982_s5, %s10337_s21  ;;  %p10644_p7 = pneg %p10628_p5 }
  0x13   : > { %p10344_p10 = scmp.lt.u32.totalorder %s10337_s21, %s11982_s5 }
  0x14   : > { %p10340_p8 = pnand %p10644_p7, %p10338_p6 }
  0x16   : > { %p10341_p9 = pneg %p10340_p8 }
  0x18   : > { %p10346_p11 = pnand %p10344_p10, %p10341_p9 }
  0x1a   : > { %10349 = shalt.err (!%p10346_p11)
}
  0x1b   : > { %s10350_s19 = scalar_lea.vmem %s10620_s26, 28672  ;;  %p10358_p1 = scmp.lt.s32.totalorder %s10620_s26, %s10620_s26 }
  0x1c   : > { %p10351_p12 = scmp.ne.s32.totalorder %s10620_s26, %s10350_s19  ;;  %p10359_p4 = scmp.lt.s32.totalorder %s10350_s19, %s10350_s19 }
  0x1e   : > { %p10353_p13 = pnand %p10351_p12, %p10644_p7  ;;  %p10360_p6 = por %p10359_p4, %p10358_p1 }
  0x20   : > { %p10354_p0 = pneg %p10353_p13 }
  0x22   : > { %p10361_p8 = pnand %p10360_p6, %p10354_p0 }
  0x24   : > { %10364 = shalt.err (!%p10361_p8)
}
  0x25   : > { %s10501_s20 = smov 128   ;;  %s10502_s21 = smov 8  }
  0x26   : > { %9038 = dma.hbm_to_vmem [thread:$0]  (!%p10628_p5), %s11982_s5, 28672, %s10620_s26, [#allocation7], %s10501_s20, %s10501_s20, %s10502_s21  }
  0x27   : > { %s10365_s19 = scalar_lea.hbm %s11990_s13, 4096 }
  0x28   : > { %p10366_p9 = scmp.ne.s32.totalorder %s11990_s13, %s10365_s19  ;;  %p10372_p12 = scmp.lt.u32.totalorder %s10365_s19, %s11990_s13 }
  0x2a   : > { %p10368_p10 = pnand %p10366_p9, %p10644_p7 }
  0x2c   : > { %p10369_p11 = pneg %p10368_p10 }
  0x2e   : > { %p10374_p13 = pnand %p10372_p12, %p10369_p11 }
  0x30   : > { %10377 = shalt.err (!%p10374_p13)
}
  0x31   : > { %s10378_s26 = scalar_lea.vmem %s10624_s28, 4096  ;;  %p10386_p6 = scmp.lt.s32.totalorder %s10624_s28, %s10624_s28 }
  0x32   : > { %p10379_p0 = scmp.ne.s32.totalorder %s10624_s28, %s10378_s26  ;;  %p10387_p8 = scmp.lt.s32.totalorder %s10378_s26, %s10378_s26 }
  0x34   : > { %p10381_p1 = pnand %p10379_p0, %p10644_p7  ;;  %p10388_p9 = por %p10387_p8, %p10386_p6 }
  0x36   : > { %p10382_p4 = pneg %p10381_p1 }
  0x38   : > { %p10389_p10 = pnand %p10388_p9, %p10382_p4 }
  0x3a   : > { %10392 = shalt.err (!%p10389_p10)
}
  0x3b   : > { %9044 = dma.hbm_to_vmem [thread:$0]  (!%p10628_p5), %s11990_s13, 4096, %s10624_s28, [#allocation10], %s10501_s20, %s10501_s20, %s10502_s21  }
  0x3c   : > { %s10393_s22 = scalar_lea.hbm %s11978_s1, 4096 }
  0x3d   : > { %p10394_p11 = scmp.ne.s32.totalorder %s11978_s1, %s10393_s22  ;;  %p10400_p0 = scmp.lt.u32.totalorder %s10393_s22, %s11978_s1 }
  0x3f   : > { %p10396_p12 = pnand %p10394_p11, %p10644_p7 }
  0x41   : > { %p10397_p13 = pneg %p10396_p12 }
  0x43   : > { %p10402_p1 = pnand %p10400_p0, %p10397_p13 }
  0x45   : > { %10405 = shalt.err (!%p10402_p1)
}
  0x46   : > { %s10406_s28 = scalar_lea.vmem %s10632_s0, 4096  ;;  %p10414_p9 = scmp.lt.s32.totalorder %s10632_s0, %s10632_s0 }
  0x47   : > { %p10407_p4 = scmp.ne.s32.totalorder %s10632_s0, %s10406_s28  ;;  %p10415_p10 = scmp.lt.s32.totalorder %s10406_s28, %s10406_s28 }
  0x49   : > { %p10409_p6 = pnand %p10407_p4, %p10644_p7  ;;  %p10416_p11 = por %p10415_p10, %p10414_p9 }
  0x4b   : > { %p10410_p8 = pneg %p10409_p6 }
  0x4d   : > { %p10417_p12 = pnand %p10416_p11, %p10410_p8 }
  0x4f   : > { %10420 = shalt.err (!%p10417_p12)
}
  0x50   : > { %9035 = dma.hbm_to_vmem [thread:$0]  (!%p10628_p5), %s11978_s1, 4096, %s10632_s0, [#allocation5], %s10501_s20, %s10501_s20, %s10502_s21  }
  0x51   : > { %s10421_s23 = scalar_lea.hbm %s11988_s11, 28672 }
  0x52   : > { %p10422_p13 = scmp.ne.s32.totalorder %s11988_s11, %s10421_s23  ;;  %p10428_p4 = scmp.lt.u32.totalorder %s10421_s23, %s11988_s11 }
  0x54   : > { %p10424_p0 = pnand %p10422_p13, %p10644_p7 }
  0x56   : > { %p10425_p1 = pneg %p10424_p0 }
  0x58   : > { %p10430_p6 = pnand %p10428_p4, %p10425_p1 }
  0x5a   : > { %10433 = shalt.err (!%p10430_p6)
}
  0x5b   : > { %s10434_s19 = scalar_lea.vmem %s466_s18, 28672  ;;  %p10442_p11 = scmp.lt.s32.totalorder %s466_s18, %s466_s18 }
  0x5c   : > { %p10435_p8 = scmp.ne.s32.totalorder %s466_s18, %s10434_s19  ;;  %p10443_p12 = scmp.lt.s32.totalorder %s10434_s19, %s10434_s19 }
  0x5e   : > { %p10437_p9 = pnand %p10435_p8, %p10644_p7  ;;  %p10444_p2 = por %p10443_p12, %p10442_p11 }
  0x60   : > { %p10438_p10 = pneg %p10437_p9 }
  0x62   : > { %p10445_p3 = pnand %p10444_p2, %p10438_p10 }
  0x64   : > { %10448 = shalt.err (!%p10445_p3)
}
  0x65   : > { %9041 = dma.hbm_to_vmem [thread:$0]  (!%p10628_p5), %s11988_s11, 28672, %s466_s18, [#allocation7], %s10501_s20, %s10501_s20, %s10502_s21  }
  0x66   : > { %s10503_s26 = smov [#allocation11]   ;;  %s10449_s23 = scalar_lea.hbm %s11991_s14, 4096 }
  0x67   : > { %s494_s10 = sshll.u32 %s10503_s26, 4  ;;  %p10450_p2 = scmp.ne.s32.totalorder %s11991_s14, %s10449_s23  ;;  %s495_s10 = int_to_ptr.vmem [resolvable:$true] %s494_s10 }
  0x68   : > { %p10456_p0 = scmp.lt.u32.totalorder %s10449_s23, %s11991_s14 }
  0x69   : > { %p10452_p3 = pnand %p10450_p2, %p10644_p7 }
  0x6b   : > { %p10453_p13 = pneg %p10452_p3 }
  0x6d   : > { %p10458_p1 = pnand %p10456_p0, %p10453_p13 }
  0x6f   : > { %10461 = shalt.err (!%p10458_p1)
}
  0x70   : > { %s10462_s18 = scalar_lea.vmem %s495_s10, 4096  ;;  %p10470_p9 = scmp.lt.s32.totalorder %s495_s10, %s495_s10 }
  0x71   : > { %p10463_p4 = scmp.ne.s32.totalorder %s495_s10, %s10462_s18  ;;  %p10471_p10 = scmp.lt.s32.totalorder %s10462_s18, %s10462_s18 }
  0x73   : > { %p10465_p6 = pnand %p10463_p4, %p10644_p7  ;;  %p10472_p11 = por %p10471_p10, %p10470_p9 }
  0x75   : > { %p10466_p8 = pneg %p10465_p6 }
  0x77   : > { %p10473_p12 = pnand %p10472_p11, %p10466_p8 }
  0x79   : > { %10476 = shalt.err (!%p10473_p12)
}
  0x7a   : > { %9047 = dma.hbm_to_vmem [thread:$0]  (!%p10628_p5), %s11991_s14, 4096, %s495_s10, [#allocation10], %s10501_s20, %s10501_s20, %s10502_s21  }
  0x7b   : > { %p12005_p2 = scmp.ne.s32.totalorder %s12002_s12, 0 }
  0x7c   : > { %p12006_p7 = scmp.eq.s32.totalorder (!%p12005_p2), %s10611_s24, 0 }
  0x7d   : > { %521 = sbr.rel (%p12005_p2) target bundleno = 3885 (0xf2d), region = 84 }
  0x84   : > { %10482 = dma.done.wait (%p12006_p7), [#allocation5], 4096   ;;  %p12007_p3 = pmov %p12006_p7 }
  0x86   : > { %10484 = vsyncadd (%p12007_p3), [#allocation5], 4294963200  ;;  %p12008_p13 = pmov %p12007_p3 }
  0x87   : > { %p12009_p0 = pmov %p12007_p3 }
  0x88   : > { %10486 = dma.done.wait (%p12008_p13), [#allocation7], 57344  }
  0x89   : > { %10488 = vsyncadd (%p12009_p0), [#allocation7], 4294909952  ;;  %p12010_p1 = pmov %p12009_p0 }
  0x8a   : > { %p12011_p5 = pmov %p12009_p0 }
  0x8b   : > { %10490 = dma.done.wait (%p12010_p1), [#allocation10], 8192  }
  0x8c   : > { %10492 = vsyncadd (%p12011_p5), [#allocation10], 4294959104  ;;  %v10504_v1 = vmov 0.0   ;;  %v9107_v2 = vld [vmem:[#allocation4 + $0x4] ss:$8 sps:$4 sm:$0xff]   ;;  %p587_p4 = scmp.lt.s32.totalorder %s10611_s24, 1 }
  0x8d   : > { %597 = vst [vmem:[#allocation2] sm:$0xff] %v10504_v1  ;;  %598 = vst [vmem:[#allocation2 + $0x8] sm:$0xff] %v10504_v1  ;;  %v9109_v3 = vld [vmem:[#allocation4] ss:$8 sps:$4 sm:$0xff]   ;;  %813 = vmatprep.subr.bf16.mxu0 %v9107_v2  ;;  %v9110_v4 = vld [vmem:[#allocation4 + $0x14] ss:$8 sps:$4 sm:$0xff]  }
  0x8e   : > { %601 = vst [vmem:[#allocation2 + $0x20] sm:$0x3f] %v10504_v1  ;;  %602 = vst [vmem:[#allocation2 + $0x28] sm:$0x3f] %v10504_v1  ;;  %814 = vmatpush1.bf16.msra.mxu0 %v9109_v3  ;;  %v9112_v5 = vld [vmem:[#allocation4 + $0x10] ss:$8 sps:$4 sm:$0xff]  }
  0x8f   : > { %815 = vmatprep.subr.bf16.mxu0 %v9110_v4  ;;  %v9113_v6 = vld [vmem:[#allocation4 + $0x24] ss:$8 sps:$4 sm:$0xff]   ;;  %v9115_v7 = vld [vmem:[#allocation4 + $0x20] ss:$8 sps:$4 sm:$0xff]   ;;  %v9116_v8 = vld [vmem:[#allocation4 + $0x34] ss:$8 sps:$4 sm:$0xff]  }
  0x90   : > { %v9118_v9 = vld [vmem:[#allocation4 + $0x30] ss:$8 sps:$4 sm:$0xff]   ;;  %s12022_s24 = smov (!%p587_p4, %s10611_s24), 1  ;;  %v9119_v10 = vld [vmem:[#allocation4 + $0x44] ss:$8 sps:$4 sm:$0xff]   ;;  %s12012_s20 = sld [smem:[#allocation16_spill]] }
  0x91   : > { %v9121_v11 = vld [vmem:[#allocation4 + $0x40] ss:$8 sps:$4 sm:$0xff]   ;;  %s8867_s12 = sshll.u32 %s12022_s24, 5  ;;  %v9122_v12 = vld [vmem:[#allocation4 + $0x54] ss:$8 sps:$4 sm:$0xff]   ;;  %vm909_vm4 = vcmask 1042432  }
  0x92   : > { %816 = vmatpush1.bf16.msra.mxu0 %v9112_v5  ;;  %v9124_v13 = vld [vmem:[#allocation4 + $0x50] ss:$8 sps:$4 sm:$0xff]   ;;  %v9125_v14 = vld [vmem:[#allocation4 + $0x64] ss:$8 sps:$4 sm:$0xff]   ;;  %v9127_v17 = vld [vmem:[#allocation4 + $0x60] ss:$8 sps:$4 sm:$0xff]  }
  0x93   : > { %817 = vmatprep.subr.bf16.mxu0 %v9113_v6  ;;  %v9155_v19 = vld [vmem:[%s11980_s3 + $0x204] ss:$8 sps:$4 sm:$0xff]   ;;  %v9157_v20 = vld [vmem:[%s11980_s3 + $0x200] ss:$8 sps:$4 sm:$0xff]   ;;  %v9161_v24 = vld [vmem:[%s11980_s3 + $0x214] ss:$8 sps:$4 sm:$0xff]  }
  0x94   : > { %v9128_v21 = vld [vmem:[#allocation4 + $0x74] ss:$8 sps:$4 sm:$0xff]   ;;  %v9130_v22 = vld [vmem:[#allocation4 + $0x70] ss:$8 sps:$4 sm:$0xff]   ;;  %1654 = vmatprep.subr.bf16.mxu1 %v9155_v19  ;;  %v9131_v23 = vld [vmem:[#allocation4 + $0x84] ss:$8 sps:$4 sm:$0xff]  }
  0x95   : > { %1655 = vmatpush1.bf16.msra.mxu1 %v9157_v20  ;;  %v9163_v25 = vld [vmem:[%s11980_s3 + $0x210] ss:$8 sps:$4 sm:$0xff]   ;;  %v9136_v28 = vld [vmem:[#allocation4 + $0x90] ss:$8 sps:$4 sm:$0xff]   ;;  %v9166_v46 = vld [vmem:[%s11980_s3 + $0x114] ss:$8 sps:$4 sm:$0xff]  }
  0x96   : > { %818 = vmatpush1.bf16.msra.mxu0 %v9115_v7  ;;  %s10791_s21 = scalar_lea.vmem %s12012_s20, %s8867_s12  ;;  %1656 = vmatprep.subr.bf16.mxu1 %v9161_v24  ;;  %v9133_v26 = vld [vmem:[#allocation4 + $0x80] ss:$8 sps:$4 sm:$0xff]   ;;  %v9134_v27 = vld [vmem:[#allocation4 + $0x94] ss:$8 sps:$4 sm:$0xff]   ;;  %v9137_v29 = vld [vmem:[#allocation4 + $0xa4] ss:$8 sps:$4 sm:$0xff]  }
  0x97   : > { %819 = vmatprep.subr.bf16.mxu0 %v9116_v8  ;;  %v604_v15 = vld [vmem:[%s10791_s21 + $0x8] sm:$0xff]  ;;  %v606_v16 = vld [vmem:[%s10791_s21 + $0x18] sm:$0xff]  ;;  %v603_v41 = vld [vmem:[%s10791_s21] sm:$0xff]  ;;  %vm1485_vm5 = vcmask 1046528   ;;  %vm1007_vm6 = vsmask.f32 7424 }
  0x98   : > { %v608_v18 = vpack.c.bf16 %v606_v16, %v604_v15  ;;  %v9139_v30 = vld [vmem:[#allocation4 + $0xa0] ss:$8 sps:$4 sm:$0xff]   ;;  %v9140_v31 = vld [vmem:[#allocation4 + $0xb4] ss:$8 sps:$4 sm:$0xff]   ;;  %v9142_v32 = vld [vmem:[#allocation4 + $0xb0] ss:$8 sps:$4 sm:$0xff]  }
  0x99   : > { %1657 = vmatpush1.bf16.msra.mxu1 %v9163_v25  ;;  %v9143_v33 = vld [vmem:[#allocation4 + $0xc4] ss:$8 sps:$4 sm:$0xff]   ;;  %v9145_v34 = vld [vmem:[#allocation4 + $0xc0] ss:$8 sps:$4 sm:$0xff]   ;;  %v9146_v35 = vld [vmem:[#allocation4 + $0xd4] ss:$8 sps:$4 sm:$0xff]  }
  0x9a   : > { %820 = vmatpush1.bf16.msra.mxu0 %v9118_v9  ;;  %845 = vmatprep.mubr.bf16.mxu0 %v608_v18  ;;  %v9148_v36 = vld [vmem:[#allocation4 + $0xd0] ss:$8 sps:$4 sm:$0xff]   ;;  %v9149_v37 = vld [vmem:[#allocation4 + $0xe4] ss:$8 sps:$4 sm:$0xff]   ;;  %v9151_v38 = vld [vmem:[#allocation4 + $0xe0] ss:$8 sps:$4 sm:$0xff]  }
  0x9b   : > { %821 = vmatprep.subr.bf16.mxu0 %v9119_v10  ;;  %v9152_v39 = vld [vmem:[#allocation4 + $0xf4] ss:$8 sps:$4 sm:$0xff]   ;;  %v9154_v40 = vld [vmem:[#allocation4 + $0xf0] ss:$8 sps:$4 sm:$0xff]   ;;  %v9173_v52 = vld [vmem:[%s11980_s3 + $0x234] ss:$8 sps:$4 sm:$0xff]  }
  0x9c   : > { %v605_v42 = vld [vmem:[%s10791_s21 + $0x10] sm:$0xff]  ;;  %v9160_v43 = vld [vmem:[%s11980_s3 + $0x104] ss:$8 sps:$4 sm:$0xff]   ;;  %v9158_v44 = vld [vmem:[%s11980_s3 + $0x100] ss:$8 sps:$4 sm:$0xff]   ;;  %vm2031_vm8 = vcmask 1045504  }
  0x9d   : > { %v607_v45 = vpack.c.bf16 %v605_v42, %v603_v41  ;;  %v9164_v47 = vld [vmem:[%s11980_s3 + $0x110] ss:$8 sps:$4 sm:$0xff]   ;;  %v9167_v48 = vld [vmem:[%s11980_s3 + $0x224] ss:$8 sps:$4 sm:$0xff]   ;;  %v9169_v49 = vld [vmem:[%s11980_s3 + $0x220] ss:$8 sps:$4 sm:$0xff]  }
  0x9e   : > { %822 = vmatpush1.bf16.msra.mxu0 %v9121_v11  ;;  %1658 = vmatprep.subr.bf16.mxu1 %v9167_v48  ;;  %v9172_v50 = vld [vmem:[%s11980_s3 + $0x124] ss:$8 sps:$4 sm:$0xff]   ;;  %v9170_v51 = vld [vmem:[%s11980_s3 + $0x120] ss:$8 sps:$4 sm:$0xff]   ;;  %v9175_v53 = vld [vmem:[%s11980_s3 + $0x230] ss:$8 sps:$4 sm:$0xff]  }
  0x9f   : > { %823 = vmatprep.subr.bf16.mxu0 %v9122_v12  ;;  %1659 = vmatpush1.bf16.msra.mxu1 %v9169_v49  ;;  %v9178_v54 = vld [vmem:[%s11980_s3 + $0x134] ss:$8 sps:$4 sm:$0xff]   ;;  %v9176_v55 = vld [vmem:[%s11980_s3 + $0x130] ss:$8 sps:$4 sm:$0xff]   ;;  %v9179_v56 = vld [vmem:[%s11980_s3 + $0x244] ss:$8 sps:$4 sm:$0xff]  }
  0xa0   : > { %1660 = vmatprep.subr.bf16.mxu1 %v9173_v52  ;;  %v9181_v57 = vld [vmem:[%s11980_s3 + $0x240] ss:$8 sps:$4 sm:$0xff]   ;;  %v9184_v58 = vld [vmem:[%s11980_s3 + $0x144] ss:$8 sps:$4 sm:$0xff]   ;;  %v9185_v60 = vld [vmem:[%s11980_s3 + $0x254] ss:$8 sps:$4 sm:$0xff]  }
  0xa1   : > { %v9182_v59 = vld [vmem:[%s11980_s3 + $0x140] ss:$8 sps:$4 sm:$0xff]   ;;  %v9187_v61 = vld [vmem:[%s11980_s3 + $0x250] ss:$8 sps:$4 sm:$0xff]   ;;  %v9190_v62 = vld [vmem:[%s11980_s3 + $0x154] ss:$8 sps:$4 sm:$0xff]  }
  0xa2   : > { %824 = vmatpush1.bf16.msra.mxu0 %v9124_v13  ;;  %v9188_v63 = vld [vmem:[%s11980_s3 + $0x150] ss:$8 sps:$4 sm:$0xff]   ;;  %v9191_v0 = vld [vmem:[%s11980_s3 + $0x264] ss:$8 sps:$4 sm:$0xff]   ;;  %v9193_v2 = vld [vmem:[%s11980_s3 + $0x260] ss:$8 sps:$4 sm:$0xff]  }
  0xa3   : > { %825 = vmatprep.subr.bf16.mxu0 %v9125_v14  ;;  %1661 = vmatpush1.bf16.msra.mxu1 %v9175_v53  ;;  %v9196_v3 = vld [vmem:[%s11980_s3 + $0x164] ss:$8 sps:$4 sm:$0xff]   ;;  %v9194_v4 = vld [vmem:[%s11980_s3 + $0x160] ss:$8 sps:$4 sm:$0xff]   ;;  %v9197_v5 = vld [vmem:[%s11980_s3 + $0x274] ss:$8 sps:$4 sm:$0xff]  }
  0xa4   : > { %1662 = vmatprep.subr.bf16.mxu1 %v9179_v56  ;;  %v9199_v6 = vld [vmem:[%s11980_s3 + $0x270] ss:$8 sps:$4 sm:$0xff]   ;;  %v9202_v7 = vld [vmem:[%s11980_s3 + $0x174] ss:$8 sps:$4 sm:$0xff]   ;;  %v9203_v9 = vld [vmem:[%s11980_s3 + $0x284] ss:$8 sps:$4 sm:$0xff]  }
  0xa5   : > { %v9200_v8 = vld [vmem:[%s11980_s3 + $0x170] ss:$8 sps:$4 sm:$0xff]   ;;  %v9205_v10 = vld [vmem:[%s11980_s3 + $0x280] ss:$8 sps:$4 sm:$0xff]   ;;  %v9208_v11 = vld [vmem:[%s11980_s3 + $0x184] ss:$8 sps:$4 sm:$0xff]  }
  0xa6   : > { %826 = vmatpush1.bf16.msra.mxu0 %v9127_v17  ;;  %v9206_v12 = vld [vmem:[%s11980_s3 + $0x180] ss:$8 sps:$4 sm:$0xff]   ;;  %v9209_v13 = vld [vmem:[%s11980_s3 + $0x294] ss:$8 sps:$4 sm:$0xff]   ;;  %v9211_v14 = vld [vmem:[%s11980_s3 + $0x290] ss:$8 sps:$4 sm:$0xff]  }
  0xa7   : > { %827 = vmatprep.subr.bf16.mxu0 %v9128_v21  ;;  %1663 = vmatpush1.bf16.msra.mxu1 %v9181_v57  ;;  %v9214_v15 = vld [vmem:[%s11980_s3 + $0x194] ss:$8 sps:$4 sm:$0xff]   ;;  %v9212_v16 = vld [vmem:[%s11980_s3 + $0x190] ss:$8 sps:$4 sm:$0xff]   ;;  %v9215_v17 = vld [vmem:[%s11980_s3 + $0x2a4] ss:$8 sps:$4 sm:$0xff]  }
  0xa8   : > { %1664 = vmatprep.subr.bf16.mxu1 %v9185_v60  ;;  %v9217_v18 = vld [vmem:[%s11980_s3 + $0x2a0] ss:$8 sps:$4 sm:$0xff]   ;;  %v9220_v19 = vld [vmem:[%s11980_s3 + $0x1a4] ss:$8 sps:$4 sm:$0xff]   ;;  %v9221_v21 = vld [vmem:[%s11980_s3 + $0x2b4] ss:$8 sps:$4 sm:$0xff]  }
  0xa9   : > { %v9218_v20 = vld [vmem:[%s11980_s3 + $0x1a0] ss:$8 sps:$4 sm:$0xff]   ;;  %v9224_v24 = vld [vmem:[%s11980_s3 + $0x1b0] ss:$8 sps:$4 sm:$0xff]   ;;  %v9227_v25 = vld [vmem:[%s11980_s3 + $0x2c4] ss:$8 sps:$4 sm:$0xff]  }
  0xaa   : > { %828 = vmatpush1.bf16.msra.mxu0 %v9130_v22  ;;  %v9223_v22 = vld [vmem:[%s11980_s3 + $0x2b0] ss:$8 sps:$4 sm:$0xff]   ;;  %v9253_v41 = vld [vmem:[%s11980_s3 + $0x304] ss:$8 sps:$4 sm:$0xff]   ;;  %vm1742_vm7 = vsmask.f32 6400 }
  0xab   : > { %829 = vmatprep.subr.bf16.mxu0 %v9131_v23  ;;  %1665 = vmatpush1.bf16.msra.mxu1 %v9187_v61  ;;  %v9226_v23 = vld [vmem:[%s11980_s3 + $0x1b4] ss:$8 sps:$4 sm:$0xff]   ;;  %v9256_v42 = vld [vmem:[%s11980_s3 + $0x4] ss:$8 sps:$4 sm:$0xff]   ;;  %vm2288_vm9 = vsmask.f32 5376 }
  0xac   : > { %1666 = vmatprep.subr.bf16.mxu1 %v9191_v0  ;;  %vm2577_vm10 = vcmask 1044480   ;;  %s10505_s22 = smov 16   ;;  %s10506_s25 = smov 32  }
  0xad   : > { %s10507_s30 = smov 64   ;;  %s12013_s28 = sld [smem:[#allocation17_spill]] }
  0xae   : > { %830 = vmatpush1.bf16.msra.mxu0 %v9133_v26  ;;  %v9229_v26 = vld [vmem:[%s11980_s3 + $0x2c0] ss:$8 sps:$4 sm:$0xff]   ;;  %s10508_s26 = smov 127   ;;  %s10509_s10 = smov 1  }
  0xaf   : > { %831 = vmatprep.subr.bf16.mxu0 %v9134_v27  ;;  %1667 = vmatpush1.bf16.msra.mxu1 %v9193_v2  ;;  %v9232_v27 = vld [vmem:[%s11980_s3 + $0x1c4] ss:$8 sps:$4 sm:$0xff]   ;;  %s10510_s15 = smov 126   ;;  %s10511_s16 = smov 2  }
  0xb0   : > { %1668 = vmatprep.subr.bf16.mxu1 %v9197_v5  ;;  %s10512_s23 = smov 124   ;;  %s10515_s17 = smov 8  }
  0xb1   : > { %s12018_s0 = sld [smem:[#allocation18_spill]] }
  0xb2   : > { %832 = vmatpush1.bf16.msra.mxu0 %v9136_v28  ;;  %v9230_v28 = vld [vmem:[%s11980_s3 + $0x1c0] ss:$8 sps:$4 sm:$0xff]  }
  0xb3   : > { %833 = vmatprep.subr.bf16.mxu0 %v9137_v29  ;;  %1669 = vmatpush1.bf16.msra.mxu1 %v9199_v6  ;;  %v9233_v29 = vld [vmem:[%s11980_s3 + $0x2d4] ss:$8 sps:$4 sm:$0xff]  }
  0xb4   : > { %1670 = vmatprep.subr.bf16.mxu1 %v9203_v9 }
  0xb6   : > { %834 = vmatpush1.bf16.msra.mxu0 %v9139_v30  ;;  %v9235_v30 = vld [vmem:[%s11980_s3 + $0x2d0] ss:$8 sps:$4 sm:$0xff]  }
  0xb7   : > { %835 = vmatprep.subr.bf16.mxu0 %v9140_v31  ;;  %1671 = vmatpush1.bf16.msra.mxu1 %v9205_v10  ;;  %v9236_v31 = vld [vmem:[%s11980_s3 + $0x1d0] ss:$8 sps:$4 sm:$0xff]  }
  0xb8   : > { %1672 = vmatprep.subr.bf16.mxu1 %v9209_v13 }
  0xba   : > { %836 = vmatpush1.bf16.msra.mxu0 %v9142_v32  ;;  %v9238_v32 = vld [vmem:[%s11980_s3 + $0x1d4] ss:$8 sps:$4 sm:$0xff]  }
  0xbb   : > { %837 = vmatprep.subr.bf16.mxu0 %v9143_v33  ;;  %1673 = vmatpush1.bf16.msra.mxu1 %v9211_v14  ;;  %v9239_v33 = vld [vmem:[%s11980_s3 + $0x2e4] ss:$8 sps:$4 sm:$0xff]  }
  0xbc   : > { %1674 = vmatprep.subr.bf16.mxu1 %v9215_v17 }
  0xbe   : > { %838 = vmatpush1.bf16.msra.mxu0 %v9145_v34  ;;  %v9241_v34 = vld [vmem:[%s11980_s3 + $0x2e0] ss:$8 sps:$4 sm:$0xff]  }
  0xbf   : > { %839 = vmatprep.subr.bf16.mxu0 %v9146_v35  ;;  %1675 = vmatpush1.bf16.msra.mxu1 %v9217_v18  ;;  %v9242_v35 = vld [vmem:[%s11980_s3 + $0x1e0] ss:$8 sps:$4 sm:$0xff]  }
  0xc0   : > { %1676 = vmatprep.subr.bf16.mxu1 %v9221_v21 }
  0xc2   : > { %840 = vmatpush1.bf16.msra.mxu0 %v9148_v36  ;;  %v9244_v36 = vld [vmem:[%s11980_s3 + $0x1e4] ss:$8 sps:$4 sm:$0xff]  }
  0xc3   : > { %841 = vmatprep.subr.bf16.mxu0 %v9149_v37  ;;  %1677 = vmatpush1.bf16.msra.mxu1 %v9223_v22  ;;  %v9245_v37 = vld [vmem:[%s11980_s3 + $0x2f4] ss:$8 sps:$4 sm:$0xff]  }
  0xc4   : > { %1678 = vmatprep.subr.bf16.mxu1 %v9227_v25 }
  0xc6   : > { %842 = vmatpush1.bf16.msra.mxu0 %v9151_v38  ;;  %v9250_v38 = vld [vmem:[%s11980_s3 + $0x1f4] ss:$8 sps:$4 sm:$0xff]  }
  0xc7   : > { %843 = vmatprep.subr.bf16.mxu0 %v9152_v39  ;;  %1679 = vmatpush1.bf16.msra.mxu1 %v9229_v26  ;;  %v9247_v39 = vld [vmem:[%s11980_s3 + $0x2f0] ss:$8 sps:$4 sm:$0xff]  }
  0xc8   : > { %1680 = vmatprep.subr.bf16.mxu1 %v9233_v29 }
  0xca   : > { %844 = vmatpush1.bf16.msra.mxu0 %v9154_v40  ;;  %v9248_v40 = vld [vmem:[%s11980_s3 + $0x1f0] ss:$8 sps:$4 sm:$0xff]  }
  0xcb   : > { %1194 = vmatprep.subr.bf16.mxu0 %v9160_v43  ;;  %1681 = vmatpush1.bf16.msra.mxu1 %v9235_v30  ;;  %v643_v43 = vlaneseq }
  0xcc   : > { %1682 = vmatprep.subr.bf16.mxu1 %v9239_v33 }
  0xcd   : > { %846 = vmatmul.mubr.bf16.vlgmr.msra.gmra.mrb[0].mxu0 %v607_v45 }
  0xce   : > { %1195 = vmatpush1.bf16.msra.mxu0 %v9158_v44  ;;  %v10996_v44 = vshrl.u32 %v643_v43, 7 }
  0xcf   : > { %1196 = vmatprep.subr.bf16.mxu0 %v9166_v46  ;;  %1683 = vmatpush1.bf16.msra.mxu1 %v9241_v34  ;;  %v641_v46 = vld [vmem:[%s11979_s2] sm:$0x3] }
  0xd0   : > { %1684 = vmatprep.subr.bf16.mxu1 %v9245_v37  ;;  %v10999_v45 = vsub.s32 0, %v10996_v44 }
  0xd2   : > { %1197 = vmatpush1.bf16.msra.mxu0 %v9164_v47  ;;  %v11005_v47 = vsub.s32 1, %v10996_v44  ;;  %v646_v48 = vrot.slane %v641_v46, %v10999_v45 }
  0xd3   : > { %1198 = vmatprep.subr.bf16.mxu0 %v9172_v50  ;;  %1685 = vmatpush1.bf16.msra.mxu1 %v9247_v39 }
  0xd4   : > { %1939 = vmatprep.subr.bf16.mxu1 %v9253_v41  ;;  %v650_v49 = vrot.slane %v641_v46, %v11005_v47 }
  0xd6   : > { %1199 = vmatpush1.bf16.msra.mxu0 %v9170_v51 }
  0xd7   : > { %1200 = vmatprep.subr.bf16.mxu0 %v9178_v54 }
  0xda   : > { %1201 = vmatpush1.bf16.msra.mxu0 %v9176_v55 }
  0xdb   : > { %1202 = vmatprep.subr.bf16.mxu0 %v9184_v58 }
  0xde   : > { %1203 = vmatpush1.bf16.msra.mxu0 %v9182_v59 }
  0xdf   : > { %1204 = vmatprep.subr.bf16.mxu0 %v9190_v62 }
  0xe2   : > { %1205 = vmatpush1.bf16.msra.mxu0 %v9188_v63 }
  0xe3   : > { %1206 = vmatprep.subr.bf16.mxu0 %v9196_v3 }
  0xe6   : > { %1207 = vmatpush1.bf16.msra.mxu0 %v9194_v4 }
  0xe7   : > { %1208 = vmatprep.subr.bf16.mxu0 %v9202_v7 }
  0xea   : > { %1209 = vmatpush1.bf16.msra.mxu0 %v9200_v8 }
  0xeb   : > { %1210 = vmatprep.subr.bf16.mxu0 %v9208_v11 }
  0xee   : > { %1211 = vmatpush1.bf16.msra.mxu0 %v9206_v12 }
  0xef   : > { %1212 = vmatprep.subr.bf16.mxu0 %v9214_v15 }
  0xf2   : > { %1213 = vmatpush1.bf16.msra.mxu0 %v9212_v16 }
  0xf3   : > { %1214 = vmatprep.subr.bf16.mxu0 %v9220_v19 }
  0xf6   : > { %1215 = vmatpush1.bf16.msra.mxu0 %v9218_v20 }
  0xf7   : > { %1216 = vmatprep.subr.bf16.mxu0 %v9226_v23 }
  0xfa   : > { %1217 = vmatpush1.bf16.msra.mxu0 %v9224_v24 }
  0xfb   : > { %1218 = vmatprep.subr.bf16.mxu0 %v9232_v27 }
  0xfe   : > { %1219 = vmatpush1.bf16.msra.mxu0 %v9230_v28 }
  0xff   : > { %1220 = vmatprep.subr.bf16.mxu0 %v9238_v32 }
 0x102   : > { %1221 = vmatpush1.bf16.msra.mxu0 %v9236_v31 }
 0x103   : > { %1222 = vmatprep.subr.bf16.mxu0 %v9244_v36 }
 0x106   : > { %1223 = vmatpush1.bf16.msra.mxu0 %v9242_v35 }
 0x107   : > { %1224 = vmatprep.subr.bf16.mxu0 %v9250_v38 }
 0x10a   : > { %1225 = vmatpush1.bf16.msra.mxu0 %v9248_v40 }
 0x10b   : > { %1397 = vmatprep.subr.bf16.mxu0 %v9256_v42 }
 0x1a0   : > { %v847_v50 = vpop.f32.mrb[0].mxu0 }
 0x1a1   : > { %v848_v51 = vadd.f32 %v847_v50, %v646_v48  ;;  %v849_v52 = vpop.f32.mrb[1].mxu0 }
 0x1a2   : > { %v850_v53 = vadd.f32 %v849_v52, %v650_v49  ;;  %v851_v54 = vpop.f32.mrb[2].mxu0 }
 0x1a3   : > { %v856_v55 = vmin.f32 %v848_v51, 20.0  ;;  %v852_v56 = vadd.f32 %v851_v54, %v646_v48  ;;  %v853_v57 = vpop.f32.mrb[3].mxu0  ;;  %vm896_vm0 = vcmp.gt.f32.partialorder %v848_v51, 20.0 }
 0x1a4   : > { %v857_v58 = vmin.f32 %v850_v53, 20.0  ;;  %v854_v59 = vadd.f32 %v853_v57, %v650_v49  ;;  %vm897_vm1 = vcmp.gt.f32.partialorder %v850_v53, 20.0 }
 0x1a5   : > { %v860_v60 = vmul.f32 1.442695, %v856_v55  ;;  %v858_v61 = vmin.f32 %v852_v56, 20.0  ;;  %vm898_vm2 = vcmp.gt.f32.partialorder %v852_v56, 20.0 }
 0x1a6   : > { %v862_v62 = vmul.f32 1.442695, %v857_v58  ;;  %v859_v63 = vmin.f32 %v854_v59, 20.0  ;;  %vm899_vm3 = vcmp.gt.f32.partialorder %v854_v59, 20.0 }
 0x1a7   : > { %10260 = vpow2.f32 %v860_v60  ;;  %v864_v0 = vmul.f32 1.442695, %v858_v61 }
 0x1a8   : > { %10262 = vpow2.f32 %v862_v62  ;;  %v866_v2 = vmul.f32 1.442695, %v859_v63 }
 0x1a9   : > { %10264 = vpow2.f32 %v864_v0 }
 0x1aa   : > { %10266 = vpow2.f32 %v866_v2 }
 0x1b1   : > { %v10261_v3 = vpop.eup %10260 }
 0x1b2   : > { %v10263_v4 = vpop.eup %10262  ;;  %v868_v5 = vadd.f32 1.0, %v10261_v3 }
 0x1b3   : > { %v10265_v6 = vpop.eup %10264  ;;  %v869_v7 = vadd.f32 1.0, %v10263_v4 }
 0x1b4   : > { %v10267_v8 = vpop.eup %10266  ;;  %v872_v9 = vmul.f32 %v868_v5, %v868_v5  ;;  %v870_v10 = vadd.f32 1.0, %v10265_v6 }
 0x1b5   : > { %v873_v11 = vmul.f32 %v869_v7, %v869_v7  ;;  %v871_v12 = vadd.f32 1.0, %v10267_v8 }
 0x1b6   : > { %v884_v13 = vadd.f32 1.0, %v872_v9  ;;  %v874_v14 = vmul.f32 %v870_v10, %v870_v10  ;;  %v7920_v19 = vadd.f32 -1.0, %v872_v9 }
 0x1b7   : > { %v885_v15 = vadd.f32 1.0, %v873_v11  ;;  %v875_v16 = vmul.f32 %v871_v12, %v871_v12  ;;  %v7921_v20 = vadd.f32 -1.0, %v873_v11 }
 0x1b8   : > { %10268 = vrcp.f32 %v884_v13  ;;  %v886_v17 = vadd.f32 1.0, %v874_v14  ;;  %v7922_v21 = vadd.f32 -1.0, %v874_v14  ;;  %v880_v23 = vmul.f32 %v7920_v19, %v848_v51 }
 0x1b9   : > { %10270 = vrcp.f32 %v885_v15  ;;  %v887_v18 = vadd.f32 1.0, %v875_v16  ;;  %v7923_v22 = vadd.f32 -1.0, %v875_v16  ;;  %v881_v25 = vmul.f32 %v7921_v20, %v850_v53 }
 0x1ba   : > { %10272 = vrcp.f32 %v886_v17  ;;  %v882_v28 = vmul.f32 %v7922_v21, %v852_v56  ;;  %v9251_v17 = vld [vmem:[%s11980_s3 + $0x300] ss:$8 sps:$4 sm:$0xff]  }
 0x1bb   : > { %10274 = vrcp.f32 %v887_v18  ;;  %v883_v31 = vmul.f32 %v7923_v22, %v854_v59 }
 0x1c2   : > { %v10269_v24 = vpop.eup %10268 }
 0x1c3   : > { %v10271_v26 = vpop.eup %10270  ;;  %v892_v27 = vmul.f32 %v10269_v24, %v880_v23  ;;  %v9259_v24 = vld [vmem:[%s11980_s3 + $0x314] ss:$8 sps:$4 sm:$0xff]  }
 0x1c4   : > { %v10273_v29 = vpop.eup %10272  ;;  %v893_v30 = vmul.f32 %v10271_v26, %v881_v25 }
 0x1c5   : > { %v10275_v32 = vpop.eup %10274  ;;  %v11009_v33 = vsel %vm896_vm0, %v848_v51, %v892_v27  ;;  %v894_v34 = vmul.f32 %v10273_v29, %v882_v28 }
 0x1c6   : > { %v910_v35 = vrot.slane %v11009_v33, 5  ;;  %v11012_v36 = vsel %vm897_vm1, %v850_v53, %v893_v30  ;;  %v895_v37 = vmul.f32 %v10275_v32, %v883_v31  ;;  %vm4998_vm1 = vcmask 1043456  }
 0x1c7   : > { %v911_v38 = vrot.slane %v11012_v36, 5  ;;  %v11015_v39 = vsel %vm898_vm2, %v852_v56, %v894_v34  ;;  %v9254_v34 = vld [vmem:[%s11980_s3] ss:$8 sps:$4 sm:$0xff]  }
 0x1c8   : > { %922 = vst [vmem:[#allocation2] sm:$0xf8] %v910_v35  ;;  %v912_v40 = vrot.slane %v11015_v39, 5  ;;  %v11018_v41 = vsel %vm899_vm3, %v854_v59, %v895_v37  ;;  %vm4867_vm3 = vcmp.eq.s32.totalorder %v10996_v44, 0  ;;  %v9836_v44 = vld [vmem:[#allocation11 + $0x30] ss:$8 sps:$4 sm:$0xff]  }
 0x1c9   : > { %923 = vst [vmem:[#allocation2 + $0x8] sm:$0xf8] %v911_v38  ;;  %v914_v42 = vrot.slane %v11018_v41, 5 }
 0x1ca   : > { %926 = vst [vmem:[#allocation2 + $0x20] sm:$0x7] %v912_v40  ;;  %v11022_v46 = vsel %vm909_vm4, %v910_v35, %v912_v40  ;;  %v9257_v40 = vld [vmem:[%s11980_s3 + $0x310] ss:$8 sps:$4 sm:$0xff]  }
 0x1cb   : > { %927 = vst [vmem:[#allocation2 + $0x28] sm:$0x7] %v914_v42  ;;  %v11025_v50 = vsel %vm909_vm4, %v911_v38, %v914_v42 }
 0x1cf   : > { %v1440_v48 = vld [vmem:[#allocation2] sm:$0xfc] }
 0x1d0   : > { %v966_v49 = vld [vmem:[#allocation2] sm:$0xfe]  ;;  %v1441_v51 = vld [vmem:[#allocation2 + $0x8] sm:$0xfc]  ;;  %v1444_v52 = vpack.c.bf16 %v11022_v46, %v1440_v48 }
 0x1d1   : > { %v967_v53 = vld [vmem:[#allocation2 + $0x8] sm:$0xfe]  ;;  %v970_v55 = vpack.c.bf16 %v11022_v46, %v966_v49  ;;  %v1445_v56 = vpack.c.bf16 %v11025_v50, %v1441_v51  ;;  %v1442_v57 = vld [vmem:[#allocation2 + $0x20] sm:$0x3]  ;;  %v9262_v51 = vld [vmem:[%s11980_s3 + $0x14] ss:$8 sps:$4 sm:$0xff]  }
 0x1d2   : > { %v1702_v54 = vld [vmem:[#allocation2 + $0x8] sm:$0xf8]  ;;  %v971_v58 = vpack.c.bf16 %v11025_v50, %v967_v53  ;;  %v968_v60 = vld [vmem:[#allocation2 + $0x20] sm:$0x1]  ;;  %v1443_v61 = vld [vmem:[#allocation2 + $0x28] sm:$0x3]  ;;  %v1446_v62 = vpack.c.bf16 %v1442_v57, %v1442_v57 }
 0x1d3   : > { %v1706_v59 = vpack.c.bf16 %v11025_v50, %v1702_v54  ;;  %v1486_v63 = vrot.slane %v1444_v52, 1  ;;  %v969_v0 = vld [vmem:[#allocation2 + $0x28] sm:$0x1]  ;;  %v972_v2 = vpack.c.bf16 %v968_v60, %v968_v60  ;;  %v1009_v3 = vshrl.u32 %v970_v55, 16  ;;  %v9265_v52 = vld [vmem:[%s11980_s3 + $0x324] ss:$8 sps:$4 sm:$0xff]  }
 0x1d4   : > { %v1447_v4 = vpack.c.bf16 %v1443_v61, %v1443_v61  ;;  %v1489_v5 = vrot.slane %v1445_v56, 1  ;;  %v973_v6 = vpack.c.bf16 %v969_v0, %v969_v0  ;;  %v1021_v7 = vshrl.u32 %v971_v58, 16  ;;  %v1704_v8 = vld [vmem:[#allocation2 + $0x28] sm:$0x7]  ;;  %v9268_v57 = vld [vmem:[%s11980_s3 + $0x24] ss:$8 sps:$4 sm:$0xff]  }
 0x1d5   : > { %v1487_v9 = vrot.slane %v1446_v62, 1  ;;  %v1023_v10 = vshll.u32 %v971_v58, 16  ;;  %v1708_v11 = vpack.c.bf16 %v1704_v8, %v1704_v8  ;;  %v1761_v12 = vshrl.u32 %v1706_v59, 16  ;;  %v929_v38 = vld [vmem:[#allocation2 + $0x8] sm:$0xff]  ;;  %v9271_v58 = vld [vmem:[%s11980_s3 + $0x334] ss:$8 sps:$4 sm:$0xff]  }
 0x1d6   : > { %v1490_v13 = vrot.slane %v1447_v4, 1  ;;  %v1028_v14 = vshll.u32 %v973_v6, 16  ;;  %v1764_v15 = vshll.u32 %v1706_v59, 16  ;;  %v1011_v16 = vshll.u32 %v970_v55, 16  ;;  %v9260_v55 = vld [vmem:[%s11980_s3 + $0x10] ss:$8 sps:$4 sm:$0xff]  }
 0x1d7   : > { %v1488_v18 = vsel %vm1485_vm5, %v1486_v63, %v1487_v9  ;;  %v1025_v19 = vrot.slane %v1023_v10, 1  ;;  %v1763_v20 = vrot.slane %v1761_v12, 1  ;;  %v1769_v21 = vshrl.u32 %v1708_v11, 16  ;;  %v9263_v56 = vld [vmem:[%s11980_s3 + $0x320] ss:$8 sps:$4 sm:$0xff]  }
 0x1d8   : > { %v1491_v22 = vsel %vm1485_vm5, %v1489_v5, %v1490_v13  ;;  %v1030_v23 = vrot.slane %v1028_v14, 1  ;;  %v1766_v25 = vrot.slane %v1764_v15, 2  ;;  %v1772_v26 = vshll.u32 %v1708_v11, 16  ;;  %v9266_v59 = vld [vmem:[%s11980_s3 + $0x20] ss:$8 sps:$4 sm:$0xff]  }
 0x1d9   : > { %1686 = vmatprep.mubr.bf16.mxu1 %v1491_v22  ;;  %v1026_v27 = vor.u32 %v1025_v19, %v1021_v7  ;;  %v1771_v28 = vrot.slane %v1769_v21, 1  ;;  %v1013_v29 = vrot.slane %v1011_v16, 1  ;;  %v1016_v30 = vshll.u32 %v972_v2, 16  ;;  %v9269_v60 = vld [vmem:[%s11980_s3 + $0x330] ss:$8 sps:$4 sm:$0xff]  }
 0x1da   : > { %1687 = vmatmul.mubr.bf16.vlgmr.msra.gmra.mrb[0].mxu1 %v1488_v18  ;;  %v1774_v31 = vrot.slane %v1772_v26, 2  ;;  %v1767_v42 = vor.u32 %v1766_v25, %v1763_v20  ;;  %v933_v54 = vpack.c.bf16 %v11025_v50, %v929_v38  ;;  %v9274_v61 = vld [vmem:[%s11980_s3 + $0x34] ss:$8 sps:$4 sm:$0xff]   ;;  %v9277_v62 = vld [vmem:[%s11980_s3 + $0x344] ss:$8 sps:$4 sm:$0xff]  }
 0x1db   : > { %1940 = vmatpush1.bf16.msra.mxu1 %v9251_v17  ;;  %v1031_v32 = vsel %vm1007_vm6, %v1026_v27, %v1030_v23  ;;  %v1014_v35 = vor.u32 %v1013_v29, %v1009_v3  ;;  %v1018_v37 = vrot.slane %v1016_v30, 1  ;;  %v9272_v63 = vld [vmem:[%s11980_s3 + $0x30] ss:$8 sps:$4 sm:$0xff]   ;;  %v9275_v0 = vld [vmem:[%s11980_s3 + $0x340] ss:$8 sps:$4 sm:$0xff]  }
 0x1dc   : > { %1226 = vmatprep.mubr.bf16.mxu0 %v1031_v32  ;;  %1941 = vmatprep.subr.bf16.mxu1 %v9259_v24  ;;  %v1775_v48 = vor.u32 %v1774_v31, %v1771_v28  ;;  %v9280_v2 = vld [vmem:[%s11980_s3 + $0x44] ss:$8 sps:$4 sm:$0xff]   ;;  %v9283_v3 = vld [vmem:[%s11980_s3 + $0x354] ss:$8 sps:$4 sm:$0xff]   ;;  %v9278_v4 = vld [vmem:[%s11980_s3 + $0x40] ss:$8 sps:$4 sm:$0xff]  }
 0x1dd   : > { %v1019_v49 = vsel %vm1007_vm6, %v1014_v35, %v1018_v37  ;;  %v9281_v5 = vld [vmem:[%s11980_s3 + $0x350] ss:$8 sps:$4 sm:$0xff]   ;;  %v9286_v6 = vld [vmem:[%s11980_s3 + $0x54] ss:$8 sps:$4 sm:$0xff]   ;;  %v9289_v7 = vld [vmem:[%s11980_s3 + $0x364] ss:$8 sps:$4 sm:$0xff]  }
 0x1de   : > { %v1776_v53 = vsel %vm1742_vm7, %v1767_v42, %v1775_v48  ;;  %1227 = vmatmul.mubr.bf16.vlgmr.msra.gmra.mrb[4].mxu0 %v1019_v49  ;;  %v9284_v8 = vld [vmem:[%s11980_s3 + $0x50] ss:$8 sps:$4 sm:$0xff]   ;;  %v9287_v9 = vld [vmem:[%s11980_s3 + $0x360] ss:$8 sps:$4 sm:$0xff]   ;;  %v9292_v10 = vld [vmem:[%s11980_s3 + $0x64] ss:$8 sps:$4 sm:$0xff]  }
 0x1df   : > { %1971 = vmatprep.mubr.bf16.mxu1 %v1776_v53  ;;  %1398 = vmatpush1.bf16.msra.mxu0 %v9254_v34  ;;  %v9295_v11 = vld [vmem:[%s11980_s3 + $0x374] ss:$8 sps:$4 sm:$0xff]   ;;  %v9290_v12 = vld [vmem:[%s11980_s3 + $0x60] ss:$8 sps:$4 sm:$0xff]   ;;  %v9293_v13 = vld [vmem:[%s11980_s3 + $0x370] ss:$8 sps:$4 sm:$0xff]  }
 0x1e0   : > { %1942 = vmatpush1.bf16.msra.mxu1 %v9257_v40  ;;  %1429 = vmatprep.mubr.bf16.mxu0 %v933_v54  ;;  %v9298_v14 = vld [vmem:[%s11980_s3 + $0x74] ss:$8 sps:$4 sm:$0xff]   ;;  %v9301_v15 = vld [vmem:[%s11980_s3 + $0x384] ss:$8 sps:$4 sm:$0xff]   ;;  %v9296_v16 = vld [vmem:[%s11980_s3 + $0x70] ss:$8 sps:$4 sm:$0xff]  }
 0x1e1   : > { %1399 = vmatprep.subr.bf16.mxu0 %v9262_v51  ;;  %1943 = vmatprep.subr.bf16.mxu1 %v9265_v52  ;;  %v9299_v17 = vld [vmem:[%s11980_s3 + $0x380] ss:$8 sps:$4 sm:$0xff]   ;;  %v9304_v18 = vld [vmem:[%s11980_s3 + $0x84] ss:$8 sps:$4 sm:$0xff]   ;;  %v9307_v19 = vld [vmem:[%s11980_s3 + $0x394] ss:$8 sps:$4 sm:$0xff]  }
 0x1e2   : > { %v9302_v20 = vld [vmem:[%s11980_s3 + $0x80] ss:$8 sps:$4 sm:$0xff]   ;;  %v9305_v21 = vld [vmem:[%s11980_s3 + $0x390] ss:$8 sps:$4 sm:$0xff]   ;;  %v9310_v22 = vld [vmem:[%s11980_s3 + $0x94] ss:$8 sps:$4 sm:$0xff]  }
 0x1e3   : > { %1400 = vmatpush1.bf16.msra.mxu0 %v9260_v55  ;;  %v9313_v23 = vld [vmem:[%s11980_s3 + $0x3a4] ss:$8 sps:$4 sm:$0xff]   ;;  %v9308_v24 = vld [vmem:[%s11980_s3 + $0x90] ss:$8 sps:$4 sm:$0xff]   ;;  %v9311_v25 = vld [vmem:[%s11980_s3 + $0x3a0] ss:$8 sps:$4 sm:$0xff]  }
 0x1e4   : > { %1944 = vmatpush1.bf16.msra.mxu1 %v9263_v56  ;;  %1401 = vmatprep.subr.bf16.mxu0 %v9268_v57  ;;  %v9316_v26 = vld [vmem:[%s11980_s3 + $0xa4] ss:$8 sps:$4 sm:$0xff]   ;;  %v9319_v27 = vld [vmem:[%s11980_s3 + $0x3b4] ss:$8 sps:$4 sm:$0xff]   ;;  %v9314_v28 = vld [vmem:[%s11980_s3 + $0xa0] ss:$8 sps:$4 sm:$0xff]  }
 0x1e5   : > { %1945 = vmatprep.subr.bf16.mxu1 %v9271_v58  ;;  %v9317_v29 = vld [vmem:[%s11980_s3 + $0x3b0] ss:$8 sps:$4 sm:$0xff]   ;;  %v9322_v30 = vld [vmem:[%s11980_s3 + $0xb4] ss:$8 sps:$4 sm:$0xff]   ;;  %v9325_v31 = vld [vmem:[%s11980_s3 + $0x3c4] ss:$8 sps:$4 sm:$0xff]  }
 0x1e6   : > { %v9320_v32 = vld [vmem:[%s11980_s3 + $0xb0] ss:$8 sps:$4 sm:$0xff]   ;;  %v1703_v34 = vld [vmem:[#allocation2 + $0x20] sm:$0x7]  ;;  %v9328_v37 = vld [vmem:[%s11980_s3 + $0xc4] ss:$8 sps:$4 sm:$0xff]  }
 0x1e7   : > { %1402 = vmatpush1.bf16.msra.mxu0 %v9266_v59  ;;  %v9323_v35 = vld [vmem:[%s11980_s3 + $0x3c0] ss:$8 sps:$4 sm:$0xff]   ;;  %v9331_v38 = vld [vmem:[%s11980_s3 + $0x3d4] ss:$8 sps:$4 sm:$0xff]   ;;  %v1707_v42 = vpack.c.bf16 %v1703_v34, %v1703_v34  ;;  %v9329_v49 = vld [vmem:[%s11980_s3 + $0x3d0] ss:$8 sps:$4 sm:$0xff]  }
 0x1e8   : > { %1946 = vmatpush1.bf16.msra.mxu1 %v9269_v60  ;;  %1403 = vmatprep.subr.bf16.mxu0 %v9274_v61  ;;  %v1701_v40 = vld [vmem:[#allocation2] sm:$0xf8]  ;;  %v9334_v51 = vld [vmem:[%s11980_s3 + $0xd4] ss:$8 sps:$4 sm:$0xff]   ;;  %v9332_v56 = vld [vmem:[%s11980_s3 + $0xd0] ss:$8 sps:$4 sm:$0xff]  }
 0x1e9   : > { %1947 = vmatprep.subr.bf16.mxu1 %v9277_v62  ;;  %v9326_v48 = vld [vmem:[%s11980_s3 + $0xc0] ss:$8 sps:$4 sm:$0xff]   ;;  %v1705_v52 = vpack.c.bf16 %v11022_v46, %v1701_v40  ;;  %v9337_v53 = vld [vmem:[%s11980_s3 + $0x3e4] ss:$8 sps:$4 sm:$0xff]   ;;  %v1752_v54 = vshrl.u32 %v1707_v42, 16  ;;  %v1755_v55 = vshll.u32 %v1707_v42, 16 }
 0x1ea   : > { %v9335_v57 = vld [vmem:[%s11980_s3 + $0x3e0] ss:$8 sps:$4 sm:$0xff]   ;;  %v9340_v58 = vld [vmem:[%s11980_s3 + $0xe4] ss:$8 sps:$4 sm:$0xff]   ;;  %v9343_v62 = vld [vmem:[%s11980_s3 + $0x3f4] ss:$8 sps:$4 sm:$0xff]  }
 0x1eb   : > { %1404 = vmatpush1.bf16.msra.mxu0 %v9272_v63  ;;  %v1744_v59 = vshrl.u32 %v1705_v52, 16  ;;  %v1747_v60 = vshll.u32 %v1705_v52, 16  ;;  %v1989_v61 = vld [vmem:[#allocation2 + $0x28] sm:$0xf]  ;;  %v1754_v63 = vrot.slane %v1752_v54, 1 }
 0x1ec   : > { %1948 = vmatpush1.bf16.msra.mxu1 %v9275_v0  ;;  %1405 = vmatprep.subr.bf16.mxu0 %v9280_v2  ;;  %v1757_v0 = vrot.slane %v1755_v55, 2  ;;  %v1987_v2 = vld [vmem:[#allocation2 + $0x8] sm:$0xf0]  ;;  %v9370_v34 = vld [vmem:[%s11980_s3 + $0x474] ss:$8 sps:$4 sm:$0xff]  }
 0x1ed   : > { %1949 = vmatprep.subr.bf16.mxu1 %v9283_v3  ;;  %v9338_v3 = vld [vmem:[%s11980_s3 + $0xe0] ss:$8 sps:$4 sm:$0xff]   ;;  %v9376_v40 = vld [vmem:[%s11980_s3 + $0x494] ss:$8 sps:$4 sm:$0xff]   ;;  %v9374_v42 = vld [vmem:[%s11980_s3 + $0x490] ss:$8 sps:$4 sm:$0xff]  }
 0x1ee   : > { %v9380_v52 = vld [vmem:[%s11980_s3 + $0x4b0] ss:$8 sps:$4 sm:$0xff]   ;;  %v9383_v54 = vld [vmem:[%s11980_s3 + $0x4c0] ss:$8 sps:$4 sm:$0xff]  }
 0x1ef   : > { %1406 = vmatpush1.bf16.msra.mxu0 %v9278_v4  ;;  %v1993_v4 = vpack.c.bf16 %v1989_v61, %v1989_v61  ;;  %v2250_v55 = vld [vmem:[#allocation2 + $0x28] sm:$0x1f] }
 0x1f0   : > { %1950 = vmatpush1.bf16.msra.mxu1 %v9281_v5  ;;  %1407 = vmatprep.subr.bf16.mxu0 %v9286_v6  ;;  %v9341_v5 = vld [vmem:[%s11980_s3 + $0x3f0] ss:$8 sps:$4 sm:$0xff]   ;;  %v9346_v6 = vld [vmem:[%s11980_s3 + $0xf4] ss:$8 sps:$4 sm:$0xff]  }
 0x1f1   : > { %1951 = vmatprep.subr.bf16.mxu1 %v9289_v7  ;;  %v1746_v7 = vrot.slane %v1744_v59, 1  ;;  %v9386_v59 = vld [vmem:[%s11980_s3 + $0x4d0] ss:$8 sps:$4 sm:$0xff]  }
 0x1f3   : > { %1408 = vmatpush1.bf16.msra.mxu0 %v9284_v8  ;;  %v1749_v8 = vrot.slane %v1747_v60, 2  ;;  %v9391_v60 = vld [vmem:[%s11980_s3 + $0x4e4] ss:$8 sps:$4 sm:$0xff]  }
 0x1f4   : > { %1952 = vmatpush1.bf16.msra.mxu1 %v9287_v9  ;;  %1409 = vmatprep.subr.bf16.mxu0 %v9292_v10  ;;  %v9349_v9 = vld [vmem:[%s11980_s3 + $0x404] ss:$8 sps:$4 sm:$0xff]   ;;  %v1991_v10 = vpack.c.bf16 %v11025_v50, %v1987_v2  ;;  %v9389_v2 = vld [vmem:[%s11980_s3 + $0x4e0] ss:$8 sps:$4 sm:$0xff]  }
 0x1f5   : > { %1953 = vmatprep.subr.bf16.mxu1 %v9295_v11  ;;  %v1758_v11 = vor.u32 %v1757_v0, %v1754_v63 }
 0x1f7   : > { %1410 = vmatpush1.bf16.msra.mxu0 %v9290_v12  ;;  %v9344_v12 = vld [vmem:[%s11980_s3 + $0xf0] ss:$8 sps:$4 sm:$0xff]  }
 0x1f8   : > { %1954 = vmatpush1.bf16.msra.mxu1 %v9293_v13  ;;  %1411 = vmatprep.subr.bf16.mxu0 %v9298_v14  ;;  %v2036_v13 = vrot.slane %v1993_v4, 2  ;;  %v1750_v14 = vor.u32 %v1749_v8, %v1746_v7  ;;  %v1986_v4 = vld [vmem:[#allocation2] sm:$0xf0] }
 0x1f9   : > { %1955 = vmatprep.subr.bf16.mxu1 %v9301_v15  ;;  %v9347_v15 = vld [vmem:[%s11980_s3 + $0x400] ss:$8 sps:$4 sm:$0xff]  }
 0x1fb   : > { %1412 = vmatpush1.bf16.msra.mxu0 %v9296_v16  ;;  %v2035_v16 = vrot.slane %v1991_v10, 2  ;;  %v9392_v10 = vld [vmem:[%s11980_s3 + $0x4f0] ss:$8 sps:$4 sm:$0xff]  }
 0x1fc   : > { %1956 = vmatpush1.bf16.msra.mxu1 %v9299_v17  ;;  %1413 = vmatprep.subr.bf16.mxu0 %v9304_v18  ;;  %v928_v17 = vld [vmem:[#allocation2] sm:$0xff]  ;;  %v9352_v18 = vld [vmem:[%s11980_s3 + $0x414] ss:$8 sps:$4 sm:$0xff]  }
 0x1fd   : > { %1957 = vmatprep.subr.bf16.mxu1 %v9307_v19  ;;  %v1759_v19 = vsel %vm1742_vm7, %v1750_v14, %v1758_v11  ;;  %v1990_v11 = vpack.c.bf16 %v11022_v46, %v1986_v4  ;;  %v9437_v4 = vld [vmem:[%s11980_s3 + $0x5e0] ss:$8 sps:$4 sm:$0xff]  }
 0x1ff   : > { %1414 = vmatpush1.bf16.msra.mxu0 %v9302_v20  ;;  %v2037_v20 = vsel %vm2031_vm8, %v2035_v16, %v2036_v13 }
 0x200   : > { %1958 = vmatpush1.bf16.msra.mxu1 %v9305_v21  ;;  %1415 = vmatprep.subr.bf16.mxu0 %v9310_v22  ;;  %v932_v21 = vpack.c.bf16 %v11022_v46, %v928_v17  ;;  %v9350_v22 = vld [vmem:[%s11980_s3 + $0x410] ss:$8 sps:$4 sm:$0xff]   ;;  %v2032_v17 = vrot.slane %v1990_v11, 2  ;;  %v2533_v11 = vld [vmem:[#allocation2 + $0x8] sm:$0xc0] }
 0x201   : > { %1959 = vmatprep.subr.bf16.mxu1 %v9313_v23  ;;  %v9355_v23 = vld [vmem:[%s11980_s3 + $0x424] ss:$8 sps:$4 sm:$0xff]  }
 0x203   : > { %1416 = vmatpush1.bf16.msra.mxu0 %v9308_v24  ;;  %v9353_v24 = vld [vmem:[%s11980_s3 + $0x420] ss:$8 sps:$4 sm:$0xff]  }
 0x204   : > { %1960 = vmatpush1.bf16.msra.mxu1 %v9311_v25  ;;  %1417 = vmatprep.subr.bf16.mxu0 %v9316_v26  ;;  %v9358_v25 = vld [vmem:[%s11980_s3 + $0x434] ss:$8 sps:$4 sm:$0xff]   ;;  %v9356_v26 = vld [vmem:[%s11980_s3 + $0x430] ss:$8 sps:$4 sm:$0xff]  }
 0x205   : > { %1961 = vmatprep.subr.bf16.mxu1 %v9319_v27  ;;  %v9361_v27 = vld [vmem:[%s11980_s3 + $0x444] ss:$8 sps:$4 sm:$0xff]  }
 0x207   : > { %1418 = vmatpush1.bf16.msra.mxu0 %v9314_v28  ;;  %v9359_v28 = vld [vmem:[%s11980_s3 + $0x440] ss:$8 sps:$4 sm:$0xff]  }
 0x208   : > { %1962 = vmatpush1.bf16.msra.mxu1 %v9317_v29  ;;  %1419 = vmatprep.subr.bf16.mxu0 %v9322_v30  ;;  %v9364_v29 = vld [vmem:[%s11980_s3 + $0x454] ss:$8 sps:$4 sm:$0xff]   ;;  %v9362_v30 = vld [vmem:[%s11980_s3 + $0x450] ss:$8 sps:$4 sm:$0xff]  }
 0x209   : > { %1963 = vmatprep.subr.bf16.mxu1 %v9325_v31  ;;  %v9367_v31 = vld [vmem:[%s11980_s3 + $0x464] ss:$8 sps:$4 sm:$0xff]  }
 0x20b   : > { %1420 = vmatpush1.bf16.msra.mxu0 %v9320_v32  ;;  %v9365_v32 = vld [vmem:[%s11980_s3 + $0x460] ss:$8 sps:$4 sm:$0xff]  }
 0x20c   : > { %1964 = vmatpush1.bf16.msra.mxu1 %v9323_v35  ;;  %1421 = vmatprep.subr.bf16.mxu0 %v9328_v37  ;;  %v9368_v35 = vld [vmem:[%s11980_s3 + $0x470] ss:$8 sps:$4 sm:$0xff]   ;;  %v9373_v37 = vld [vmem:[%s11980_s3 + $0x484] ss:$8 sps:$4 sm:$0xff]  }
 0x20d   : > { %1965 = vmatprep.subr.bf16.mxu1 %v9331_v38  ;;  %v9371_v38 = vld [vmem:[%s11980_s3 + $0x480] ss:$8 sps:$4 sm:$0xff]  }
 0x20f   : > { %1422 = vmatpush1.bf16.msra.mxu0 %v9326_v48  ;;  %v9379_v48 = vld [vmem:[%s11980_s3 + $0x4a4] ss:$8 sps:$4 sm:$0xff]  }
 0x210   : > { %1966 = vmatpush1.bf16.msra.mxu1 %v9329_v49  ;;  %1423 = vmatprep.subr.bf16.mxu0 %v9334_v51  ;;  %v9377_v49 = vld [vmem:[%s11980_s3 + $0x4a0] ss:$8 sps:$4 sm:$0xff]   ;;  %v9382_v51 = vld [vmem:[%s11980_s3 + $0x4b4] ss:$8 sps:$4 sm:$0xff]  }
 0x211   : > { %1967 = vmatprep.subr.bf16.mxu1 %v9337_v53  ;;  %v9385_v53 = vld [vmem:[%s11980_s3 + $0x4c4] ss:$8 sps:$4 sm:$0xff]  }
 0x213   : > { %1424 = vmatpush1.bf16.msra.mxu0 %v9332_v56  ;;  %v9388_v56 = vld [vmem:[%s11980_s3 + $0x4d4] ss:$8 sps:$4 sm:$0xff]  }
 0x214   : > { %1968 = vmatpush1.bf16.msra.mxu1 %v9335_v57  ;;  %1425 = vmatprep.subr.bf16.mxu0 %v9340_v58  ;;  %v2248_v57 = vld [vmem:[#allocation2 + $0x8] sm:$0xe0]  ;;  %v2254_v58 = vpack.c.bf16 %v2250_v55, %v2250_v55  ;;  %v9428_v55 = vld [vmem:[%s11980_s3 + $0x5b0] ss:$8 sps:$4 sm:$0xff]  }
 0x215   : > { %1969 = vmatprep.subr.bf16.mxu1 %v9343_v62  ;;  %v2252_v61 = vpack.c.bf16 %v11025_v50, %v2248_v57  ;;  %v1988_v62 = vld [vmem:[#allocation2 + $0x20] sm:$0xf] }
 0x216   : > { %v2315_v63 = vshrl.u32 %v2254_v58, 16  ;;  %v2318_v0 = vshll.u32 %v2254_v58, 16  ;;  %v1992_v7 = vpack.c.bf16 %v1988_v62, %v1988_v62  ;;  %v2249_v57 = vld [vmem:[#allocation2 + $0x20] sm:$0x1f]  ;;  %v9434_v62 = vld [vmem:[%s11980_s3 + $0x5d0] ss:$8 sps:$4 sm:$0xff]  }
 0x217   : > { %1426 = vmatpush1.bf16.msra.mxu0 %v9338_v3  ;;  %v9394_v3 = vld [vmem:[%s11980_s3 + $0x4f4] ss:$8 sps:$4 sm:$0xff]   ;;  %v9431_v58 = vld [vmem:[%s11980_s3 + $0x5c0] ss:$8 sps:$4 sm:$0xff]  }
 0x218   : > { %1970 = vmatpush1.bf16.msra.mxu1 %v9341_v5  ;;  %1427 = vmatprep.subr.bf16.mxu0 %v9346_v6  ;;  %v2307_v5 = vshrl.u32 %v2252_v61, 16  ;;  %v2310_v6 = vshll.u32 %v2252_v61, 16  ;;  %v2317_v8 = vrot.slane %v2315_v63, 2  ;;  %v2253_v61 = vpack.c.bf16 %v2249_v57, %v2249_v57  ;;  %v9479_v57 = vld [vmem:[%s11980_s3 + $0x6c0] ss:$8 sps:$4 sm:$0xff]  }
 0x219   : > { %2200 = vmatprep.subr.bf16.mxu1 %v9349_v9  ;;  %v2320_v9 = vrot.slane %v2318_v0, 3  ;;  %v9439_v0 = vld [vmem:[%s11980_s3 + $0x5e4] ss:$8 sps:$4 sm:$0xff]  }
 0x21a   : > { %v2309_v13 = vrot.slane %v2307_v5, 2  ;;  %v2312_v14 = vrot.slane %v2310_v6, 3 }
 0x21b   : > { %1972 = vmatmul.mubr.bf16.vlgmr.msra.gmra.mrb[0].mxu1 %v1759_v19  ;;  %1428 = vmatpush1.bf16.msra.mxu0 %v9344_v12  ;;  %v9397_v12 = vld [vmem:[%s11980_s3 + $0x504] ss:$8 sps:$4 sm:$0xff]   ;;  %v2321_v16 = vor.u32 %v2320_v9, %v2317_v8  ;;  %v9442_v8 = vld [vmem:[%s11980_s3 + $0x5f4] ss:$8 sps:$4 sm:$0xff]  }
 0x21c   : > { %2201 = vmatpush1.bf16.msra.mxu1 %v9347_v15  ;;  %2232 = vmatprep.mubr.bf16.mxu1 %v2037_v20  ;;  %v2033_v15 = vrot.slane %v1992_v7, 2  ;;  %v2313_v19 = vor.u32 %v2312_v14, %v2309_v13  ;;  %v9400_v20 = vld [vmem:[%s11980_s3 + $0x514] ss:$8 sps:$4 sm:$0xff]   ;;  %v2535_v7 = vld [vmem:[#allocation2 + $0x28] sm:$0x3f] }
 0x21d   : > { %2202 = vmatprep.subr.bf16.mxu1 %v9352_v18  ;;  %v9395_v18 = vld [vmem:[%s11980_s3 + $0x500] ss:$8 sps:$4 sm:$0xff]   ;;  %v9440_v13 = vld [vmem:[%s11980_s3 + $0x5f0] ss:$8 sps:$4 sm:$0xff]  }
 0x21e   : > { %1430 = vmatmul.mubr.bf16.vlgmr.msra.gmra.mrb[4].mxu0 %v932_v21  ;;  %v2034_v21 = vsel %vm2031_vm8, %v2032_v17, %v2033_v15  ;;  %v2537_v17 = vpack.c.bf16 %v11025_v50, %v2533_v11 }
 0x220   : > { %2203 = vmatpush1.bf16.msra.mxu1 %v9350_v22  ;;  %v2322_v22 = vsel %vm2288_vm9, %v2313_v19, %v2321_v16  ;;  %v9445_v16 = vld [vmem:[%s11980_s3 + $0x604] ss:$8 sps:$4 sm:$0xff]  }
 0x221   : > { %2204 = vmatprep.subr.bf16.mxu1 %v9355_v23  ;;  %v9398_v23 = vld [vmem:[%s11980_s3 + $0x510] ss:$8 sps:$4 sm:$0xff]  }
 0x224   : > { %2205 = vmatpush1.bf16.msra.mxu1 %v9353_v24  ;;  %v9403_v24 = vld [vmem:[%s11980_s3 + $0x524] ss:$8 sps:$4 sm:$0xff]  }
 0x225   : > { %2206 = vmatprep.subr.bf16.mxu1 %v9358_v25  ;;  %v9401_v25 = vld [vmem:[%s11980_s3 + $0x520] ss:$8 sps:$4 sm:$0xff]  }
 0x228   : > { %2207 = vmatpush1.bf16.msra.mxu1 %v9356_v26  ;;  %v9406_v26 = vld [vmem:[%s11980_s3 + $0x534] ss:$8 sps:$4 sm:$0xff]  }
 0x229   : > { %2208 = vmatprep.subr.bf16.mxu1 %v9361_v27  ;;  %v9404_v27 = vld [vmem:[%s11980_s3 + $0x530] ss:$8 sps:$4 sm:$0xff]  }
 0x22c   : > { %2209 = vmatpush1.bf16.msra.mxu1 %v9359_v28  ;;  %v9409_v28 = vld [vmem:[%s11980_s3 + $0x544] ss:$8 sps:$4 sm:$0xff]  }
 0x22d   : > { %2210 = vmatprep.subr.bf16.mxu1 %v9364_v29  ;;  %v9407_v29 = vld [vmem:[%s11980_s3 + $0x540] ss:$8 sps:$4 sm:$0xff]  }
 0x230   : > { %2211 = vmatpush1.bf16.msra.mxu1 %v9362_v30  ;;  %v9412_v30 = vld [vmem:[%s11980_s3 + $0x554] ss:$8 sps:$4 sm:$0xff]  }
 0x231   : > { %2212 = vmatprep.subr.bf16.mxu1 %v9367_v31  ;;  %v9410_v31 = vld [vmem:[%s11980_s3 + $0x550] ss:$8 sps:$4 sm:$0xff]  }
 0x234   : > { %2213 = vmatpush1.bf16.msra.mxu1 %v9365_v32  ;;  %v9415_v32 = vld [vmem:[%s11980_s3 + $0x564] ss:$8 sps:$4 sm:$0xff]  }
 0x235   : > { %2214 = vmatprep.subr.bf16.mxu1 %v9370_v34  ;;  %v9413_v34 = vld [vmem:[%s11980_s3 + $0x560] ss:$8 sps:$4 sm:$0xff]  }
 0x238   : > { %2215 = vmatpush1.bf16.msra.mxu1 %v9368_v35  ;;  %v9418_v35 = vld [vmem:[%s11980_s3 + $0x574] ss:$8 sps:$4 sm:$0xff]  }
 0x239   : > { %2216 = vmatprep.subr.bf16.mxu1 %v9373_v37  ;;  %v9416_v37 = vld [vmem:[%s11980_s3 + $0x570] ss:$8 sps:$4 sm:$0xff]  }
 0x23c   : > { %2217 = vmatpush1.bf16.msra.mxu1 %v9371_v38  ;;  %v9491_v38 = vld [vmem:[#allocation6 + $0x100] ss:$8 sps:$4 sm:$0xff]  }
 0x23d   : > { %2218 = vmatprep.subr.bf16.mxu1 %v9376_v40  ;;  %v9493_v40 = vld [vmem:[#allocation6 + $0x104] ss:$8 sps:$4 sm:$0xff]  }
 0x23e   : > { %3144 = vmatprep.subr.bf16.mxu0 %v9493_v40  ;;  %v9464_v40 = vld [vmem:[%s11980_s3 + $0x670] ss:$8 sps:$4 sm:$0xff]  }
 0x23f   : > { %3145 = vmatpush1.bf16.msra.mxu0 %v9491_v38  ;;  %v9466_v38 = vld [vmem:[%s11980_s3 + $0x674] ss:$8 sps:$4 sm:$0xff]  }
 0x240   : > { %2219 = vmatpush1.bf16.msra.mxu1 %v9374_v42  ;;  %v9421_v42 = vld [vmem:[%s11980_s3 + $0x584] ss:$8 sps:$4 sm:$0xff]  }
 0x241   : > { %2220 = vmatprep.subr.bf16.mxu1 %v9379_v48  ;;  %v9419_v48 = vld [vmem:[%s11980_s3 + $0x580] ss:$8 sps:$4 sm:$0xff]  }
 0x244   : > { %2221 = vmatpush1.bf16.msra.mxu1 %v9377_v49  ;;  %v9424_v49 = vld [vmem:[%s11980_s3 + $0x594] ss:$8 sps:$4 sm:$0xff]  }
 0x245   : > { %2222 = vmatprep.subr.bf16.mxu1 %v9382_v51  ;;  %v9422_v51 = vld [vmem:[%s11980_s3 + $0x590] ss:$8 sps:$4 sm:$0xff]  }
 0x248   : > { %2223 = vmatpush1.bf16.msra.mxu1 %v9380_v52  ;;  %v9427_v52 = vld [vmem:[%s11980_s3 + $0x5a4] ss:$8 sps:$4 sm:$0xff]  }
 0x249   : > { %2224 = vmatprep.subr.bf16.mxu1 %v9385_v53  ;;  %v9425_v53 = vld [vmem:[%s11980_s3 + $0x5a0] ss:$8 sps:$4 sm:$0xff]  }
 0x24c   : > { %2225 = vmatpush1.bf16.msra.mxu1 %v9383_v54  ;;  %v9430_v54 = vld [vmem:[%s11980_s3 + $0x5b4] ss:$8 sps:$4 sm:$0xff]  }
 0x24d   : > { %2226 = vmatprep.subr.bf16.mxu1 %v9388_v56  ;;  %v9433_v56 = vld [vmem:[%s11980_s3 + $0x5c4] ss:$8 sps:$4 sm:$0xff]  }
 0x250   : > { %2227 = vmatpush1.bf16.msra.mxu1 %v9386_v59  ;;  %v9436_v59 = vld [vmem:[%s11980_s3 + $0x5d4] ss:$8 sps:$4 sm:$0xff]  }
 0x251   : > { %2228 = vmatprep.subr.bf16.mxu1 %v9391_v60  ;;  %v2247_v60 = vld [vmem:[#allocation2] sm:$0xe0] }
 0x252   : > { %v2251_v63 = vpack.c.bf16 %v11022_v46, %v2247_v60  ;;  %v9487_v60 = vld [vmem:[%s11980_s3 + $0x6e4] ss:$8 sps:$4 sm:$0xff]  }
 0x254   : > { %2229 = vmatpush1.bf16.msra.mxu1 %v9389_v2  ;;  %v2298_v2 = vshrl.u32 %v2253_v61, 16  ;;  %v2290_v5 = vshrl.u32 %v2251_v63, 16  ;;  %v2293_v6 = vshll.u32 %v2251_v63, 16  ;;  %v9490_v63 = vld [vmem:[%s11980_s3 + $0x6f4] ss:$8 sps:$4 sm:$0xff]  }
 0x255   : > { %2230 = vmatprep.subr.bf16.mxu1 %v9394_v3  ;;  %v2301_v3 = vshll.u32 %v2253_v61, 16  ;;  %v2534_v61 = vld [vmem:[#allocation2 + $0x20] sm:$0x3f] }
 0x256   : > { %v2300_v9 = vrot.slane %v2298_v2, 2  ;;  %v2292_v14 = vrot.slane %v2290_v5, 2  ;;  %v2295_v15 = vrot.slane %v2293_v6, 3  ;;  %v2538_v2 = vpack.c.bf16 %v2534_v61, %v2534_v61 }
 0x258   : > { %2231 = vmatpush1.bf16.msra.mxu1 %v9392_v10  ;;  %v2303_v10 = vrot.slane %v2301_v3, 3  ;;  %v9488_v3 = vld [vmem:[%s11980_s3 + $0x6f0] ss:$8 sps:$4 sm:$0xff]   ;;  %v2579_v5 = vrot.slane %v2538_v2, 3 }
 0x259   : > { %2485 = vmatprep.subr.bf16.mxu1 %v9397_v12  ;;  %v2539_v12 = vpack.c.bf16 %v2535_v7, %v2535_v7 }
 0x25b   : > { %2233 = vmatmul.mubr.bf16.vlgmr.msra.gmra.mrb[0].mxu1 %v2034_v21  ;;  %v2582_v19 = vrot.slane %v2539_v12, 3  ;;  %v9443_v21 = vld [vmem:[%s11980_s3 + $0x600] ss:$8 sps:$4 sm:$0xff]  }
 0x25c   : > { %2486 = vmatpush1.bf16.msra.mxu1 %v9395_v18  ;;  %2517 = vmatprep.mubr.bf16.mxu1 %v2322_v22  ;;  %v2304_v18 = vor.u32 %v2303_v10, %v2300_v9  ;;  %v2581_v22 = vrot.slane %v2537_v17, 3  ;;  %v9496_v12 = vld [vmem:[#allocation6 + $0x114] ss:$8 sps:$4 sm:$0xff]   ;;  %v9503_v17 = vld [vmem:[#allocation6 + $0x140] ss:$8 sps:$4 sm:$0xff]  }
 0x25d   : > { %2487 = vmatprep.subr.bf16.mxu1 %v9400_v20  ;;  %v2296_v20 = vor.u32 %v2295_v15, %v2292_v14  ;;  %3146 = vmatprep.subr.bf16.mxu0 %v9496_v12  ;;  %v9497_v14 = vld [vmem:[#allocation6 + $0x120] ss:$8 sps:$4 sm:$0xff]   ;;  %v9502_v15 = vld [vmem:[#allocation6 + $0x134] ss:$8 sps:$4 sm:$0xff]  }
 0x25e   : > { %v2583_v50 = vsel %vm2577_vm10, %v2581_v22, %v2582_v19  ;;  %v9506_v19 = vld [vmem:[#allocation6 + $0x150] ss:$8 sps:$4 sm:$0xff]   ;;  %v9514_v22 = vld [vmem:[#allocation6 + $0x174] ss:$8 sps:$4 sm:$0xff]  }
 0x260   : > { %2488 = vmatpush1.bf16.msra.mxu1 %v9398_v23  ;;  %v9448_v23 = vld [vmem:[%s11980_s3 + $0x614] ss:$8 sps:$4 sm:$0xff]  }
 0x261   : > { %2489 = vmatprep.subr.bf16.mxu1 %v9403_v24  ;;  %v2305_v24 = vsel %vm2288_vm9, %v2296_v20, %v2304_v18  ;;  %v9508_v18 = vld [vmem:[#allocation6 + $0x154] ss:$8 sps:$4 sm:$0xff]   ;;  %v9511_v20 = vld [vmem:[#allocation6 + $0x164] ss:$8 sps:$4 sm:$0xff]  }
 0x264   : > { %2490 = vmatpush1.bf16.msra.mxu1 %v9401_v25  ;;  %v9446_v25 = vld [vmem:[%s11980_s3 + $0x610] ss:$8 sps:$4 sm:$0xff]  }
 0x265   : > { %2491 = vmatprep.subr.bf16.mxu1 %v9406_v26  ;;  %v9451_v26 = vld [vmem:[%s11980_s3 + $0x624] ss:$8 sps:$4 sm:$0xff]  }
 0x268   : > { %2492 = vmatpush1.bf16.msra.mxu1 %v9404_v27  ;;  %v9449_v27 = vld [vmem:[%s11980_s3 + $0x620] ss:$8 sps:$4 sm:$0xff]  }
 0x269   : > { %2493 = vmatprep.subr.bf16.mxu1 %v9409_v28  ;;  %v9454_v28 = vld [vmem:[%s11980_s3 + $0x634] ss:$8 sps:$4 sm:$0xff]  }
 0x26c   : > { %2494 = vmatpush1.bf16.msra.mxu1 %v9407_v29  ;;  %v9452_v29 = vld [vmem:[%s11980_s3 + $0x630] ss:$8 sps:$4 sm:$0xff]  }
 0x26d   : > { %2495 = vmatprep.subr.bf16.mxu1 %v9412_v30  ;;  %v9457_v30 = vld [vmem:[%s11980_s3 + $0x644] ss:$8 sps:$4 sm:$0xff]  }
 0x270   : > { %2496 = vmatpush1.bf16.msra.mxu1 %v9410_v31  ;;  %v9455_v31 = vld [vmem:[%s11980_s3 + $0x640] ss:$8 sps:$4 sm:$0xff]  }
 0x271   : > { %2497 = vmatprep.subr.bf16.mxu1 %v9415_v32  ;;  %v9460_v32 = vld [vmem:[%s11980_s3 + $0x654] ss:$8 sps:$4 sm:$0xff]  }
 0x274   : > { %2498 = vmatpush1.bf16.msra.mxu1 %v9413_v34  ;;  %v9458_v34 = vld [vmem:[%s11980_s3 + $0x650] ss:$8 sps:$4 sm:$0xff]  }
 0x275   : > { %2499 = vmatprep.subr.bf16.mxu1 %v9418_v35  ;;  %v9463_v35 = vld [vmem:[%s11980_s3 + $0x664] ss:$8 sps:$4 sm:$0xff]  }
 0x278   : > { %2500 = vmatpush1.bf16.msra.mxu1 %v9416_v37  ;;  %v9461_v37 = vld [vmem:[%s11980_s3 + $0x660] ss:$8 sps:$4 sm:$0xff]  }
 0x279   : > { %2501 = vmatprep.subr.bf16.mxu1 %v9421_v42  ;;  %v9469_v42 = vld [vmem:[%s11980_s3 + $0x684] ss:$8 sps:$4 sm:$0xff]  }
 0x27c   : > { %2502 = vmatpush1.bf16.msra.mxu1 %v9419_v48  ;;  %v9467_v48 = vld [vmem:[%s11980_s3 + $0x680] ss:$8 sps:$4 sm:$0xff]  }
 0x27d   : > { %2503 = vmatprep.subr.bf16.mxu1 %v9424_v49  ;;  %v9472_v49 = vld [vmem:[%s11980_s3 + $0x694] ss:$8 sps:$4 sm:$0xff]  }
 0x280   : > { %2504 = vmatpush1.bf16.msra.mxu1 %v9422_v51  ;;  %v9470_v51 = vld [vmem:[%s11980_s3 + $0x690] ss:$8 sps:$4 sm:$0xff]  }
 0x281   : > { %2505 = vmatprep.subr.bf16.mxu1 %v9427_v52  ;;  %v9475_v52 = vld [vmem:[%s11980_s3 + $0x6a4] ss:$8 sps:$4 sm:$0xff]  }
 0x284   : > { %2506 = vmatpush1.bf16.msra.mxu1 %v9425_v53  ;;  %v9473_v53 = vld [vmem:[%s11980_s3 + $0x6a0] ss:$8 sps:$4 sm:$0xff]  }
 0x285   : > { %2507 = vmatprep.subr.bf16.mxu1 %v9430_v54  ;;  %v9478_v54 = vld [vmem:[%s11980_s3 + $0x6b4] ss:$8 sps:$4 sm:$0xff]  }
 0x288   : > { %2508 = vmatpush1.bf16.msra.mxu1 %v9428_v55  ;;  %v9476_v55 = vld [vmem:[%s11980_s3 + $0x6b0] ss:$8 sps:$4 sm:$0xff]  }
 0x289   : > { %2509 = vmatprep.subr.bf16.mxu1 %v9433_v56  ;;  %v9481_v56 = vld [vmem:[%s11980_s3 + $0x6c4] ss:$8 sps:$4 sm:$0xff]  }
 0x28c   : > { %2510 = vmatpush1.bf16.msra.mxu1 %v9431_v58  ;;  %v9484_v58 = vld [vmem:[%s11980_s3 + $0x6d4] ss:$8 sps:$4 sm:$0xff]  }
 0x28d   : > { %2511 = vmatprep.subr.bf16.mxu1 %v9436_v59  ;;  %v9482_v59 = vld [vmem:[%s11980_s3 + $0x6d0] ss:$8 sps:$4 sm:$0xff]  }
 0x290   : > { %2512 = vmatpush1.bf16.msra.mxu1 %v9434_v62  ;;  %v9485_v62 = vld [vmem:[%s11980_s3 + $0x6e0] ss:$8 sps:$4 sm:$0xff]  }
 0x291   : > { %2513 = vmatprep.subr.bf16.mxu1 %v9439_v0  ;;  %v2532_v0 = vld [vmem:[#allocation2] sm:$0xc0] }
 0x294   : > { %2514 = vmatpush1.bf16.msra.mxu1 %v9437_v4  ;;  %v2536_v4 = vpack.c.bf16 %v11022_v46, %v2532_v0  ;;  %v9499_v46 = vld [vmem:[#allocation6 + $0x124] ss:$8 sps:$4 sm:$0xff]  }
 0x295   : > { %2515 = vmatprep.subr.bf16.mxu1 %v9442_v8 }
 0x296   : > { %v2578_v6 = vrot.slane %v2536_v4, 3 }
 0x298   : > { %2516 = vmatpush1.bf16.msra.mxu1 %v9440_v13  ;;  %v2580_v7 = vsel %vm2577_vm10, %v2578_v6, %v2579_v5  ;;  %v9494_v13 = vld [vmem:[#allocation6 + $0x110] ss:$8 sps:$4 sm:$0xff]  }
 0x299   : > { %2746 = vmatprep.subr.bf16.mxu1 %v9445_v16  ;;  %3147 = vmatpush1.bf16.msra.mxu0 %v9494_v13  ;;  %v9500_v16 = vld [vmem:[#allocation6 + $0x130] ss:$8 sps:$4 sm:$0xff]  }
 0x29a   : > { %3148 = vmatprep.subr.bf16.mxu0 %v9499_v46 }
 0x29b   : > { %2518 = vmatmul.mubr.bf16.vlgmr.msra.gmra.mrb[0].mxu1 %v2305_v24  ;;  %v9517_v24 = vld [vmem:[#allocation6 + $0x184] ss:$8 sps:$4 sm:$0xff]  }
 0x29c   : > { %2747 = vmatpush1.bf16.msra.mxu1 %v9443_v21  ;;  %2778 = vmatprep.mubr.bf16.mxu1 %v2583_v50  ;;  %v9509_v21 = vld [vmem:[#allocation6 + $0x160] ss:$8 sps:$4 sm:$0xff]  }
 0x29d   : > { %2748 = vmatprep.subr.bf16.mxu1 %v9448_v23  ;;  %3149 = vmatpush1.bf16.msra.mxu0 %v9497_v14  ;;  %v9512_v23 = vld [vmem:[#allocation6 + $0x170] ss:$8 sps:$4 sm:$0xff]   ;;  %v9515_v50 = vld [vmem:[#allocation6 + $0x180] ss:$8 sps:$4 sm:$0xff]  }
 0x29e   : > { %3150 = vmatprep.subr.bf16.mxu0 %v9502_v15 }
 0x2a0   : > { %2749 = vmatpush1.bf16.msra.mxu1 %v9446_v25  ;;  %v9520_v25 = vld [vmem:[#allocation6 + $0x194] ss:$8 sps:$4 sm:$0xff]  }
 0x2a1   : > { %2750 = vmatprep.subr.bf16.mxu1 %v9451_v26  ;;  %3151 = vmatpush1.bf16.msra.mxu0 %v9500_v16  ;;  %v9518_v26 = vld [vmem:[#allocation6 + $0x190] ss:$8 sps:$4 sm:$0xff]  }
 0x2a4   : > { %2751 = vmatpush1.bf16.msra.mxu1 %v9449_v27  ;;  %v9523_v27 = vld [vmem:[#allocation6 + $0x1a4] ss:$8 sps:$4 sm:$0xff]  }
 0x2a5   : > { %2752 = vmatprep.subr.bf16.mxu1 %v9454_v28  ;;  %v9521_v28 = vld [vmem:[#allocation6 + $0x1a0] ss:$8 sps:$4 sm:$0xff]  }
 0x2a8   : > { %2753 = vmatpush1.bf16.msra.mxu1 %v9452_v29  ;;  %v9526_v29 = vld [vmem:[#allocation6 + $0x1b4] ss:$8 sps:$4 sm:$0xff]  }
 0x2a9   : > { %2754 = vmatprep.subr.bf16.mxu1 %v9457_v30  ;;  %v9524_v30 = vld [vmem:[#allocation6 + $0x1b0] ss:$8 sps:$4 sm:$0xff]  }
 0x2ac   : > { %2755 = vmatpush1.bf16.msra.mxu1 %v9455_v31  ;;  %v9529_v31 = vld [vmem:[#allocation6 + $0x1c4] ss:$8 sps:$4 sm:$0xff]  }
 0x2ad   : > { %2756 = vmatprep.subr.bf16.mxu1 %v9460_v32  ;;  %v9527_v32 = vld [vmem:[#allocation6 + $0x1c0] ss:$8 sps:$4 sm:$0xff]  }
 0x2b0   : > { %2757 = vmatpush1.bf16.msra.mxu1 %v9458_v34  ;;  %v9532_v34 = vld [vmem:[#allocation6 + $0x1d4] ss:$8 sps:$4 sm:$0xff]  }
 0x2b1   : > { %2758 = vmatprep.subr.bf16.mxu1 %v9463_v35  ;;  %v9530_v35 = vld [vmem:[#allocation6 + $0x1d0] ss:$8 sps:$4 sm:$0xff]  }
 0x2b4   : > { %2759 = vmatpush1.bf16.msra.mxu1 %v9461_v37  ;;  %v9535_v37 = vld [vmem:[#allocation6 + $0x1e4] ss:$8 sps:$4 sm:$0xff]  }
 0x2b5   : > { %2760 = vmatprep.subr.bf16.mxu1 %v9466_v38  ;;  %v9533_v38 = vld [vmem:[#allocation6 + $0x1e0] ss:$8 sps:$4 sm:$0xff]  }
 0x2b8   : > { %2761 = vmatpush1.bf16.msra.mxu1 %v9464_v40  ;;  %v9538_v40 = vld [vmem:[#allocation6 + $0x1f4] ss:$8 sps:$4 sm:$0xff]  }
 0x2b9   : > { %2762 = vmatprep.subr.bf16.mxu1 %v9469_v42  ;;  %v9536_v42 = vld [vmem:[#allocation6 + $0x1f0] ss:$8 sps:$4 sm:$0xff]  }
 0x2bc   : > { %2763 = vmatpush1.bf16.msra.mxu1 %v9467_v48  ;;  %v9541_v48 = vld [vmem:[#allocation6 + $0x4] ss:$8 sps:$4 sm:$0xff]  }
 0x2bd   : > { %2764 = vmatprep.subr.bf16.mxu1 %v9472_v49  ;;  %v904_v49 = vld [vmem:[%s11981_s4] sm:$0x3] }
 0x2c0   : > { %2765 = vmatpush1.bf16.msra.mxu1 %v9470_v51  ;;  %v2797_v51 = vrot.slane %v904_v49, %v10999_v45 }
 0x2c1   : > { %2766 = vmatprep.subr.bf16.mxu1 %v9475_v52 }
 0x2c4   : > { %2767 = vmatpush1.bf16.msra.mxu1 %v9473_v53  ;;  %v2801_v53 = vrot.slane %v904_v49, %v11005_v47 }
 0x2c5   : > { %2768 = vmatprep.subr.bf16.mxu1 %v9478_v54 }
 0x2c8   : > { %2769 = vmatpush1.bf16.msra.mxu1 %v9476_v55 }
 0x2c9   : > { %2770 = vmatprep.subr.bf16.mxu1 %v9481_v56 }
 0x2cc   : > { %2771 = vmatpush1.bf16.msra.mxu1 %v9479_v57 }
 0x2cd   : > { %2772 = vmatprep.subr.bf16.mxu1 %v9484_v58 }
 0x2d0   : > { %2773 = vmatpush1.bf16.msra.mxu1 %v9482_v59 }
 0x2d1   : > { %2774 = vmatprep.subr.bf16.mxu1 %v9487_v60 }
 0x2d4   : > { %2775 = vmatpush1.bf16.msra.mxu1 %v9485_v62 }
 0x2d5   : > { %2776 = vmatprep.subr.bf16.mxu1 %v9490_v63 }
 0x2d8   : > { %2777 = vmatpush1.bf16.msra.mxu1 %v9488_v3 }
 0x2db   : > { %2779 = vmatmul.mubr.bf16.vlgmr.msra.gmra.mrb[0].mxu1 %v2580_v7 }
 0x2dc   : > { %5067 = vmatprep.mubr.f32.mxu1 %v10504_v1  ;;  %v9505_v1 = vld [vmem:[#allocation6 + $0x144] ss:$8 sps:$4 sm:$0xff]  }
 0x2dd   : > { %3152 = vmatprep.subr.bf16.mxu0 %v9505_v1 }
 0x2de   : > { %3153 = vmatpush1.bf16.msra.mxu0 %v9503_v17 }
 0x2df   : > { %3154 = vmatprep.subr.bf16.mxu0 %v9508_v18 }
 0x2e2   : > { %3155 = vmatpush1.bf16.msra.mxu0 %v9506_v19 }
 0x2e3   : > { %3156 = vmatprep.subr.bf16.mxu0 %v9511_v20 }
 0x2e6   : > { %3157 = vmatpush1.bf16.msra.mxu0 %v9509_v21 }
 0x2e7   : > { %3158 = vmatprep.subr.bf16.mxu0 %v9514_v22 }
 0x2ea   : > { %3159 = vmatpush1.bf16.msra.mxu0 %v9512_v23 }
 0x2eb   : > { %3160 = vmatprep.subr.bf16.mxu0 %v9517_v24 }
 0x2ee   : > { %3161 = vmatpush1.bf16.msra.mxu0 %v9515_v50 }
 0x2ef   : > { %3162 = vmatprep.subr.bf16.mxu0 %v9520_v25 }
 0x2f1   : > { %v11528_v8 = vpop.f32.mrb[4].mxu0 }
 0x2f2   : > { %v11530_v9 = vpop.f32.mrb[5].mxu0  ;;  %3163 = vmatpush1.bf16.msra.mxu0 %v9518_v26 }
 0x2f3   : > { %v11532_v10 = vpop.f32.mrb[6].mxu0  ;;  %3164 = vmatprep.subr.bf16.mxu0 %v9523_v27 }
 0x2f4   : > { %v11534_v11 = vpop.f32.mrb[7].mxu0 }
 0x2f6   : > { %3165 = vmatpush1.bf16.msra.mxu0 %v9521_v28 }
 0x2f7   : > { %3166 = vmatprep.subr.bf16.mxu0 %v9526_v29 }
 0x2fa   : > { %3167 = vmatpush1.bf16.msra.mxu0 %v9524_v30 }
 0x2fb   : > { %3168 = vmatprep.subr.bf16.mxu0 %v9529_v31 }
 0x2fe   : > { %3169 = vmatpush1.bf16.msra.mxu0 %v9527_v32 }
 0x2ff   : > { %3170 = vmatprep.subr.bf16.mxu0 %v9532_v34 }
 0x302   : > { %3171 = vmatpush1.bf16.msra.mxu0 %v9530_v35 }
 0x303   : > { %3172 = vmatprep.subr.bf16.mxu0 %v9535_v37 }
 0x306   : > { %3173 = vmatpush1.bf16.msra.mxu0 %v9533_v38 }
 0x307   : > { %3174 = vmatprep.subr.bf16.mxu0 %v9538_v40 }
 0x30a   : > { %3175 = vmatpush1.bf16.msra.mxu0 %v9536_v42 }
 0x30b   : > { %3347 = vmatprep.subr.bf16.mxu0 %v9541_v48 }
 0x3ae   : > { %v2780_v52 = vpop.f32.mrb[0].mxu1 }
 0x3af   : > { %v8936_v54 = vadd.f32 %v2780_v52, %v11528_v8  ;;  %v2782_v55 = vpop.f32.mrb[1].mxu1 }
 0x3b0   : > { %v8937_v56 = vadd.f32 %v2782_v55, %v11530_v9  ;;  %v2784_v57 = vpop.f32.mrb[2].mxu1 }
 0x3b1   : > { %v2804_v58 = vadd.f32 %v8936_v54, %v2797_v51  ;;  %v8938_v59 = vadd.f32 %v2784_v57, %v11532_v10  ;;  %v2786_v60 = vpop.f32.mrb[3].mxu1 }
 0x3b2   : > { %v2805_v61 = vadd.f32 %v8937_v56, %v2801_v53  ;;  %v8939_v62 = vadd.f32 %v2786_v60, %v11534_v11 }
 0x3b3   : > { %v2808_v63 = vmin.f32 %v2804_v58, 20.0  ;;  %v2806_v0 = vadd.f32 %v8938_v59, %v2797_v51  ;;  %vm2848_vm11 = vcmp.gt.f32.partialorder %v2804_v58, 20.0 }
 0x3b4   : > { %v2809_v2 = vmin.f32 %v2805_v61, 20.0  ;;  %v2807_v3 = vadd.f32 %v8939_v62, %v2801_v53  ;;  %vm2849_vm12 = vcmp.gt.f32.partialorder %v2805_v61, 20.0 }
 0x3b5   : > { %v2812_v4 = vmul.f32 1.442695, %v2808_v63  ;;  %v2810_v5 = vmin.f32 %v2806_v0, 20.0  ;;  %vm2850_vm13 = vcmp.gt.f32.partialorder %v2806_v0, 20.0 }
 0x3b6   : > { %v2814_v6 = vmul.f32 1.442695, %v2809_v2  ;;  %v2811_v7 = vmin.f32 %v2807_v3, 20.0  ;;  %vm2851_vm14 = vcmp.gt.f32.partialorder %v2807_v3, 20.0 }
 0x3b7   : > { %10276 = vpow2.f32 %v2812_v4  ;;  %v2816_v8 = vmul.f32 1.442695, %v2810_v5 }
 0x3b8   : > { %10278 = vpow2.f32 %v2814_v6  ;;  %v2818_v9 = vmul.f32 1.442695, %v2811_v7 }
 0x3b9   : > { %10280 = vpow2.f32 %v2816_v8 }
 0x3ba   : > { %10282 = vpow2.f32 %v2818_v9 }
 0x3c1   : > { %v10277_v12 = vpop.eup %10276 }
 0x3c2   : > { %v10279_v10 = vpop.eup %10278  ;;  %v2820_v13 = vadd.f32 1.0, %v10277_v12 }
 0x3c3   : > { %v10281_v46 = vpop.eup %10280  ;;  %v2821_v14 = vadd.f32 1.0, %v10279_v10 }
 0x3c4   : > { %v10283_v11 = vpop.eup %10282  ;;  %v2824_v15 = vmul.f32 %v2820_v13, %v2820_v13  ;;  %v2822_v16 = vadd.f32 1.0, %v10281_v46 }
 0x3c5   : > { %v2825_v1 = vmul.f32 %v2821_v14, %v2821_v14  ;;  %v2823_v17 = vadd.f32 1.0, %v10283_v11 }
 0x3c6   : > { %v2836_v18 = vadd.f32 1.0, %v2824_v15  ;;  %v2826_v19 = vmul.f32 %v2822_v16, %v2822_v16  ;;  %v8340_v24 = vadd.f32 -1.0, %v2824_v15  ;;  %v9539_v16 = vld [vmem:[#allocation6] ss:$8 sps:$4 sm:$0xff]  }
 0x3c7   : > { %v2837_v20 = vadd.f32 1.0, %v2825_v1  ;;  %v2827_v21 = vmul.f32 %v2823_v17, %v2823_v17  ;;  %v8341_v50 = vadd.f32 -1.0, %v2825_v1  ;;  %v9544_v17 = vld [vmem:[#allocation6 + $0x14] ss:$8 sps:$4 sm:$0xff]  }
 0x3c8   : > { %10284 = vrcp.f32 %v2836_v18  ;;  %v2838_v22 = vadd.f32 1.0, %v2826_v19  ;;  %v8342_v25 = vadd.f32 -1.0, %v2826_v19  ;;  %v2832_v27 = vmul.f32 %v8340_v24, %v2804_v58  ;;  %v9548_v24 = vld [vmem:[#allocation6 + $0x30] ss:$8 sps:$4 sm:$0xff]  }
 0x3c9   : > { %10286 = vrcp.f32 %v2837_v20  ;;  %v2839_v23 = vadd.f32 1.0, %v2827_v21  ;;  %v8343_v26 = vadd.f32 -1.0, %v2827_v21  ;;  %v2833_v29 = vmul.f32 %v8341_v50, %v2805_v61  ;;  %v9542_v20 = vld [vmem:[#allocation6 + $0x10] ss:$8 sps:$4 sm:$0xff]   ;;  %v9547_v21 = vld [vmem:[#allocation6 + $0x24] ss:$8 sps:$4 sm:$0xff]  }
 0x3ca   : > { %10288 = vrcp.f32 %v2838_v22  ;;  %v2834_v32 = vmul.f32 %v8342_v25, %v2806_v0  ;;  %v9545_v22 = vld [vmem:[#allocation6 + $0x20] ss:$8 sps:$4 sm:$0xff]   ;;  %v9553_v50 = vld [vmem:[#allocation6 + $0x44] ss:$8 sps:$4 sm:$0xff]  }
 0x3cb   : > { %10290 = vrcp.f32 %v2839_v23  ;;  %v2835_v37 = vmul.f32 %v8343_v26, %v2807_v3  ;;  %v9550_v23 = vld [vmem:[#allocation6 + $0x34] ss:$8 sps:$4 sm:$0xff]   ;;  %v9551_v25 = vld [vmem:[#allocation6 + $0x40] ss:$8 sps:$4 sm:$0xff]  }
 0x3cc   : > { %v9556_v26 = vld [vmem:[#allocation6 + $0x54] ss:$8 sps:$4 sm:$0xff]  }
 0x3d2   : > { %v10285_v28 = vpop.eup %10284 }
 0x3d3   : > { %v10287_v30 = vpop.eup %10286  ;;  %v2844_v31 = vmul.f32 %v10285_v28, %v2832_v27  ;;  %v9554_v27 = vld [vmem:[#allocation6 + $0x50] ss:$8 sps:$4 sm:$0xff]   ;;  %v9559_v28 = vld [vmem:[#allocation6 + $0x64] ss:$8 sps:$4 sm:$0xff]  }
 0x3d4   : > { %v10289_v34 = vpop.eup %10288  ;;  %v2845_v35 = vmul.f32 %v10287_v30, %v2833_v29  ;;  %v9557_v29 = vld [vmem:[#allocation6 + $0x60] ss:$8 sps:$4 sm:$0xff]   ;;  %v9562_v30 = vld [vmem:[#allocation6 + $0x74] ss:$8 sps:$4 sm:$0xff]  }
 0x3d5   : > { %v10291_v38 = vpop.eup %10290  ;;  %v2852_v40 = vsel %vm2848_vm11, %v2804_v58, %v2844_v31  ;;  %v2846_v42 = vmul.f32 %v10289_v34, %v2834_v32  ;;  %v9560_v31 = vld [vmem:[#allocation6 + $0x70] ss:$8 sps:$4 sm:$0xff]   ;;  %v9565_v32 = vld [vmem:[#allocation6 + $0x84] ss:$8 sps:$4 sm:$0xff]   ;;  %v9563_v34 = vld [vmem:[#allocation6 + $0x80] ss:$8 sps:$4 sm:$0xff]  }
 0x3d6   : > { %v2861_v48 = vrot.slane %v2852_v40, 5  ;;  %v2853_v49 = vsel %vm2849_vm12, %v2805_v61, %v2845_v35  ;;  %v2847_v51 = vmul.f32 %v10291_v38, %v2835_v37  ;;  %v9568_v35 = vld [vmem:[#allocation6 + $0x94] ss:$8 sps:$4 sm:$0xff]   ;;  %v9566_v37 = vld [vmem:[#allocation6 + $0x90] ss:$8 sps:$4 sm:$0xff]   ;;  %vm4994_vm11 = vcmask 31744  }
 0x3d7   : > { %v2862_v52 = vrot.slane %v2853_v49, 5  ;;  %v2854_v53 = vsel %vm2850_vm13, %v2806_v0, %v2846_v42  ;;  %v9571_v38 = vld [vmem:[#allocation6 + $0xa4] ss:$8 sps:$4 sm:$0xff]   ;;  %v9569_v40 = vld [vmem:[#allocation6 + $0xa0] ss:$8 sps:$4 sm:$0xff]  }
 0x3d8   : > { %2873 = vst [vmem:[#allocation2] sm:$0xf8] %v2861_v48  ;;  %v2863_v54 = vrot.slane %v2854_v53, 5  ;;  %v2855_v55 = vsel %vm2851_vm14, %v2807_v3, %v2847_v51  ;;  %v9574_v42 = vld [vmem:[#allocation6 + $0xb4] ss:$8 sps:$4 sm:$0xff]  }
 0x3d9   : > { %2874 = vst [vmem:[#allocation2 + $0x8] sm:$0xf8] %v2862_v52  ;;  %v2865_v56 = vrot.slane %v2855_v55, 5  ;;  %v9577_v49 = vld [vmem:[#allocation6 + $0xc4] ss:$8 sps:$4 sm:$0xff]  }
 0x3da   : > { %v11546_v57 = vsel %vm909_vm4, %v2861_v48, %v2863_v54  ;;  %2877 = vst [vmem:[#allocation2 + $0x20] sm:$0x7] %v2863_v54  ;;  %v9572_v48 = vld [vmem:[#allocation6 + $0xb0] ss:$8 sps:$4 sm:$0xff]   ;;  %v9575_v51 = vld [vmem:[#allocation6 + $0xc0] ss:$8 sps:$4 sm:$0xff]  }
 0x3db   : > { %v11549_v58 = vsel %vm909_vm4, %v2862_v52, %v2865_v56  ;;  %2878 = vst [vmem:[#allocation2 + $0x28] sm:$0x7] %v2865_v56  ;;  %v9580_v52 = vld [vmem:[#allocation6 + $0xd4] ss:$8 sps:$4 sm:$0xff]   ;;  %v9578_v53 = vld [vmem:[#allocation6 + $0xd0] ss:$8 sps:$4 sm:$0xff]  }
 0x3dc   : > { %v9583_v54 = vld [vmem:[#allocation6 + $0xe4] ss:$8 sps:$4 sm:$0xff]   ;;  %v9581_v55 = vld [vmem:[#allocation6 + $0xe0] ss:$8 sps:$4 sm:$0xff]  }
 0x3df   : > { %v2917_v59 = vld [vmem:[#allocation2] sm:$0xfe] }
 0x3e0   : > { %v2918_v60 = vld [vmem:[#allocation2 + $0x8] sm:$0xfe]  ;;  %v2921_v61 = vpack.c.bf16 %v11546_v57, %v2917_v59 }
 0x3e1   : > { %v2922_v62 = vpack.c.bf16 %v11549_v58, %v2918_v60  ;;  %v2919_v63 = vld [vmem:[#allocation2 + $0x20] sm:$0x1]  ;;  %v2880_v15 = vld [vmem:[#allocation2 + $0x8] sm:$0xff] }
 0x3e2   : > { %v2920_v0 = vld [vmem:[#allocation2 + $0x28] sm:$0x1]  ;;  %v2923_v2 = vpack.c.bf16 %v2919_v63, %v2919_v63  ;;  %v2961_v3 = vshll.u32 %v2921_v61, 16  ;;  %v2959_v6 = vshrl.u32 %v2921_v61, 16  ;;  %v2884_v19 = vpack.c.bf16 %v11549_v58, %v2880_v15  ;;  %v3391_v60 = vld [vmem:[#allocation2 + $0x8] sm:$0xfc] }
 0x3e3   : > { %v2924_v4 = vpack.c.bf16 %v2920_v0, %v2920_v0  ;;  %v2973_v5 = vshll.u32 %v2922_v62, 16  ;;  %v2971_v9 = vshrl.u32 %v2922_v62, 16  ;;  %v3393_v56 = vld [vmem:[#allocation2 + $0x28] sm:$0x3]  ;;  %v9589_v63 = vld [vmem:[#allocation6 + $0x204] ss:$8 sps:$4 sm:$0xff]   ;;  %v3395_v0 = vpack.c.bf16 %v11549_v58, %v3391_v60 }
 0x3e4   : > { %v2963_v7 = vrot.slane %v2961_v3, 1  ;;  %v2966_v8 = vshll.u32 %v2923_v2, 16  ;;  %v9586_v59 = vld [vmem:[#allocation6 + $0xf4] ss:$8 sps:$4 sm:$0xff]   ;;  %v3397_v61 = vpack.c.bf16 %v3393_v56, %v3393_v56  ;;  %v9584_v62 = vld [vmem:[#allocation6 + $0xf0] ss:$8 sps:$4 sm:$0xff]  }
 0x3e5   : > { %v2975_v12 = vrot.slane %v2973_v5, 1  ;;  %v2978_v10 = vshll.u32 %v2924_v4, 16  ;;  %v2879_v2 = vld [vmem:[#allocation2] sm:$0xff]  ;;  %v9587_v4 = vld [vmem:[#allocation6 + $0x200] ss:$8 sps:$4 sm:$0xff]  }
 0x3e6   : > { %v2964_v13 = vor.u32 %v2963_v7, %v2959_v6  ;;  %v2968_v46 = vrot.slane %v2966_v8, 1  ;;  %v3439_v3 = vrot.slane %v3397_v61, 1  ;;  %v2883_v5 = vpack.c.bf16 %v11546_v57, %v2879_v2  ;;  %v9592_v7 = vld [vmem:[#allocation6 + $0x214] ss:$8 sps:$4 sm:$0xff]   ;;  %v9637_v61 = vld [vmem:[#allocation6 + $0x304] ss:$8 sps:$4 sm:$0xff]  }
 0x3e7   : > { %v2976_v14 = vor.u32 %v2975_v12, %v2971_v9  ;;  %v2980_v11 = vrot.slane %v2978_v10, 1  ;;  %v3438_v6 = vrot.slane %v3395_v0, 1  ;;  %v9590_v9 = vld [vmem:[#allocation6 + $0x210] ss:$8 sps:$4 sm:$0xff]   ;;  %v9595_v12 = vld [vmem:[#allocation6 + $0x224] ss:$8 sps:$4 sm:$0xff]  }
 0x3e8   : > { %v2969_v18 = vsel %vm1007_vm6, %v2964_v13, %v2968_v46  ;;  %v9593_v10 = vld [vmem:[#allocation6 + $0x220] ss:$8 sps:$4 sm:$0xff]   ;;  %v9598_v13 = vld [vmem:[#allocation6 + $0x234] ss:$8 sps:$4 sm:$0xff]   ;;  %v9596_v46 = vld [vmem:[#allocation6 + $0x230] ss:$8 sps:$4 sm:$0xff]  }
 0x3e9   : > { %v2981_v1 = vsel %vm1007_vm6, %v2976_v14, %v2980_v11  ;;  %v3440_v8 = vsel %vm1485_vm5, %v3438_v6, %v3439_v3  ;;  %v9601_v14 = vld [vmem:[#allocation6 + $0x244] ss:$8 sps:$4 sm:$0xff]   ;;  %v9599_v11 = vld [vmem:[#allocation6 + $0x240] ss:$8 sps:$4 sm:$0xff]   ;;  %v9604_v15 = vld [vmem:[#allocation6 + $0x254] ss:$8 sps:$4 sm:$0xff]  }
 0x3ea   : > { %3176 = vmatprep.mubr.bf16.mxu0 %v2981_v1  ;;  %v9607_v1 = vld [vmem:[#allocation6 + $0x264] ss:$8 sps:$4 sm:$0xff]   ;;  %v9640_v6 = vld [vmem:[#allocation6 + $0x314] ss:$8 sps:$4 sm:$0xff]  }
 0x3eb   : > { %3177 = vmatmul.mubr.bf16.vlgmr.msra.gmra.mrb[8].mxu0 %v2969_v18  ;;  %v9610_v18 = vld [vmem:[#allocation6 + $0x274] ss:$8 sps:$4 sm:$0xff]  }
 0x3ec   : > { %3348 = vmatpush1.bf16.msra.mxu0 %v9539_v16  ;;  %3379 = vmatprep.mubr.bf16.mxu0 %v2884_v19  ;;  %v9602_v16 = vld [vmem:[#allocation6 + $0x250] ss:$8 sps:$4 sm:$0xff]  }
 0x3ed   : > { %3349 = vmatprep.subr.bf16.mxu0 %v9544_v17  ;;  %v9605_v17 = vld [vmem:[#allocation6 + $0x260] ss:$8 sps:$4 sm:$0xff]   ;;  %v9608_v19 = vld [vmem:[#allocation6 + $0x270] ss:$8 sps:$4 sm:$0xff]  }
 0x3f0   : > { %3350 = vmatpush1.bf16.msra.mxu0 %v9542_v20  ;;  %v9613_v20 = vld [vmem:[#allocation6 + $0x284] ss:$8 sps:$4 sm:$0xff]  }
 0x3f1   : > { %3351 = vmatprep.subr.bf16.mxu0 %v9547_v21  ;;  %v9611_v21 = vld [vmem:[#allocation6 + $0x280] ss:$8 sps:$4 sm:$0xff]  }
 0x3f4   : > { %3352 = vmatpush1.bf16.msra.mxu0 %v9545_v22  ;;  %v9616_v22 = vld [vmem:[#allocation6 + $0x294] ss:$8 sps:$4 sm:$0xff]  }
 0x3f5   : > { %3353 = vmatprep.subr.bf16.mxu0 %v9550_v23  ;;  %v9614_v23 = vld [vmem:[#allocation6 + $0x290] ss:$8 sps:$4 sm:$0xff]  }
 0x3f8   : > { %3354 = vmatpush1.bf16.msra.mxu0 %v9548_v24  ;;  %v9619_v24 = vld [vmem:[#allocation6 + $0x2a4] ss:$8 sps:$4 sm:$0xff]  }
 0x3f9   : > { %3355 = vmatprep.subr.bf16.mxu0 %v9553_v50  ;;  %v9617_v50 = vld [vmem:[#allocation6 + $0x2a0] ss:$8 sps:$4 sm:$0xff]  }
 0x3fc   : > { %3356 = vmatpush1.bf16.msra.mxu0 %v9551_v25  ;;  %v9622_v25 = vld [vmem:[#allocation6 + $0x2b4] ss:$8 sps:$4 sm:$0xff]  }
 0x3fd   : > { %3357 = vmatprep.subr.bf16.mxu0 %v9556_v26  ;;  %v9620_v26 = vld [vmem:[#allocation6 + $0x2b0] ss:$8 sps:$4 sm:$0xff]  }
 0x400   : > { %3358 = vmatpush1.bf16.msra.mxu0 %v9554_v27  ;;  %v9625_v27 = vld [vmem:[#allocation6 + $0x2c4] ss:$8 sps:$4 sm:$0xff]  }
 0x401   : > { %3359 = vmatprep.subr.bf16.mxu0 %v9559_v28  ;;  %v9623_v28 = vld [vmem:[#allocation6 + $0x2c0] ss:$8 sps:$4 sm:$0xff]  }
 0x404   : > { %3360 = vmatpush1.bf16.msra.mxu0 %v9557_v29  ;;  %v3653_v29 = vld [vmem:[#allocation2 + $0x28] sm:$0x7] }
 0x405   : > { %3361 = vmatprep.subr.bf16.mxu0 %v9562_v30  ;;  %v9628_v30 = vld [vmem:[#allocation6 + $0x2d4] ss:$8 sps:$4 sm:$0xff]  }
 0x408   : > { %3362 = vmatpush1.bf16.msra.mxu0 %v9560_v31  ;;  %v3651_v31 = vld [vmem:[#allocation2 + $0x8] sm:$0xf8] }
 0x409   : > { %3363 = vmatprep.subr.bf16.mxu0 %v9565_v32  ;;  %v3657_v32 = vpack.c.bf16 %v3653_v29, %v3653_v29  ;;  %v9671_v29 = vld [vmem:[#allocation6 + $0x3c0] ss:$8 sps:$4 sm:$0xff]  }
 0x40c   : > { %3364 = vmatpush1.bf16.msra.mxu0 %v9563_v34  ;;  %v9626_v34 = vld [vmem:[#allocation6 + $0x2d0] ss:$8 sps:$4 sm:$0xff]  }
 0x40d   : > { %3365 = vmatprep.subr.bf16.mxu0 %v9568_v35  ;;  %v9631_v35 = vld [vmem:[#allocation6 + $0x2e4] ss:$8 sps:$4 sm:$0xff]  }
 0x410   : > { %3366 = vmatpush1.bf16.msra.mxu0 %v9566_v37  ;;  %v3655_v37 = vpack.c.bf16 %v11549_v58, %v3651_v31  ;;  %v3650_v31 = vld [vmem:[#allocation2] sm:$0xf8] }
 0x411   : > { %3367 = vmatprep.subr.bf16.mxu0 %v9571_v38  ;;  %v3392_v38 = vld [vmem:[#allocation2 + $0x20] sm:$0x3] }
 0x414   : > { %3368 = vmatpush1.bf16.msra.mxu0 %v9569_v40  ;;  %v3717_v40 = vshrl.u32 %v3657_v32, 16 }
 0x415   : > { %3369 = vmatprep.subr.bf16.mxu0 %v9574_v42  ;;  %v3720_v42 = vshll.u32 %v3657_v32, 16 }
 0x417   : > { %v3722_v56 = vrot.slane %v3720_v42, 2  ;;  %v9677_v42 = vld [vmem:[#allocation6 + $0x3e0] ss:$8 sps:$4 sm:$0xff]  }
 0x418   : > { %3370 = vmatpush1.bf16.msra.mxu0 %v9572_v48  ;;  %v9629_v48 = vld [vmem:[#allocation6 + $0x2e0] ss:$8 sps:$4 sm:$0xff]  }
 0x419   : > { %3371 = vmatprep.subr.bf16.mxu0 %v9577_v49  ;;  %v9634_v49 = vld [vmem:[#allocation6 + $0x2f4] ss:$8 sps:$4 sm:$0xff]  }
 0x41c   : > { %3372 = vmatpush1.bf16.msra.mxu0 %v9575_v51  ;;  %v3390_v51 = vld [vmem:[#allocation2] sm:$0xfc] }
 0x41d   : > { %3373 = vmatprep.subr.bf16.mxu0 %v9580_v52  ;;  %v3709_v52 = vshrl.u32 %v3655_v37, 16  ;;  %v3394_v60 = vpack.c.bf16 %v11546_v57, %v3390_v51  ;;  %v3937_v51 = vld [vmem:[#allocation2 + $0x28] sm:$0xf] }
 0x41f   : > { %v3435_v3 = vrot.slane %v3394_v60, 1 }
 0x420   : > { %3374 = vmatpush1.bf16.msra.mxu0 %v9578_v53  ;;  %v3712_v53 = vshll.u32 %v3655_v37, 16  ;;  %v9679_v37 = vld [vmem:[#allocation6 + $0x3e4] ss:$8 sps:$4 sm:$0xff]  }
 0x421   : > { %3375 = vmatprep.subr.bf16.mxu0 %v9583_v54  ;;  %v3396_v54 = vpack.c.bf16 %v3392_v38, %v3392_v38 }
 0x423   : > { %v3436_v0 = vrot.slane %v3396_v54, 1 }
 0x424   : > { %3376 = vmatpush1.bf16.msra.mxu0 %v9581_v55  ;;  %v3719_v55 = vrot.slane %v3717_v40, 1 }
 0x425   : > { %3377 = vmatprep.subr.bf16.mxu0 %v9586_v59  ;;  %v9632_v59 = vld [vmem:[#allocation6 + $0x2f0] ss:$8 sps:$4 sm:$0xff]  }
 0x426   : > { %v3723_v2 = vor.u32 %v3722_v56, %v3719_v55  ;;  %v3935_v55 = vld [vmem:[#allocation2 + $0x8] sm:$0xf0]  ;;  %v3941_v56 = vpack.c.bf16 %v3937_v51, %v3937_v51  ;;  %v3934_v51 = vld [vmem:[#allocation2] sm:$0xf0] }
 0x428   : > { %3378 = vmatpush1.bf16.msra.mxu0 %v9584_v62  ;;  %v3711_v62 = vrot.slane %v3709_v52, 1  ;;  %v9682_v52 = vld [vmem:[#allocation6 + $0x3f4] ss:$8 sps:$4 sm:$0xff]  }
 0x429   : > { %3603 = vmatprep.subr.bf16.mxu0 %v9589_v63  ;;  %v3714_v63 = vrot.slane %v3712_v53, 2 }
 0x42b   : > { %3380 = vmatmul.mubr.bf16.vlgmr.msra.gmra.mrb[8].mxu0 %v2883_v5  ;;  %v3715_v5 = vor.u32 %v3714_v63, %v3711_v62  ;;  %v9685_v62 = vld [vmem:[#allocation6 + $0x404] ss:$8 sps:$4 sm:$0xff]   ;;  %v3939_v63 = vpack.c.bf16 %v11549_v58, %v3935_v55 }
 0x42c   : > { %3604 = vmatpush1.bf16.msra.mxu0 %v9587_v4  ;;  %3635 = vmatprep.mubr.bf16.mxu0 %v3440_v8  ;;  %v9635_v4 = vld [vmem:[#allocation6 + $0x300] ss:$8 sps:$4 sm:$0xff]  }
 0x42d   : > { %3605 = vmatprep.subr.bf16.mxu0 %v9592_v7  ;;  %v3437_v7 = vsel %vm1485_vm5, %v3435_v3, %v3436_v0  ;;  %v3724_v8 = vsel %vm1742_vm7, %v3715_v5, %v3723_v2  ;;  %v3983_v2 = vrot.slane %v3941_v56, 2  ;;  %v3982_v5 = vrot.slane %v3939_v63, 2 }
 0x430   : > { %3606 = vmatpush1.bf16.msra.mxu0 %v9590_v9  ;;  %v9638_v9 = vld [vmem:[#allocation6 + $0x310] ss:$8 sps:$4 sm:$0xff]  }
 0x431   : > { %3607 = vmatprep.subr.bf16.mxu0 %v9595_v12  ;;  %v9643_v12 = vld [vmem:[#allocation6 + $0x324] ss:$8 sps:$4 sm:$0xff]  }
 0x434   : > { %3608 = vmatpush1.bf16.msra.mxu0 %v9593_v10  ;;  %v9641_v10 = vld [vmem:[#allocation6 + $0x320] ss:$8 sps:$4 sm:$0xff]  }
 0x435   : > { %3609 = vmatprep.subr.bf16.mxu0 %v9598_v13  ;;  %v9646_v13 = vld [vmem:[#allocation6 + $0x334] ss:$8 sps:$4 sm:$0xff]  }
 0x438   : > { %3610 = vmatpush1.bf16.msra.mxu0 %v9596_v46  ;;  %v9644_v46 = vld [vmem:[#allocation6 + $0x330] ss:$8 sps:$4 sm:$0xff]  }
 0x439   : > { %3611 = vmatprep.subr.bf16.mxu0 %v9601_v14  ;;  %v9649_v14 = vld [vmem:[#allocation6 + $0x344] ss:$8 sps:$4 sm:$0xff]  }
 0x43c   : > { %3612 = vmatpush1.bf16.msra.mxu0 %v9599_v11  ;;  %v9647_v11 = vld [vmem:[#allocation6 + $0x340] ss:$8 sps:$4 sm:$0xff]  }
 0x43d   : > { %3613 = vmatprep.subr.bf16.mxu0 %v9604_v15  ;;  %v9652_v15 = vld [vmem:[#allocation6 + $0x354] ss:$8 sps:$4 sm:$0xff]  }
 0x440   : > { %3614 = vmatpush1.bf16.msra.mxu0 %v9602_v16  ;;  %v9650_v16 = vld [vmem:[#allocation6 + $0x350] ss:$8 sps:$4 sm:$0xff]  }
 0x441   : > { %3615 = vmatprep.subr.bf16.mxu0 %v9607_v1  ;;  %v9655_v1 = vld [vmem:[#allocation6 + $0x364] ss:$8 sps:$4 sm:$0xff]  }
 0x444   : > { %3616 = vmatpush1.bf16.msra.mxu0 %v9605_v17  ;;  %v9653_v17 = vld [vmem:[#allocation6 + $0x360] ss:$8 sps:$4 sm:$0xff]  }
 0x445   : > { %3617 = vmatprep.subr.bf16.mxu0 %v9610_v18  ;;  %v9658_v18 = vld [vmem:[#allocation6 + $0x374] ss:$8 sps:$4 sm:$0xff]  }
 0x448   : > { %3618 = vmatpush1.bf16.msra.mxu0 %v9608_v19  ;;  %v9656_v19 = vld [vmem:[#allocation6 + $0x370] ss:$8 sps:$4 sm:$0xff]  }
 0x449   : > { %3619 = vmatprep.subr.bf16.mxu0 %v9613_v20  ;;  %v9661_v20 = vld [vmem:[#allocation6 + $0x384] ss:$8 sps:$4 sm:$0xff]  }
 0x44c   : > { %3620 = vmatpush1.bf16.msra.mxu0 %v9611_v21  ;;  %v9659_v21 = vld [vmem:[#allocation6 + $0x380] ss:$8 sps:$4 sm:$0xff]  }
 0x44d   : > { %3621 = vmatprep.subr.bf16.mxu0 %v9616_v22  ;;  %v9664_v22 = vld [vmem:[#allocation6 + $0x394] ss:$8 sps:$4 sm:$0xff]  }
 0x450   : > { %3622 = vmatpush1.bf16.msra.mxu0 %v9614_v23  ;;  %v9662_v23 = vld [vmem:[#allocation6 + $0x390] ss:$8 sps:$4 sm:$0xff]  }
 0x451   : > { %3623 = vmatprep.subr.bf16.mxu0 %v9619_v24  ;;  %v9667_v24 = vld [vmem:[#allocation6 + $0x3a4] ss:$8 sps:$4 sm:$0xff]  }
 0x454   : > { %3624 = vmatpush1.bf16.msra.mxu0 %v9617_v50  ;;  %v9665_v50 = vld [vmem:[#allocation6 + $0x3a0] ss:$8 sps:$4 sm:$0xff]  }
 0x455   : > { %3625 = vmatprep.subr.bf16.mxu0 %v9622_v25  ;;  %v9670_v25 = vld [vmem:[#allocation6 + $0x3b4] ss:$8 sps:$4 sm:$0xff]  }
 0x458   : > { %3626 = vmatpush1.bf16.msra.mxu0 %v9620_v26  ;;  %v9668_v26 = vld [vmem:[#allocation6 + $0x3b0] ss:$8 sps:$4 sm:$0xff]  }
 0x459   : > { %3627 = vmatprep.subr.bf16.mxu0 %v9625_v27  ;;  %v9673_v27 = vld [vmem:[#allocation6 + $0x3c4] ss:$8 sps:$4 sm:$0xff]  }
 0x45c   : > { %3628 = vmatpush1.bf16.msra.mxu0 %v9623_v28  ;;  %v3652_v28 = vld [vmem:[#allocation2 + $0x20] sm:$0x7] }
 0x45d   : > { %3629 = vmatprep.subr.bf16.mxu0 %v9628_v30  ;;  %v9676_v30 = vld [vmem:[#allocation6 + $0x3d4] ss:$8 sps:$4 sm:$0xff]   ;;  %v3656_v32 = vpack.c.bf16 %v3652_v28, %v3652_v28  ;;  %v9719_v28 = vld [vmem:[#allocation6 + $0x4c0] ss:$8 sps:$4 sm:$0xff]  }
 0x45f   : > { %v3700_v38 = vshrl.u32 %v3656_v32, 16  ;;  %v3703_v40 = vshll.u32 %v3656_v32, 16 }
 0x460   : > { %3630 = vmatpush1.bf16.msra.mxu0 %v9626_v34  ;;  %v9674_v34 = vld [vmem:[#allocation6 + $0x3d0] ss:$8 sps:$4 sm:$0xff]  }
 0x461   : > { %3631 = vmatprep.subr.bf16.mxu0 %v9631_v35  ;;  %v3654_v35 = vpack.c.bf16 %v11546_v57, %v3650_v31  ;;  %v3702_v53 = vrot.slane %v3700_v38, 1  ;;  %v3705_v54 = vrot.slane %v3703_v40, 2  ;;  %v4195_v31 = vld [vmem:[#allocation2 + $0x8] sm:$0xe0]  ;;  %v3936_v38 = vld [vmem:[#allocation2 + $0x20] sm:$0xf] }
 0x463   : > { %v3706_v0 = vor.u32 %v3705_v54, %v3702_v53  ;;  %v3940_v54 = vpack.c.bf16 %v3936_v38, %v3936_v38 }
 0x464   : > { %3632 = vmatpush1.bf16.msra.mxu0 %v9629_v48  ;;  %v3692_v48 = vshrl.u32 %v3654_v35, 16 }
 0x465   : > { %3633 = vmatprep.subr.bf16.mxu0 %v9634_v49  ;;  %v3695_v49 = vshll.u32 %v3654_v35, 16  ;;  %v9727_v35 = vld [vmem:[#allocation6 + $0x4e4] ss:$8 sps:$4 sm:$0xff]  }
 0x466   : > { %v3694_v60 = vrot.slane %v3692_v48, 1  ;;  %v9725_v48 = vld [vmem:[#allocation6 + $0x4e0] ss:$8 sps:$4 sm:$0xff]  }
 0x468   : > { %3634 = vmatpush1.bf16.msra.mxu0 %v9632_v59  ;;  %v9680_v59 = vld [vmem:[#allocation6 + $0x3f0] ss:$8 sps:$4 sm:$0xff]  }
 0x469   : > { %3887 = vmatprep.subr.bf16.mxu0 %v9637_v61  ;;  %v3697_v61 = vrot.slane %v3695_v49, 2  ;;  %v9730_v49 = vld [vmem:[#allocation6 + $0x4f4] ss:$8 sps:$4 sm:$0xff]  }
 0x46b   : > { %3636 = vmatmul.mubr.bf16.vlgmr.msra.gmra.mrb[8].mxu0 %v3437_v7  ;;  %v3698_v3 = vor.u32 %v3697_v61, %v3694_v60  ;;  %v3938_v60 = vpack.c.bf16 %v11546_v57, %v3934_v51  ;;  %v9733_v61 = vld [vmem:[#allocation6 + $0x504] ss:$8 sps:$4 sm:$0xff]   ;;  %v4481_v51 = vld [vmem:[#allocation2 + $0x28] sm:$0x3f] }
 0x46c   : > { %3888 = vmatpush1.bf16.msra.mxu0 %v9635_v4  ;;  %3919 = vmatprep.mubr.bf16.mxu0 %v3724_v8  ;;  %v9683_v4 = vld [vmem:[#allocation6 + $0x400] ss:$8 sps:$4 sm:$0xff]   ;;  %v3984_v8 = vsel %vm2031_vm8, %v3982_v5, %v3983_v2 }
 0x46d   : > { %3889 = vmatprep.subr.bf16.mxu0 %v9640_v6  ;;  %v9688_v6 = vld [vmem:[#allocation6 + $0x414] ss:$8 sps:$4 sm:$0xff]   ;;  %v3707_v7 = vsel %vm1742_vm7, %v3698_v3, %v3706_v0  ;;  %v3980_v0 = vrot.slane %v3940_v54, 2  ;;  %v3979_v3 = vrot.slane %v3938_v60, 2 }
 0x470   : > { %3890 = vmatpush1.bf16.msra.mxu0 %v9638_v9  ;;  %v9686_v9 = vld [vmem:[#allocation6 + $0x410] ss:$8 sps:$4 sm:$0xff]  }
 0x471   : > { %3891 = vmatprep.subr.bf16.mxu0 %v9643_v12  ;;  %v9691_v12 = vld [vmem:[#allocation6 + $0x424] ss:$8 sps:$4 sm:$0xff]  }
 0x474   : > { %3892 = vmatpush1.bf16.msra.mxu0 %v9641_v10  ;;  %v9689_v10 = vld [vmem:[#allocation6 + $0x420] ss:$8 sps:$4 sm:$0xff]  }
 0x475   : > { %3893 = vmatprep.subr.bf16.mxu0 %v9646_v13  ;;  %v9694_v13 = vld [vmem:[#allocation6 + $0x434] ss:$8 sps:$4 sm:$0xff]  }
 0x478   : > { %3894 = vmatpush1.bf16.msra.mxu0 %v9644_v46  ;;  %v9692_v46 = vld [vmem:[#allocation6 + $0x430] ss:$8 sps:$4 sm:$0xff]  }
 0x479   : > { %3895 = vmatprep.subr.bf16.mxu0 %v9649_v14  ;;  %v9697_v14 = vld [vmem:[#allocation6 + $0x444] ss:$8 sps:$4 sm:$0xff]  }
 0x47c   : > { %3896 = vmatpush1.bf16.msra.mxu0 %v9647_v11  ;;  %v9695_v11 = vld [vmem:[#allocation6 + $0x440] ss:$8 sps:$4 sm:$0xff]  }
 0x47d   : > { %3897 = vmatprep.subr.bf16.mxu0 %v9652_v15  ;;  %v9700_v15 = vld [vmem:[#allocation6 + $0x454] ss:$8 sps:$4 sm:$0xff]  }
 0x480   : > { %3898 = vmatpush1.bf16.msra.mxu0 %v9650_v16  ;;  %v9698_v16 = vld [vmem:[#allocation6 + $0x450] ss:$8 sps:$4 sm:$0xff]  }
 0x481   : > { %3899 = vmatprep.subr.bf16.mxu0 %v9655_v1  ;;  %v9703_v1 = vld [vmem:[#allocation6 + $0x464] ss:$8 sps:$4 sm:$0xff]  }
 0x484   : > { %3900 = vmatpush1.bf16.msra.mxu0 %v9653_v17  ;;  %v9701_v17 = vld [vmem:[#allocation6 + $0x460] ss:$8 sps:$4 sm:$0xff]  }
 0x485   : > { %3901 = vmatprep.subr.bf16.mxu0 %v9658_v18  ;;  %v9706_v18 = vld [vmem:[#allocation6 + $0x474] ss:$8 sps:$4 sm:$0xff]  }
 0x488   : > { %3902 = vmatpush1.bf16.msra.mxu0 %v9656_v19  ;;  %v9704_v19 = vld [vmem:[#allocation6 + $0x470] ss:$8 sps:$4 sm:$0xff]  }
 0x489   : > { %3903 = vmatprep.subr.bf16.mxu0 %v9661_v20  ;;  %v9709_v20 = vld [vmem:[#allocation6 + $0x484] ss:$8 sps:$4 sm:$0xff]  }
 0x48c   : > { %3904 = vmatpush1.bf16.msra.mxu0 %v9659_v21  ;;  %v9707_v21 = vld [vmem:[#allocation6 + $0x480] ss:$8 sps:$4 sm:$0xff]  }
 0x48d   : > { %3905 = vmatprep.subr.bf16.mxu0 %v9664_v22  ;;  %v9712_v22 = vld [vmem:[#allocation6 + $0x494] ss:$8 sps:$4 sm:$0xff]  }
 0x490   : > { %3906 = vmatpush1.bf16.msra.mxu0 %v9662_v23  ;;  %v9710_v23 = vld [vmem:[#allocation6 + $0x490] ss:$8 sps:$4 sm:$0xff]  }
 0x491   : > { %3907 = vmatprep.subr.bf16.mxu0 %v9667_v24  ;;  %v9715_v24 = vld [vmem:[#allocation6 + $0x4a4] ss:$8 sps:$4 sm:$0xff]  }
 0x494   : > { %3908 = vmatpush1.bf16.msra.mxu0 %v9665_v50  ;;  %v9713_v50 = vld [vmem:[#allocation6 + $0x4a0] ss:$8 sps:$4 sm:$0xff]  }
 0x495   : > { %3909 = vmatprep.subr.bf16.mxu0 %v9670_v25  ;;  %v9718_v25 = vld [vmem:[#allocation6 + $0x4b4] ss:$8 sps:$4 sm:$0xff]  }
 0x498   : > { %3910 = vmatpush1.bf16.msra.mxu0 %v9668_v26  ;;  %v9716_v26 = vld [vmem:[#allocation6 + $0x4b0] ss:$8 sps:$4 sm:$0xff]  }
 0x499   : > { %3911 = vmatprep.subr.bf16.mxu0 %v9673_v27  ;;  %v9721_v27 = vld [vmem:[#allocation6 + $0x4c4] ss:$8 sps:$4 sm:$0xff]  }
 0x49c   : > { %3912 = vmatpush1.bf16.msra.mxu0 %v9671_v29  ;;  %v4197_v29 = vld [vmem:[#allocation2 + $0x28] sm:$0x1f] }
 0x49d   : > { %3913 = vmatprep.subr.bf16.mxu0 %v9676_v30  ;;  %v9724_v30 = vld [vmem:[#allocation6 + $0x4d4] ss:$8 sps:$4 sm:$0xff]   ;;  %v4201_v32 = vpack.c.bf16 %v4197_v29, %v4197_v29  ;;  %v9767_v29 = vld [vmem:[#allocation6 + $0x5c0] ss:$8 sps:$4 sm:$0xff]  }
 0x49f   : > { %v4261_v40 = vshrl.u32 %v4201_v32, 16 }
 0x4a0   : > { %3914 = vmatpush1.bf16.msra.mxu0 %v9674_v34  ;;  %v9722_v34 = vld [vmem:[#allocation6 + $0x4d0] ss:$8 sps:$4 sm:$0xff]  }
 0x4a1   : > { %3915 = vmatprep.subr.bf16.mxu0 %v9679_v37  ;;  %v4199_v37 = vpack.c.bf16 %v11549_v58, %v4195_v31  ;;  %v4263_v55 = vrot.slane %v4261_v40, 2  ;;  %v4194_v31 = vld [vmem:[#allocation2] sm:$0xe0] }
 0x4a3   : > { %v4256_v53 = vshll.u32 %v4199_v37, 16 }
 0x4a4   : > { %3916 = vmatpush1.bf16.msra.mxu0 %v9677_v42  ;;  %v4264_v42 = vshll.u32 %v4201_v32, 16 }
 0x4a5   : > { %3917 = vmatprep.subr.bf16.mxu0 %v9682_v52  ;;  %v4253_v52 = vshrl.u32 %v4199_v37, 16  ;;  %v4258_v63 = vrot.slane %v4256_v53, 3  ;;  %v9775_v37 = vld [vmem:[#allocation6 + $0x5e4] ss:$8 sps:$4 sm:$0xff]  }
 0x4a6   : > { %v4266_v56 = vrot.slane %v4264_v42, 3  ;;  %v9773_v42 = vld [vmem:[#allocation6 + $0x5e0] ss:$8 sps:$4 sm:$0xff]  }
 0x4a8   : > { %3918 = vmatpush1.bf16.msra.mxu0 %v9680_v59  ;;  %v9728_v59 = vld [vmem:[#allocation6 + $0x4f0] ss:$8 sps:$4 sm:$0xff]   ;;  %v4267_v2 = vor.u32 %v4266_v56, %v4263_v55  ;;  %v4479_v55 = vld [vmem:[#allocation2 + $0x8] sm:$0xc0]  ;;  %v4485_v56 = vpack.c.bf16 %v4481_v51, %v4481_v51 }
 0x4a9   : > { %4147 = vmatprep.subr.bf16.mxu0 %v9685_v62  ;;  %v4255_v62 = vrot.slane %v4253_v52, 2  ;;  %v9778_v52 = vld [vmem:[#allocation6 + $0x5f4] ss:$8 sps:$4 sm:$0xff]   ;;  %v2856_v51 = vld [vmem:[%s11983_s6] sm:$0x3] }
 0x4ab   : > { %3920 = vmatmul.mubr.bf16.vlgmr.msra.gmra.mrb[8].mxu0 %v3707_v7  ;;  %v4259_v5 = vor.u32 %v4258_v63, %v4255_v62  ;;  %v3981_v7 = vsel %vm2031_vm8, %v3979_v3, %v3980_v0  ;;  %v9781_v62 = vld [vmem:[#allocation6 + $0x604] ss:$8 sps:$4 sm:$0xff]   ;;  %v4483_v63 = vpack.c.bf16 %v11549_v58, %v4479_v55  ;;  %v9785_v58 = vld [vmem:[#allocation6 + $0x620] ss:$8 sps:$4 sm:$0xff]  }
 0x4ac   : > { %4148 = vmatpush1.bf16.msra.mxu0 %v9683_v4  ;;  %4179 = vmatprep.mubr.bf16.mxu0 %v3984_v8  ;;  %v9731_v4 = vld [vmem:[#allocation6 + $0x500] ss:$8 sps:$4 sm:$0xff]  }
 0x4ad   : > { %4149 = vmatprep.subr.bf16.mxu0 %v9688_v6  ;;  %v9736_v6 = vld [vmem:[#allocation6 + $0x514] ss:$8 sps:$4 sm:$0xff]   ;;  %v4268_v8 = vsel %vm2288_vm9, %v4259_v5, %v4267_v2  ;;  %v4527_v2 = vrot.slane %v4485_v56, 3  ;;  %v4526_v5 = vrot.slane %v4483_v63, 3 }
 0x4b0   : > { %4150 = vmatpush1.bf16.msra.mxu0 %v9686_v9  ;;  %v9734_v9 = vld [vmem:[#allocation6 + $0x510] ss:$8 sps:$4 sm:$0xff]  }
 0x4b1   : > { %4151 = vmatprep.subr.bf16.mxu0 %v9691_v12  ;;  %v9739_v12 = vld [vmem:[#allocation6 + $0x524] ss:$8 sps:$4 sm:$0xff]  }
 0x4b4   : > { %4152 = vmatpush1.bf16.msra.mxu0 %v9689_v10  ;;  %v9737_v10 = vld [vmem:[#allocation6 + $0x520] ss:$8 sps:$4 sm:$0xff]  }
 0x4b5   : > { %4153 = vmatprep.subr.bf16.mxu0 %v9694_v13  ;;  %v9742_v13 = vld [vmem:[#allocation6 + $0x534] ss:$8 sps:$4 sm:$0xff]  }
 0x4b8   : > { %4154 = vmatpush1.bf16.msra.mxu0 %v9692_v46  ;;  %v9740_v46 = vld [vmem:[#allocation6 + $0x530] ss:$8 sps:$4 sm:$0xff]  }
 0x4b9   : > { %4155 = vmatprep.subr.bf16.mxu0 %v9697_v14  ;;  %v9745_v14 = vld [vmem:[#allocation6 + $0x544] ss:$8 sps:$4 sm:$0xff]  }
 0x4bc   : > { %4156 = vmatpush1.bf16.msra.mxu0 %v9695_v11  ;;  %v9743_v11 = vld [vmem:[#allocation6 + $0x540] ss:$8 sps:$4 sm:$0xff]  }
 0x4bd   : > { %4157 = vmatprep.subr.bf16.mxu0 %v9700_v15  ;;  %v9748_v15 = vld [vmem:[#allocation6 + $0x554] ss:$8 sps:$4 sm:$0xff]  }
 0x4c0   : > { %4158 = vmatpush1.bf16.msra.mxu0 %v9698_v16  ;;  %v9746_v16 = vld [vmem:[#allocation6 + $0x550] ss:$8 sps:$4 sm:$0xff]  }
 0x4c1   : > { %4159 = vmatprep.subr.bf16.mxu0 %v9703_v1  ;;  %v9751_v1 = vld [vmem:[#allocation6 + $0x564] ss:$8 sps:$4 sm:$0xff]  }
 0x4c4   : > { %4160 = vmatpush1.bf16.msra.mxu0 %v9701_v17  ;;  %v9749_v17 = vld [vmem:[#allocation6 + $0x560] ss:$8 sps:$4 sm:$0xff]  }
 0x4c5   : > { %4161 = vmatprep.subr.bf16.mxu0 %v9706_v18  ;;  %v9754_v18 = vld [vmem:[#allocation6 + $0x574] ss:$8 sps:$4 sm:$0xff]  }
 0x4c8   : > { %4162 = vmatpush1.bf16.msra.mxu0 %v9704_v19  ;;  %v9752_v19 = vld [vmem:[#allocation6 + $0x570] ss:$8 sps:$4 sm:$0xff]  }
 0x4c9   : > { %4163 = vmatprep.subr.bf16.mxu0 %v9709_v20  ;;  %v9757_v20 = vld [vmem:[#allocation6 + $0x584] ss:$8 sps:$4 sm:$0xff]  }
 0x4cc   : > { %4164 = vmatpush1.bf16.msra.mxu0 %v9707_v21  ;;  %v9755_v21 = vld [vmem:[#allocation6 + $0x580] ss:$8 sps:$4 sm:$0xff]  }
 0x4cd   : > { %4165 = vmatprep.subr.bf16.mxu0 %v9712_v22  ;;  %v9760_v22 = vld [vmem:[#allocation6 + $0x594] ss:$8 sps:$4 sm:$0xff]  }
 0x4d0   : > { %4166 = vmatpush1.bf16.msra.mxu0 %v9710_v23  ;;  %v9758_v23 = vld [vmem:[#allocation6 + $0x590] ss:$8 sps:$4 sm:$0xff]  }
 0x4d1   : > { %4167 = vmatprep.subr.bf16.mxu0 %v9715_v24  ;;  %v9763_v24 = vld [vmem:[#allocation6 + $0x5a4] ss:$8 sps:$4 sm:$0xff]  }
 0x4d4   : > { %4168 = vmatpush1.bf16.msra.mxu0 %v9713_v50  ;;  %v9761_v50 = vld [vmem:[#allocation6 + $0x5a0] ss:$8 sps:$4 sm:$0xff]  }
 0x4d5   : > { %4169 = vmatprep.subr.bf16.mxu0 %v9718_v25  ;;  %v9766_v25 = vld [vmem:[#allocation6 + $0x5b4] ss:$8 sps:$4 sm:$0xff]  }
 0x4d8   : > { %4170 = vmatpush1.bf16.msra.mxu0 %v9716_v26  ;;  %v9764_v26 = vld [vmem:[#allocation6 + $0x5b0] ss:$8 sps:$4 sm:$0xff]  }
 0x4d9   : > { %4171 = vmatprep.subr.bf16.mxu0 %v9721_v27  ;;  %v9769_v27 = vld [vmem:[#allocation6 + $0x5c4] ss:$8 sps:$4 sm:$0xff]  }
 0x4dc   : > { %4172 = vmatpush1.bf16.msra.mxu0 %v9719_v28  ;;  %v4196_v28 = vld [vmem:[#allocation2 + $0x20] sm:$0x1f] }
 0x4dd   : > { %4173 = vmatprep.subr.bf16.mxu0 %v9724_v30  ;;  %v9772_v30 = vld [vmem:[#allocation6 + $0x5d4] ss:$8 sps:$4 sm:$0xff]   ;;  %v4200_v32 = vpack.c.bf16 %v4196_v28, %v4196_v28 }
 0x4de   : > { %v9820_v28 = vld [vmem:[#allocation6 + $0x6d4] ss:$8 sps:$4 sm:$0xff]  }
 0x4df   : > { %v4244_v38 = vshrl.u32 %v4200_v32, 16  ;;  %v4247_v40 = vshll.u32 %v4200_v32, 16  ;;  %v9821_v32 = vld [vmem:[#allocation6 + $0x6e0] ss:$8 sps:$4 sm:$0xff]  }
 0x4e0   : > { %4174 = vmatpush1.bf16.msra.mxu0 %v9722_v34  ;;  %v9770_v34 = vld [vmem:[#allocation6 + $0x5d0] ss:$8 sps:$4 sm:$0xff]  }
 0x4e1   : > { %4175 = vmatprep.subr.bf16.mxu0 %v9727_v35  ;;  %v4198_v35 = vpack.c.bf16 %v11546_v57, %v4194_v31  ;;  %v4246_v53 = vrot.slane %v4244_v38, 2  ;;  %v4249_v54 = vrot.slane %v4247_v40, 3  ;;  %v4480_v31 = vld [vmem:[#allocation2 + $0x20] sm:$0x3f] }
 0x4e2   : > { %v9824_v38 = vld [vmem:[#allocation6 + $0x6f0] ss:$8 sps:$4 sm:$0xff]  }
 0x4e3   : > { %v4250_v0 = vor.u32 %v4249_v54, %v4246_v53  ;;  %v4746_v53 = vrot.slane %v2856_v51, %v11005_v47 }
 0x4e4   : > { %4176 = vmatpush1.bf16.msra.mxu0 %v9725_v48  ;;  %v4236_v48 = vshrl.u32 %v4198_v35, 16 }
 0x4e5   : > { %4177 = vmatprep.subr.bf16.mxu0 %v9730_v49  ;;  %v4239_v49 = vshll.u32 %v4198_v35, 16  ;;  %v4478_v35 = vld [vmem:[#allocation2] sm:$0xc0] }
 0x4e6   : > { %v4238_v60 = vrot.slane %v4236_v48, 2  ;;  %v4482_v40 = vpack.c.bf16 %v11546_v57, %v4478_v35 }
 0x4e8   : > { %4178 = vmatpush1.bf16.msra.mxu0 %v9728_v59  ;;  %v9776_v59 = vld [vmem:[#allocation6 + $0x5f0] ss:$8 sps:$4 sm:$0xff]   ;;  %v4523_v48 = vrot.slane %v4482_v40, 3 }
 0x4e9   : > { %4431 = vmatprep.subr.bf16.mxu0 %v9733_v61  ;;  %v4241_v61 = vrot.slane %v4239_v49, 3 }
 0x4eb   : > { %4180 = vmatmul.mubr.bf16.vlgmr.msra.gmra.mrb[8].mxu0 %v3981_v7  ;;  %v4242_v3 = vor.u32 %v4241_v61, %v4238_v60 }
 0x4ec   : > { %4432 = vmatpush1.bf16.msra.mxu0 %v9731_v4  ;;  %4463 = vmatprep.mubr.bf16.mxu0 %v4268_v8  ;;  %v9779_v4 = vld [vmem:[#allocation6 + $0x600] ss:$8 sps:$4 sm:$0xff]   ;;  %v4528_v8 = vsel %vm2577_vm10, %v4526_v5, %v4527_v2 }
 0x4ed   : > { %4433 = vmatprep.subr.bf16.mxu0 %v9736_v6  ;;  %v9784_v6 = vld [vmem:[#allocation6 + $0x614] ss:$8 sps:$4 sm:$0xff]   ;;  %v4251_v7 = vsel %vm2288_vm9, %v4242_v3, %v4250_v0 }
 0x4f0   : > { %4434 = vmatpush1.bf16.msra.mxu0 %v9734_v9  ;;  %v9782_v9 = vld [vmem:[#allocation6 + $0x610] ss:$8 sps:$4 sm:$0xff]  }
 0x4f1   : > { %4435 = vmatprep.subr.bf16.mxu0 %v9739_v12  ;;  %v9787_v12 = vld [vmem:[#allocation6 + $0x624] ss:$8 sps:$4 sm:$0xff]  }
 0x4f4   : > { %4436 = vmatpush1.bf16.msra.mxu0 %v9737_v10  ;;  %v9790_v10 = vld [vmem:[#allocation6 + $0x634] ss:$8 sps:$4 sm:$0xff]  }
 0x4f5   : > { %4437 = vmatprep.subr.bf16.mxu0 %v9742_v13  ;;  %v9788_v13 = vld [vmem:[#allocation6 + $0x630] ss:$8 sps:$4 sm:$0xff]  }
 0x4f8   : > { %4438 = vmatpush1.bf16.msra.mxu0 %v9740_v46  ;;  %v9793_v46 = vld [vmem:[#allocation6 + $0x644] ss:$8 sps:$4 sm:$0xff]  }
 0x4f9   : > { %4439 = vmatprep.subr.bf16.mxu0 %v9745_v14  ;;  %v9791_v14 = vld [vmem:[#allocation6 + $0x640] ss:$8 sps:$4 sm:$0xff]  }
 0x4fc   : > { %4440 = vmatpush1.bf16.msra.mxu0 %v9743_v11  ;;  %v9796_v11 = vld [vmem:[#allocation6 + $0x654] ss:$8 sps:$4 sm:$0xff]  }
 0x4fd   : > { %4441 = vmatprep.subr.bf16.mxu0 %v9748_v15  ;;  %v9794_v15 = vld [vmem:[#allocation6 + $0x650] ss:$8 sps:$4 sm:$0xff]  }
 0x500   : > { %4442 = vmatpush1.bf16.msra.mxu0 %v9746_v16  ;;  %v9799_v16 = vld [vmem:[#allocation6 + $0x664] ss:$8 sps:$4 sm:$0xff]  }
 0x501   : > { %4443 = vmatprep.subr.bf16.mxu0 %v9751_v1  ;;  %v9797_v1 = vld [vmem:[#allocation6 + $0x660] ss:$8 sps:$4 sm:$0xff]  }
 0x504   : > { %4444 = vmatpush1.bf16.msra.mxu0 %v9749_v17  ;;  %v9802_v17 = vld [vmem:[#allocation6 + $0x674] ss:$8 sps:$4 sm:$0xff]  }
 0x505   : > { %4445 = vmatprep.subr.bf16.mxu0 %v9754_v18  ;;  %v9800_v18 = vld [vmem:[#allocation6 + $0x670] ss:$8 sps:$4 sm:$0xff]  }
 0x508   : > { %4446 = vmatpush1.bf16.msra.mxu0 %v9752_v19  ;;  %v9805_v19 = vld [vmem:[#allocation6 + $0x684] ss:$8 sps:$4 sm:$0xff]  }
 0x509   : > { %4447 = vmatprep.subr.bf16.mxu0 %v9757_v20  ;;  %v9803_v20 = vld [vmem:[#allocation6 + $0x680] ss:$8 sps:$4 sm:$0xff]  }
 0x50c   : > { %4448 = vmatpush1.bf16.msra.mxu0 %v9755_v21  ;;  %v9808_v21 = vld [vmem:[#allocation6 + $0x694] ss:$8 sps:$4 sm:$0xff]  }
 0x50d   : > { %4449 = vmatprep.subr.bf16.mxu0 %v9760_v22  ;;  %v9806_v22 = vld [vmem:[#allocation6 + $0x690] ss:$8 sps:$4 sm:$0xff]  }
 0x510   : > { %4450 = vmatpush1.bf16.msra.mxu0 %v9758_v23  ;;  %v9811_v23 = vld [vmem:[#allocation6 + $0x6a4] ss:$8 sps:$4 sm:$0xff]  }
 0x511   : > { %4451 = vmatprep.subr.bf16.mxu0 %v9763_v24  ;;  %v9809_v24 = vld [vmem:[#allocation6 + $0x6a0] ss:$8 sps:$4 sm:$0xff]  }
 0x514   : > { %4452 = vmatpush1.bf16.msra.mxu0 %v9761_v50  ;;  %v9814_v50 = vld [vmem:[#allocation6 + $0x6b4] ss:$8 sps:$4 sm:$0xff]  }
 0x515   : > { %4453 = vmatprep.subr.bf16.mxu0 %v9766_v25  ;;  %v9812_v25 = vld [vmem:[#allocation6 + $0x6b0] ss:$8 sps:$4 sm:$0xff]  }
 0x518   : > { %4454 = vmatpush1.bf16.msra.mxu0 %v9764_v26  ;;  %v9817_v26 = vld [vmem:[#allocation6 + $0x6c4] ss:$8 sps:$4 sm:$0xff]  }
 0x519   : > { %4455 = vmatprep.subr.bf16.mxu0 %v9769_v27  ;;  %v9815_v27 = vld [vmem:[#allocation6 + $0x6c0] ss:$8 sps:$4 sm:$0xff]  }
 0x51c   : > { %4456 = vmatpush1.bf16.msra.mxu0 %v9767_v29  ;;  %v9818_v29 = vld [vmem:[#allocation6 + $0x6d0] ss:$8 sps:$4 sm:$0xff]  }
 0x51d   : > { %4457 = vmatprep.subr.bf16.mxu0 %v9772_v30  ;;  %v9823_v30 = vld [vmem:[#allocation6 + $0x6e4] ss:$8 sps:$4 sm:$0xff]  }
 0x520   : > { %4458 = vmatpush1.bf16.msra.mxu0 %v9770_v34  ;;  %v9826_v34 = vld [vmem:[#allocation6 + $0x6f4] ss:$8 sps:$4 sm:$0xff]  }
 0x521   : > { %4459 = vmatprep.subr.bf16.mxu0 %v9775_v37  ;;  %v4484_v37 = vpack.c.bf16 %v4480_v31, %v4480_v31 }
 0x524   : > { %4460 = vmatpush1.bf16.msra.mxu0 %v9773_v42  ;;  %v4524_v42 = vrot.slane %v4484_v37, 3 }
 0x525   : > { %4461 = vmatprep.subr.bf16.mxu0 %v9778_v52  ;;  %v4742_v52 = vrot.slane %v2856_v51, %v10999_v45  ;;  %v4890_v51 = vld [vmem:[%s11984_s7 + $0xa8] sm:$0xff] }
 0x526   : > { %v4525_v49 = vsel %vm2577_vm10, %v4523_v48, %v4524_v42 }
 0x528   : > { %4462 = vmatpush1.bf16.msra.mxu0 %v9776_v59 }
 0x529   : > { %4691 = vmatprep.subr.bf16.mxu0 %v9781_v62 }
 0x52b   : > { %4464 = vmatmul.mubr.bf16.vlgmr.msra.gmra.mrb[8].mxu0 %v4251_v7 }
 0x52c   : > { %4692 = vmatpush1.bf16.msra.mxu0 %v9779_v4  ;;  %4723 = vmatprep.mubr.bf16.mxu0 %v4528_v8 }
 0x52d   : > { %4693 = vmatprep.subr.bf16.mxu0 %v9784_v6 }
 0x530   : > { %4694 = vmatpush1.bf16.msra.mxu0 %v9782_v9 }
 0x531   : > { %4695 = vmatprep.subr.bf16.mxu0 %v9787_v12 }
 0x534   : > { %4696 = vmatpush1.bf16.msra.mxu0 %v9785_v58 }
 0x535   : > { %4697 = vmatprep.subr.bf16.mxu0 %v9790_v10 }
 0x538   : > { %4698 = vmatpush1.bf16.msra.mxu0 %v9788_v13 }
 0x539   : > { %4699 = vmatprep.subr.bf16.mxu0 %v9793_v46 }
 0x53c   : > { %4700 = vmatpush1.bf16.msra.mxu0 %v9791_v14 }
 0x53d   : > { %4701 = vmatprep.subr.bf16.mxu0 %v9796_v11 }
 0x540   : > { %4702 = vmatpush1.bf16.msra.mxu0 %v9794_v15 }
 0x541   : > { %4703 = vmatprep.subr.bf16.mxu0 %v9799_v16  ;;  %v4885_v16 = vld [vmem:[%s11984_s7 + $0x80] sm:$0xff] }
 0x544   : > { %4704 = vmatpush1.bf16.msra.mxu0 %v9797_v1  ;;  %v4886_v1 = vld [vmem:[%s11984_s7 + $0x88] sm:$0xff] }
 0x545   : > { %4705 = vmatprep.subr.bf16.mxu0 %v9802_v17  ;;  %v4869_v17 = vld [vmem:[%s11984_s7] sm:$0xff] }
 0x548   : > { %4706 = vmatpush1.bf16.msra.mxu0 %v9800_v18  ;;  %v8904_v18 = vpack.c.bf16 %v4886_v1, %v4885_v16  ;;  %v4878_v16 = vld [vmem:[%s11984_s7 + $0x48] sm:$0xff]  ;;  %v4895_v1 = vld [vmem:[%s11984_s7 + $0xd0] sm:$0xff] }
 0x549   : > { %4707 = vmatprep.subr.bf16.mxu0 %v9805_v19  ;;  %v4870_v19 = vld [vmem:[%s11984_s7 + $0x8] sm:$0xff] }
 0x54c   : > { %4708 = vmatpush1.bf16.msra.mxu0 %v9803_v20  ;;  %v8906_v20 = vpack.c.bf16 %v4870_v19, %v4869_v17  ;;  %v4896_v17 = vld [vmem:[%s11984_s7 + $0xd8] sm:$0xff] }
 0x54d   : > { %4709 = vmatprep.subr.bf16.mxu0 %v9808_v21  ;;  %v8924_v19 = vpack.c.bf16 %v4896_v17, %v4895_v1 }
 0x550   : > { %4710 = vmatpush1.bf16.msra.mxu0 %v9806_v22  ;;  %v4887_v22 = vld [vmem:[%s11984_s7 + $0x90] sm:$0xff] }
 0x551   : > { %4711 = vmatprep.subr.bf16.mxu0 %v9811_v23  ;;  %v4888_v23 = vld [vmem:[%s11984_s7 + $0x98] sm:$0xff] }
 0x554   : > { %4712 = vmatpush1.bf16.msra.mxu0 %v9809_v24  ;;  %v4871_v24 = vld [vmem:[%s11984_s7 + $0x10] sm:$0xff] }
 0x555   : > { %4713 = vmatprep.subr.bf16.mxu0 %v9814_v50  ;;  %v8908_v50 = vpack.c.bf16 %v4888_v23, %v4887_v22  ;;  %v4897_v22 = vld [vmem:[%s11984_s7 + $0xe0] sm:$0xff]  ;;  %v4898_v23 = vld [vmem:[%s11984_s7 + $0xe8] sm:$0xff] }
 0x558   : > { %4714 = vmatpush1.bf16.msra.mxu0 %v9812_v25  ;;  %v4872_v25 = vld [vmem:[%s11984_s7 + $0x18] sm:$0xff] }
 0x559   : > { %4715 = vmatprep.subr.bf16.mxu0 %v9817_v26 }
 0x55c   : > { %4716 = vmatpush1.bf16.msra.mxu0 %v9815_v27 }
 0x55d   : > { %4717 = vmatprep.subr.bf16.mxu0 %v9820_v28  ;;  %v8910_v28 = vpack.c.bf16 %v4872_v25, %v4871_v24  ;;  %v4881_v25 = vld [vmem:[%s11984_s7 + $0x60] sm:$0xff] }
 0x560   : > { %4718 = vmatpush1.bf16.msra.mxu0 %v9818_v29 }
 0x561   : > { %4719 = vmatprep.subr.bf16.mxu0 %v9823_v30 }
 0x564   : > { %4720 = vmatpush1.bf16.msra.mxu0 %v9821_v32 }
 0x565   : > { %4721 = vmatprep.subr.bf16.mxu0 %v9826_v34 }
 0x568   : > { %4722 = vmatpush1.bf16.msra.mxu0 %v9824_v38 }
 0x569   : > { %8905 = vmatprep.subr.bf16.mxu0 %v8904_v18 }
 0x56b   : > { %4724 = vmatmul.mubr.bf16.vlgmr.msra.gmra.mrb[8].mxu0 %v4525_v49  ;;  %v4889_v49 = vld [vmem:[%s11984_s7 + $0xa0] sm:$0xff] }
 0x56c   : > { %8907 = vmatpush3.bf16.msra.mxu0 %v8906_v20  ;;  %v4879_v20 = vld [vmem:[%s11984_s7 + $0x50] sm:$0xff] }
 0x56d   : > { %8909 = vmatprep.subr.bf16.mxu0 %v8908_v50  ;;  %v8928_v50 = vpack.c.bf16 %v4898_v23, %v4897_v22 }
 0x570   : > { %8911 = vmatpush3.bf16.msra.mxu0 %v8910_v28  ;;  %v4900_v28 = vld [vmem:[%s11984_s7 + $0xf8] sm:$0xff] }
 0x63e   : > { %v4725_v54 = vpop.f32.mrb[8].mxu0 }
 0x63f   : > { %v4749_v55 = vadd.f32 %v4742_v52, %v4725_v54  ;;  %v4727_v56 = vpop.f32.mrb[9].mxu0 }
 0x640   : > { %v4750_v59 = vadd.f32 %v4746_v53, %v4727_v56  ;;  %v4729_v57 = vpop.f32.mrb[10].mxu0  ;;  %v4873_v56 = vld [vmem:[%s11984_s7 + $0x20] sm:$0xff] }
 0x641   : > { %v11583_v60 = vadd.f32 %v4749_v55, %v11009_v33  ;;  %v4751_v61 = vadd.f32 %v4742_v52, %v4729_v57  ;;  %v4731_v62 = vpop.f32.mrb[11].mxu0  ;;  %v11599_v33 = vand.u32 127, %v643_v43  ;;  %v8912_v55 = vpack.c.bf16 %v4890_v51, %v4889_v49 }
 0x642   : > { %v11586_v63 = vadd.f32 %v4750_v59, %v11012_v36  ;;  %v4752_v0 = vadd.f32 %v4746_v53, %v4731_v62  ;;  %v4874_v59 = vld [vmem:[%s11984_s7 + $0x28] sm:$0xff] }
 0x643   : > { %4757 = vrot.lane.b32.xlu0 %v11583_v60, %s10505_s22  ;;  %v11591_v2 = vadd.f32 %v4751_v61, %v11015_v39  ;;  %vm4767_vm15 = vcmp.lt.s32.totalorder %v11599_v33, 16  ;;  %vm4788_vm0 = vcmp.lt.s32.totalorder %v11599_v33, 32  ;;  %v8914_v61 = vpack.c.bf16 %v4874_v59, %v4873_v56  ;;  %8913 = vmatprep.subr.bf16.mxu0 %v8912_v55 }
 0x644   : > { %4761 = vrot.lane.b32.xlu1 %v11586_v63, %s10505_s22  ;;  %v11594_v3 = vadd.f32 %v4752_v0, %v11018_v41  ;;  %vm4821_vm2 = vcmp.lt.s32.totalorder %v11599_v33, 64  ;;  %vm5120_vm14 = vcmp.lt.s32.totalorder %v11599_v33, 127 }
 0x645   : > { %8915 = vmatpush3.bf16.msra.mxu0 %v8914_v61 }
 0x647   : > { %4759 = vrot.lane.b32.xlu0 %v11591_v2, %s10505_s22 }
 0x648   : > { %4763 = vrot.lane.b32.xlu1 %v11594_v3, %s10505_s22  ;;  %s10513_s22 = smov 4  }
 0x6b5   : > { %v4758_v36 = vpop.permute.xlu0 %4757 }
 0x6b6   : > { %v4762_v4 = vpop.permute.xlu1 %4761 }
 0x6b7   : > { %v4770_v5 = vsel %vm4767_vm15, %v4762_v4, %v4758_v36  ;;  %v4768_v7 = vsel %vm4767_vm15, %v4758_v36, %v4762_v4 }
 0x6b8   : > { %v4772_v6 = vadd.f32 %v4770_v5, %v11583_v60  ;;  %v4773_v9 = vadd.f32 %v4768_v7, %v11586_v63  ;;  %v11609_v10 = vmax.f32 %v11583_v60, %v4770_v5  ;;  %v4777_v11 = vmax.f32 %v11586_v63, %v4768_v7  ;;  %v4891_v5 = vld [vmem:[%s11984_s7 + $0xb0] sm:$0xff] }
 0x6b9   : > { %v4760_v39 = vpop.permute.xlu0 %4759  ;;  %v4875_v7 = vld [vmem:[%s11984_s7 + $0x30] sm:$0xff] }
 0x6ba   : > { %4780 = vrot.lane.b32.xlu0 %v4772_v6, %s10506_s25  ;;  %v4764_v41 = vpop.permute.xlu1 %4763 }
 0x6bb   : > { %v4771_v8 = vsel %vm4767_vm15, %v4764_v41, %v4760_v39  ;;  %v4769_v58 = vsel %vm4767_vm15, %v4760_v39, %v4764_v41  ;;  %vm5137_vm15 = vcmp.lt.s32.totalorder %v11599_v33, 1 }
 0x6bc   : > { %v4774_v12 = vadd.f32 %v4771_v8, %v11591_v2  ;;  %v11606_v43 = vmax.f32 %v11591_v2, %v4771_v8  ;;  %v4775_v13 = vadd.f32 %v4769_v58, %v11594_v3  ;;  %v11613_v46 = vmax.f32 %v11594_v3, %v4769_v58  ;;  %v4893_v58 = vld [vmem:[%s11984_s7 + $0xc0] sm:$0xff] }
 0x6be   : > { %4784 = vrot.lane.b32.xlu0 %v4773_v9, %s10506_s25  ;;  %4782 = vrot.lane.b32.xlu1 %v4774_v12, %s10506_s25  ;;  %v9086_v14 = vpack.i.bf16 %v11606_v43, %v11609_v10  ;;  %v9091_v15 = vpack.i.bf16 %v11613_v46, %v4777_v11 }
 0x6c2   : > { %9087 = vrot.lane.b32.xlu0 %v9086_v14, %s10506_s25  ;;  %4786 = vrot.lane.b32.xlu1 %v4775_v13, %s10506_s25 }
 0x6c6   : > { %9092 = vrot.lane.b32.xlu1 %v9091_v15, %s10506_s25  ;;  %v4877_v15 = vld [vmem:[%s11984_s7 + $0x40] sm:$0xff]  ;;  %s10514_s25 = smov 120  }
 0x6c7   : > { %v8922_v18 = vpack.c.bf16 %v4878_v16, %v4877_v15 }
 0x72c   : > { %v4781_v21 = vpop.permute.xlu0 %4780 }
 0x730   : > { %v4785_v26 = vpop.permute.xlu0 %4784  ;;  %v4783_v27 = vpop.permute.xlu1 %4782 }
 0x731   : > { %v4791_v29 = vsel %vm4788_vm0, %v4785_v26, %v4781_v21  ;;  %v4789_v31 = vsel %vm4788_vm0, %v4781_v21, %v4785_v26  ;;  %v4880_v21 = vld [vmem:[%s11984_s7 + $0x58] sm:$0xff]  ;;  %v4882_v26 = vld [vmem:[%s11984_s7 + $0x68] sm:$0xff] }
 0x732   : > { %v11646_v30 = vadd.f32 %v4791_v29, %v4772_v6  ;;  %v11654_v37 = vadd.f32 %v4789_v31, %v4773_v9  ;;  %v4892_v6 = vld [vmem:[%s11984_s7 + $0xb8] sm:$0xff]  ;;  %v8926_v24 = vpack.c.bf16 %v4880_v21, %v4879_v20  ;;  %v8930_v29 = vpack.c.bf16 %v4882_v26, %v4881_v25 }
 0x734   : > { %4813 = vrot.lane.b32.xlu0 %v11646_v30, %s10507_s30  ;;  %v4787_v32 = vpop.permute.xlu1 %4786  ;;  %v9088_v34 = vpop.permute.xlu0 %9087 }
 0x735   : > { %v4792_v35 = vsel %vm4788_vm0, %v4787_v32, %v4783_v27  ;;  %v4790_v40 = vsel %vm4788_vm0, %v4783_v27, %v4787_v32  ;;  %v9090_v42 = vunpack.i.h.bf16 %v9088_v34  ;;  %v9089_v52 = vunpack.i.l.bf16 %v9088_v34  ;;  %v4899_v27 = vld [vmem:[%s11984_s7 + $0xf0] sm:$0xff]  ;;  %v4884_v34 = vld [vmem:[%s11984_s7 + $0x78] sm:$0xff] }
 0x736   : > { %v11656_v38 = vadd.f32 %v4792_v35, %v4774_v12  ;;  %v11676_v57 = vadd.f32 %v4790_v40, %v4775_v13  ;;  %v4876_v12 = vld [vmem:[%s11984_s7 + $0x38] sm:$0xff]  ;;  %v8932_v31 = vpack.c.bf16 %v4900_v28, %v4899_v27  ;;  %v4883_v32 = vld [vmem:[%s11984_s7 + $0x70] sm:$0xff] }
 0x737   : > { %v8918_v13 = vpack.c.bf16 %v4876_v12, %v4875_v7  ;;  %v8934_v35 = vpack.c.bf16 %v4884_v34, %v4883_v32  ;;  %v9829_v40 = vld [vmem:[#allocation11 + $0x4] ss:$8 sps:$4 sm:$0xff]   ;;  %v9833_v34 = vld [vmem:[#allocation11 + $0x20] ss:$8 sps:$4 sm:$0xff]  }
 0x738   : > { %4817 = vrot.lane.b32.xlu0 %v11654_v37, %s10507_s30  ;;  %4815 = vrot.lane.b32.xlu1 %v11656_v38, %s10507_s30  ;;  %v9093_v48 = vpop.permute.xlu1 %9092  ;;  %v9835_v32 = vld [vmem:[#allocation11 + $0x24] ss:$8 sps:$4 sm:$0xff]  }
 0x739   : > { %v9095_v53 = vunpack.i.h.bf16 %v9093_v48  ;;  %v9094_v54 = vunpack.i.l.bf16 %v9093_v48 }
 0x73b   : > { %v4806_v62 = vsel %vm4788_vm0, %v9090_v42, %v9095_v53  ;;  %v4808_v0 = vsel %vm4788_vm0, %v9095_v53, %v9090_v42  ;;  %v4805_v36 = vsel %vm4788_vm0, %v9089_v52, %v9094_v54  ;;  %v4807_v4 = vsel %vm4788_vm0, %v9094_v54, %v9089_v52  ;;  %v4979_v42 = vld [vmem:[%s11986_s9] sm:$0xff] }
 0x73c   : > { %4819 = vrot.lane.b32.xlu1 %v11676_v57, %s10507_s30  ;;  %v11698_v39 = vmax.f32 %v11609_v10, %v4807_v4  ;;  %v11701_v41 = vmax.f32 %v11606_v43, %v4808_v0  ;;  %v11703_v8 = vmax.f32 %v4777_v11, %v4805_v36  ;;  %v11706_v9 = vmax.f32 %v11613_v46, %v4806_v62  ;;  %v4894_v10 = vld [vmem:[%s11984_s7 + $0xc8] sm:$0xff] }
 0x73d   : > { %v8916_v43 = vpack.c.bf16 %v4892_v6, %v4891_v5  ;;  %v8920_v11 = vpack.c.bf16 %v4894_v10, %v4893_v58  ;;  %v4993_v48 = vcombine.high %v4979_v42, %v4979_v42  ;;  %vm5154_vm0 = vcmp.lt.s32.totalorder %v11599_v33, 126 }
 0x73e   : > { %v9096_v14 = vpack.i.bf16 %v11701_v41, %v11698_v39  ;;  %v9101_v46 = vpack.i.bf16 %v11706_v9, %v11703_v8 }
 0x73f   : > { %8917 = vmatprep.subr.bf16.mxu0 %v8916_v43  ;;  %8569 = vmatprep.subr.msk.mxu1 %vm4998_vm1, %v4993_v48  ;;  %v9844_v48 = vld [vmem:[#allocation11 + $0x54] ss:$8 sps:$4 sm:$0xff]  }
 0x740   : > { %9097 = vrot.lane.b32.xlu0 %v9096_v14, %s10507_s30  ;;  %9102 = vrot.lane.b32.xlu1 %v9101_v46, %s10507_s30  ;;  %s12019_s30 = sld [smem:[#allocation19_spill]] }
 0x741   : > { %8919 = vmatpush3.bf16.msra.mxu0 %v8918_v13  ;;  %8570 = vmatpush1.msk.msra.mxu1 %vm4998_vm1, %v4979_v42  ;;  %v9839_v42 = vld [vmem:[#allocation11 + $0x40] ss:$8 sps:$4 sm:$0xff]   ;;  %vm5171_vm1 = vcmp.lt.s32.totalorder %v11599_v33, 2 }
 0x742   : > { %8921 = vmatprep.subr.bf16.mxu0 %v8920_v11 }
 0x745   : > { %8923 = vmatpush3.bf16.msra.mxu0 %v8922_v18 }
 0x746   : > { %8925 = vmatprep.subr.bf16.mxu0 %v8924_v19  ;;  %s596_s20 = scalar_lea.vmem %s12019_s30, %s8867_s12 }
 0x749   : > { %8927 = vmatpush3.bf16.msra.mxu0 %v8926_v24 }
 0x74a   : > { %8929 = vmatprep.subr.bf16.mxu0 %v8928_v50 }
 0x74d   : > { %8931 = vmatpush3.bf16.msra.mxu0 %v8930_v29  ;;  %v7253_v29 = vpack.c.bf16 %v11594_v3, %v11586_v63 }
 0x74e   : > { %8933 = vmatprep.subr.bf16.mxu0 %v8932_v31  ;;  %v9830_v31 = vld [vmem:[#allocation11 + $0x10] ss:$8 sps:$4 sm:$0xff]  }
 0x751   : > { %8935 = vmatpush3.bf16.msra.mxu0 %v8934_v35  ;;  %v9838_v35 = vld [vmem:[#allocation11 + $0x34] ss:$8 sps:$4 sm:$0xff]  }
 0x752   : > { %7446 = vmatprep.subr.bf16.mxu0 %v9829_v40  ;;  %v9841_v40 = vld [vmem:[#allocation11 + $0x44] ss:$8 sps:$4 sm:$0xff]  }
 0x7a6   : > { %v4814_v49 = vpop.permute.xlu0 %4813 }
 0x7aa   : > { %v4818_v51 = vpop.permute.xlu0 %4817  ;;  %v4816_v52 = vpop.permute.xlu1 %4815 }
 0x7ab   : > { %v4822_v53 = vsel %vm4821_vm2, %v4814_v49, %v4818_v51  ;;  %v4824_v54 = vsel %vm4821_vm2, %v4818_v51, %v4814_v49  ;;  %v9842_v49 = vld [vmem:[#allocation11 + $0x50] ss:$8 sps:$4 sm:$0xff]   ;;  %v9847_v51 = vld [vmem:[#allocation11 + $0x64] ss:$8 sps:$4 sm:$0xff]  }
 0x7ac   : > { %v4826_v55 = vadd.f32 %v4824_v54, %v11646_v30  ;;  %v4827_v56 = vadd.f32 %v4822_v53, %v11654_v37  ;;  %v9850_v53 = vld [vmem:[#allocation11 + $0x74] ss:$8 sps:$4 sm:$0xff]   ;;  %v9848_v54 = vld [vmem:[#allocation11 + $0x70] ss:$8 sps:$4 sm:$0xff]  }
 0x7ae   : > { %v4820_v59 = vpop.permute.xlu1 %4819  ;;  %v4846_v4 = vadd.f32 %v4827_v56, %v4826_v55  ;;  %v9853_v55 = vld [vmem:[#allocation11 + $0x84] ss:$8 sps:$4 sm:$0xff]   ;;  %v9851_v56 = vld [vmem:[#allocation11 + $0x80] ss:$8 sps:$4 sm:$0xff]  }
 0x7af   : > { %v4823_v61 = vsel %vm4821_vm2, %v4816_v52, %v4820_v59  ;;  %v4825_v62 = vsel %vm4821_vm2, %v4820_v59, %v4816_v52  ;;  %v9845_v52 = vld [vmem:[#allocation11 + $0x60] ss:$8 sps:$4 sm:$0xff]   ;;  %v9856_v59 = vld [vmem:[#allocation11 + $0x94] ss:$8 sps:$4 sm:$0xff]  }
 0x7b0   : > { %v4828_v0 = vadd.f32 %v4825_v62, %v11656_v38  ;;  %v4829_v36 = vadd.f32 %v4823_v61, %v11676_v57  ;;  %v9854_v61 = vld [vmem:[#allocation11 + $0x90] ss:$8 sps:$4 sm:$0xff]   ;;  %v9859_v62 = vld [vmem:[#allocation11 + $0xa4] ss:$8 sps:$4 sm:$0xff]  }
 0x7b2   : > { %v4847_v5 = vadd.f32 %v4829_v36, %v4828_v0  ;;  %v9098_v6 = vpop.permute.xlu0 %9097  ;;  %v9103_v7 = vpop.permute.xlu1 %9102  ;;  %v9857_v0 = vld [vmem:[#allocation11 + $0xa0] ss:$8 sps:$4 sm:$0xff]   ;;  %v9862_v36 = vld [vmem:[#allocation11 + $0xb4] ss:$8 sps:$4 sm:$0xff]  }
 0x7b3   : > { %v9100_v12 = vunpack.i.h.bf16 %v9098_v6  ;;  %v9099_v58 = vunpack.i.l.bf16 %v9098_v6  ;;  %v9105_v30 = vunpack.i.h.bf16 %v9103_v7  ;;  %v9104_v10 = vunpack.i.l.bf16 %v9103_v7  ;;  %v9863_v6 = vld [vmem:[#allocation11 + $0xc0] ss:$8 sps:$4 sm:$0xff]   ;;  %v9868_v7 = vld [vmem:[#allocation11 + $0xd4] ss:$8 sps:$4 sm:$0xff]  }
 0x7b4   : > { %v4850_v37 = vadd.f32 %v4847_v5, %v4846_v4  ;;  %v9860_v4 = vld [vmem:[#allocation11 + $0xb0] ss:$8 sps:$4 sm:$0xff]   ;;  %v9865_v5 = vld [vmem:[#allocation11 + $0xc4] ss:$8 sps:$4 sm:$0xff]  }
 0x7b5   : > { %v4839_v43 = vsel %vm4821_vm2, %v9100_v12, %v9105_v30  ;;  %v4841_v13 = vsel %vm4821_vm2, %v9105_v30, %v9100_v12  ;;  %v4838_v38 = vsel %vm4821_vm2, %v9099_v58, %v9104_v10  ;;  %v4840_v57 = vsel %vm4821_vm2, %v9104_v10, %v9099_v58  ;;  %v9866_v12 = vld [vmem:[#allocation11 + $0xd0] ss:$8 sps:$4 sm:$0xff]   ;;  %v9871_v58 = vld [vmem:[#allocation11 + $0xe4] ss:$8 sps:$4 sm:$0xff]   ;;  %v9869_v30 = vld [vmem:[#allocation11 + $0xe0] ss:$8 sps:$4 sm:$0xff]  }
 0x7b6   : > { %v4851_v14 = vrot.slane %v4850_v37, 4  ;;  %v4844_v46 = vmax.f32 %v11701_v41, %v4841_v13  ;;  %v4845_v11 = vmax.f32 %v11706_v9, %v4839_v43  ;;  %v4842_v15 = vmax.f32 %v11698_v39, %v4840_v57  ;;  %v9827_v39 = vld [vmem:[#allocation11] ss:$8 sps:$4 sm:$0xff]   ;;  %v9874_v10 = vld [vmem:[#allocation11 + $0xf4] ss:$8 sps:$4 sm:$0xff]  }
 0x7b7   : > { %v4843_v16 = vmax.f32 %v11703_v8, %v4838_v38  ;;  %v9832_v8 = vld [vmem:[#allocation11 + $0x14] ss:$8 sps:$4 sm:$0xff]   ;;  %v7252_v43 = vpack.c.bf16 %v11591_v2, %v11583_v60  ;;  %v8568_v38 = vld [vmem:[%s11985_s8] ss:$0 sm:$0xff]  ;;  %vm5188_vm2 = vcmp.lt.s32.totalorder %v11599_v33, 124 }
 0x7b8   : > { %v4852_v1 = vadd.f32 %v4851_v14, %v4850_v37  ;;  %v4849_v17 = vmax.f32 %v4844_v46, %v4845_v11  ;;  %v9872_v37 = vld [vmem:[#allocation11 + $0xf0] ss:$8 sps:$4 sm:$0xff]  }
 0x7b9   : > { %v4848_v18 = vmax.f32 %v4842_v15, %v4843_v16  ;;  %v4980_v15 = vld [vmem:[%s12013_s28] sm:$0x3] }
 0x7ba   : > { %v4853_v19 = vrot.slane %v4852_v1, 2  ;;  %v4985_v16 = vrot.slane %v4980_v15, %v10999_v45 }
 0x7bb   : > { %v4857_v20 = vmax.f32 %v4848_v18, %v4849_v17 }
 0x7bc   : > { %v4854_v21 = vadd.f32 %v4853_v19, %v4852_v1  ;;  %v4989_v1 = vrot.slane %v4980_v15, %v11005_v47 }
 0x7bd   : > { %v4858_v22 = vrot.slane %v4857_v20, 4 }
 0x7be   : > { %v4855_v23 = vrot.slane %v4854_v21, 1 }
 0x7bf   : > { %v4859_v24 = vmax.f32 %v4857_v20, %v4858_v22 }
 0x7c0   : > { %v4856_v25 = vadd.f32 %v4855_v23, %v4854_v21 }
 0x7c1   : > { %v4860_v50 = vrot.slane %v4859_v24, 2 }
 0x7c2   : > { %v4864_v9 = vmul.f32 0.00390625, %v4856_v25 }
 0x7c3   : > { %v4861_v26 = vmax.f32 %v4859_v24, %v4860_v50 }
 0x7c5   : > { %v4862_v27 = vrot.slane %v4861_v26, 1 }
 0x7c7   : > { %v4863_v41 = vmax.f32 %v4861_v26, %v4862_v27 }
 0x7c9   : > { %v4868_v28 = vsel %vm4867_vm3, %v4864_v9, %v4863_v41  ;;  %vm5205_vm3 = vcmp.lt.s32.totalorder %v11599_v33, 4 }
 0x7ca   : > { %4972 = vmatprep.mubr.f32.mxu0 %v4868_v28 }
 0x7cb   : > { %4973 = vmatmul.mubr.f32.vlgmr.msra.gmra.mrb[12].mxu0 %v4868_v28 }
 0x7cc   : > { %7447 = vmatpush1.bf16.msra.mxu0 %v9827_v39  ;;  %7478 = vmatprep.mubr.bf16.mxu0 %v7253_v29 }
 0x7cd   : > { %7448 = vmatprep.subr.bf16.mxu0 %v9832_v8 }
 0x7d0   : > { %7449 = vmatpush1.bf16.msra.mxu0 %v9830_v31 }
 0x7d1   : > { %7450 = vmatprep.subr.bf16.mxu0 %v9835_v32 }
 0x7d4   : > { %7451 = vmatpush1.bf16.msra.mxu0 %v9833_v34 }
 0x7d5   : > { %7452 = vmatprep.subr.bf16.mxu0 %v9838_v35 }
 0x7d8   : > { %7453 = vmatpush1.bf16.msra.mxu0 %v9836_v44 }
 0x7d9   : > { %7454 = vmatprep.subr.bf16.mxu0 %v9841_v40 }
 0x7dc   : > { %7455 = vmatpush1.bf16.msra.mxu0 %v9839_v42 }
 0x7dd   : > { %7456 = vmatprep.subr.bf16.mxu0 %v9844_v48 }
 0x7e0   : > { %7457 = vmatpush1.bf16.msra.mxu0 %v9842_v49 }
 0x7e1   : > { %7458 = vmatprep.subr.bf16.mxu0 %v9847_v51 }
 0x7e4   : > { %7459 = vmatpush1.bf16.msra.mxu0 %v9845_v52 }
 0x7e5   : > { %7460 = vmatprep.subr.bf16.mxu0 %v9850_v53 }
 0x7e8   : > { %7461 = vmatpush1.bf16.msra.mxu0 %v9848_v54 }
 0x7e9   : > { %7462 = vmatprep.subr.bf16.mxu0 %v9853_v55 }
 0x7ec   : > { %7463 = vmatpush1.bf16.msra.mxu0 %v9851_v56 }
 0x7ed   : > { %7464 = vmatprep.subr.bf16.mxu0 %v9856_v59 }
 0x7f0   : > { %7465 = vmatpush1.bf16.msra.mxu0 %v9854_v61 }
 0x7f1   : > { %7466 = vmatprep.subr.bf16.mxu0 %v9859_v62 }
 0x7f4   : > { %7467 = vmatpush1.bf16.msra.mxu0 %v9857_v0 }
 0x7f5   : > { %7468 = vmatprep.subr.bf16.mxu0 %v9862_v36 }
 0x7f8   : > { %7469 = vmatpush1.bf16.msra.mxu0 %v9860_v4 }
 0x7f9   : > { %7470 = vmatprep.subr.bf16.mxu0 %v9865_v5 }
 0x7fc   : > { %7471 = vmatpush1.bf16.msra.mxu0 %v9863_v6 }
 0x7fd   : > { %7472 = vmatprep.subr.bf16.mxu0 %v9868_v7 }
 0x800   : > { %7473 = vmatpush1.bf16.msra.mxu0 %v9866_v12 }
 0x801   : > { %7474 = vmatprep.subr.bf16.mxu0 %v9871_v58 }
 0x804   : > { %7475 = vmatpush1.bf16.msra.mxu0 %v9869_v30 }
 0x805   : > { %7476 = vmatprep.subr.bf16.mxu0 %v9874_v10 }
 0x808   : > { %7477 = vmatpush1.bf16.msra.mxu0 %v9872_v37 }
 0x80b   : > { %7479 = vmatmul.mubr.bf16.vlgmr.msra.gmra.mrb[16].mxu0 %v7252_v43 }
 0x89e   : > { %v8901_v13 = vpop.f32.mrb[12].mxu0 }
 0x89f   : > { %v8902_v57 = vpop.f32.mrb[13].mxu0 }
 0x8a0   : > { %v8903_v14 = vadd.f32 %v8902_v57, %v8901_v13 }
 0x8a2   : > { %v4975_v46 = vadd.f32 %v8903_v14, %v8568_v38 }
 0x8a4   : > { %v4978_v11 = vmax.f32 %v4975_v46, 0.0 }
 0x8a6   : > { %8571 = vmatmul.mubr.msk.f32.vlgmr.msra.gmra.mrb[4].mxu1 %vm4994_vm11, %v4978_v11  ;;  %vm5222_vm11 = vcmp.lt.s32.totalorder %v11599_v33, 120 }
 0x979   : > { %v5069_v17 = vpop.f32.mrb[4].mxu1 }
 0x97a   : > { %v5070_v18 = vadd.f32 %v5069_v17, %v4985_v16  ;;  %v5071_v19 = vpop.f32.mrb[5].mxu1 }
 0x97b   : > { %v5072_v20 = vadd.f32 %v5071_v19, %v4989_v1 }
 0x97c   : > { %v5076_v21 = vrot.slane %v5070_v18, 1 }
 0x97d   : > { %v5077_v22 = vrot.slane %v5072_v20, 1 }
 0x97e   : > { %v5080_v23 = vadd.f32 %v5076_v21, %v5070_v18 }
 0x97f   : > { %v5081_v24 = vadd.f32 %v5077_v22, %v5072_v20 }
 0x980   : > { %v5082_v50 = vand.u32 2147483647, %v5080_v23  ;;  %vm5094_vm12 = vcmp.ge.f32.partialorder %v5080_v23, 0.0 }
 0x981   : > { %v5083_v25 = vand.u32 2147483647, %v5081_v24  ;;  %vm5095_vm13 = vcmp.ge.f32.partialorder %v5081_v24, 0.0 }
 0x982   : > { %v5084_v26 = vsub.f32 0.0, %v5082_v50 }
 0x983   : > { %v5085_v27 = vsub.f32 0.0, %v5083_v25 }
 0x984   : > { %v5086_v41 = vmul.f32 1.442695, %v5084_v26 }
 0x985   : > { %v5088_v9 = vmul.f32 1.442695, %v5085_v27 }
 0x986   : > { %10292 = vpow2.f32 %v5086_v41 }
 0x987   : > { %10294 = vpow2.f32 %v5088_v9  ;;  %v9876_v9 = vld [vmem:[#allocation8 + $0x100] ss:$8 sps:$4 sm:$0xff]  }
 0x990   : > { %v10293_v39 = vpop.eup %10292 }
 0x991   : > { %v10295_v28 = vpop.eup %10294  ;;  %v5090_v8 = vadd.f32 1.0, %v10293_v39  ;;  %v9878_v39 = vld [vmem:[#allocation8 + $0x104] ss:$8 sps:$4 sm:$0xff]  }
 0x992   : > { %v5091_v29 = vadd.f32 1.0, %v10295_v28  ;;  %5571 = vmatprep.subr.bf16.mxu1 %v9878_v39  ;;  %v9923_v39 = vld [vmem:[#allocation8 + $0x1f4] ss:$8 sps:$4 sm:$0xff]  }
 0x993   : > { %10296 = vrcp.f32 %v5090_v8  ;;  %5572 = vmatpush1.bf16.msra.mxu1 %v9876_v9  ;;  %v9918_v9 = vld [vmem:[#allocation8 + $0x1e0] ss:$8 sps:$4 sm:$0xff]  }
 0x994   : > { %10298 = vrcp.f32 %v5091_v29  ;;  %v9881_v29 = vld [vmem:[#allocation8 + $0x114] ss:$8 sps:$4 sm:$0xff]  }
 0x995   : > { %5573 = vmatprep.subr.bf16.mxu1 %v9881_v29 }
 0x99d   : > { %v10297_v31 = vpop.eup %10296 }
 0x99e   : > { %v10299_v32 = vpop.eup %10298  ;;  %v5096_v34 = vsub.f32 1.0, %v10297_v31 }
 0x99f   : > { %v5097_v44 = vsub.f32 1.0, %v10299_v32 }
 0x9a0   : > { %v5098_v35 = vsel %vm5094_vm12, %v10297_v31, %v5096_v34  ;;  %v9879_v34 = vld [vmem:[#allocation8 + $0x110] ss:$8 sps:$4 sm:$0xff]   ;;  %vm5239_vm12 = vcmp.lt.s32.totalorder %v11599_v33, 8 }
 0x9a1   : > { %v5103_v40 = vrot.slane %v5098_v35, %v10999_v45  ;;  %v5099_v49 = vsel %vm5095_vm13, %v10299_v32, %v5097_v44  ;;  %v9884_v35 = vld [vmem:[#allocation8 + $0x124] ss:$8 sps:$4 sm:$0xff]   ;;  %5574 = vmatpush1.bf16.msra.mxu1 %v9879_v34  ;;  %v9882_v44 = vld [vmem:[#allocation8 + $0x120] ss:$8 sps:$4 sm:$0xff]  }
 0x9a2   : > { %v5107_v51 = vrot.slane %v5099_v49, %v10999_v45  ;;  %5575 = vmatprep.subr.bf16.mxu1 %v9884_v35  ;;  %v9885_v49 = vld [vmem:[#allocation8 + $0x130] ss:$8 sps:$4 sm:$0xff]  }
 0x9a3   : > { %v11808_v42 = vmul.f32 %v5103_v40, %v11583_v60  ;;  %v11811_v48 = vmul.f32 %v5103_v40, %v11591_v2  ;;  %v9887_v40 = vld [vmem:[#allocation8 + $0x134] ss:$8 sps:$4 sm:$0xff]  }
 0x9a4   : > { %v11819_v60 = vmul.f32 %v5107_v51, %v11586_v63  ;;  %v11822_v2 = vmul.f32 %v5107_v51, %v11594_v3  ;;  %v9890_v51 = vld [vmem:[#allocation8 + $0x144] ss:$8 sps:$4 sm:$0xff]  }
 0x9a5   : > { %5114 = vrot.lane.b32.xlu1 %v11811_v48, %s10508_s26  ;;  %5112 = vrot.lane.b32.xlu0 %v11808_v42, %s10508_s26 }
 0x9a6   : > { %5576 = vmatpush1.bf16.msra.mxu1 %v9882_v44 }
 0x9a7   : > { %5577 = vmatprep.subr.bf16.mxu1 %v9887_v40 }
 0x9a9   : > { %5131 = vrot.lane.b32.xlu1 %v11811_v48, %s10509_s10  ;;  %5129 = vrot.lane.b32.xlu0 %v11808_v42, %s10509_s10 }
 0x9aa   : > { %5578 = vmatpush1.bf16.msra.mxu1 %v9885_v49 }
 0x9ab   : > { %5579 = vmatprep.subr.bf16.mxu1 %v9890_v51 }
 0x9ad   : > { %5118 = vrot.lane.b32.xlu1 %v11822_v2, %s10508_s26  ;;  %5116 = vrot.lane.b32.xlu0 %v11819_v60, %s10508_s26 }
 0x9b1   : > { %5135 = vrot.lane.b32.xlu1 %v11822_v2, %s10509_s10  ;;  %5133 = vrot.lane.b32.xlu0 %v11819_v60, %s10509_s10 }
 0xa17   : > { %v5115_v52 = vpop.permute.xlu1 %5114  ;;  %v5113_v53 = vpop.permute.xlu0 %5112 }
 0xa1b   : > { %v5132_v54 = vpop.permute.xlu1 %5131  ;;  %v5130_v55 = vpop.permute.xlu0 %5129 }
 0xa1f   : > { %v5119_v56 = vpop.permute.xlu1 %5118  ;;  %v5117_v63 = vpop.permute.xlu0 %5116 }
 0xa20   : > { %v5122_v59 = vsel %vm5120_vm14, %v5115_v52, %v5119_v56  ;;  %v5121_v61 = vsel %vm5120_vm14, %v5113_v53, %v5117_v63  ;;  %v5124_v0 = vsel %vm5120_vm14, %v5119_v56, %v5115_v52  ;;  %v5123_v36 = vsel %vm5120_vm14, %v5117_v63, %v5113_v53  ;;  %v9888_v52 = vld [vmem:[#allocation8 + $0x140] ss:$8 sps:$4 sm:$0xff]   ;;  %v9893_v53 = vld [vmem:[#allocation8 + $0x154] ss:$8 sps:$4 sm:$0xff]   ;;  %v9897_v63 = vld [vmem:[#allocation8 + $0x170] ss:$8 sps:$4 sm:$0xff]  }
 0xa21   : > { %v5127_v3 = vadd.f32 %v5122_v59, %v11811_v48  ;;  %v5125_v62 = vadd.f32 %v5121_v61, %v11808_v42  ;;  %v5128_v6 = vadd.f32 %v5124_v0, %v11822_v2  ;;  %v5126_v7 = vadd.f32 %v5123_v36, %v11819_v60  ;;  %5580 = vmatpush1.bf16.msra.mxu1 %v9888_v52  ;;  %v9894_v56 = vld [vmem:[#allocation8 + $0x160] ss:$8 sps:$4 sm:$0xff]   ;;  %v9899_v59 = vld [vmem:[#allocation8 + $0x174] ss:$8 sps:$4 sm:$0xff]   ;;  %v9902_v0 = vld [vmem:[#allocation8 + $0x184] ss:$8 sps:$4 sm:$0xff]  }
 0xa22   : > { %5581 = vmatprep.subr.bf16.mxu1 %v9893_v53  ;;  %v9905_v36 = vld [vmem:[#allocation8 + $0x194] ss:$8 sps:$4 sm:$0xff]   ;;  %v5253_v52 = vand.u32 15, %v11599_v33 }
 0xa23   : > { %5148 = vrot.lane.b32.xlu1 %v5127_v3, %s10510_s15  ;;  %v5136_v4 = vpop.permute.xlu1 %5135  ;;  %5146 = vrot.lane.b32.xlu0 %v5125_v62, %s10510_s15  ;;  %v5134_v5 = vpop.permute.xlu0 %5133 }
 0xa24   : > { %v5141_v12 = vsel %vm5137_vm15, %v5136_v4, %v5132_v54  ;;  %v5140_v58 = vsel %vm5137_vm15, %v5134_v5, %v5130_v55  ;;  %v5139_v37 = vsel %vm5137_vm15, %v5132_v54, %v5136_v4  ;;  %v5138_v43 = vsel %vm5137_vm15, %v5130_v55, %v5134_v5  ;;  %v9891_v54 = vld [vmem:[#allocation8 + $0x150] ss:$8 sps:$4 sm:$0xff]   ;;  %v9896_v55 = vld [vmem:[#allocation8 + $0x164] ss:$8 sps:$4 sm:$0xff]  }
 0xa25   : > { %v5144_v30 = vmax.f32 %v11811_v48, %v5141_v12  ;;  %v5142_v10 = vmax.f32 %v11808_v42, %v5140_v58  ;;  %v5145_v13 = vmax.f32 %v11822_v2, %v5139_v37  ;;  %v5143_v38 = vmax.f32 %v11819_v60, %v5138_v43  ;;  %5582 = vmatpush1.bf16.msra.mxu1 %v9891_v54  ;;  %v9903_v12 = vld [vmem:[#allocation8 + $0x190] ss:$8 sps:$4 sm:$0xff]  }
 0xa26   : > { %5583 = vmatprep.subr.bf16.mxu1 %v9896_v55  ;;  %vm11898_vm13 = vcmp.eq.s32.totalorder %v5253_v52, 15 }
 0xa27   : > { %5152 = vrot.lane.b32.xlu1 %v5128_v6, %s10510_s15  ;;  %5150 = vrot.lane.b32.xlu0 %v5126_v7, %s10510_s15 }
 0xa29   : > { %5584 = vmatpush1.bf16.msra.mxu1 %v9894_v56 }
 0xa2a   : > { %5585 = vmatprep.subr.bf16.mxu1 %v9899_v59 }
 0xa2b   : > { %5165 = vrot.lane.b32.xlu1 %v5144_v30, %s10511_s16  ;;  %5163 = vrot.lane.b32.xlu0 %v5142_v10, %s10511_s16 }
 0xa2d   : > { %5586 = vmatpush1.bf16.msra.mxu1 %v9897_v63 }
 0xa2e   : > { %5587 = vmatprep.subr.bf16.mxu1 %v9902_v0 }
 0xa2f   : > { %5169 = vrot.lane.b32.xlu1 %v5145_v13, %s10511_s16  ;;  %5167 = vrot.lane.b32.xlu0 %v5143_v38, %s10511_s16 }
 0xa95   : > { %v5149_v57 = vpop.permute.xlu1 %5148  ;;  %v5147_v14 = vpop.permute.xlu0 %5146 }
 0xa99   : > { %v5153_v46 = vpop.permute.xlu1 %5152  ;;  %v5151_v11 = vpop.permute.xlu0 %5150 }
 0xa9a   : > { %v5156_v15 = vsel %vm5154_vm0, %v5149_v57, %v5153_v46  ;;  %v5155_v16 = vsel %vm5154_vm0, %v5147_v14, %v5151_v11  ;;  %v5158_v18 = vsel %vm5154_vm0, %v5153_v46, %v5149_v57  ;;  %v5157_v19 = vsel %vm5154_vm0, %v5151_v11, %v5147_v14 }
 0xa9b   : > { %v11839_v1 = vadd.f32 %v5156_v15, %v5127_v3  ;;  %v11841_v17 = vadd.f32 %v5155_v16, %v5125_v62  ;;  %v11845_v22 = vadd.f32 %v5158_v18, %v5128_v6  ;;  %v11847_v23 = vadd.f32 %v5157_v19, %v5126_v7  ;;  %v9900_v62 = vld [vmem:[#allocation8 + $0x180] ss:$8 sps:$4 sm:$0xff]   ;;  %v9908_v18 = vld [vmem:[#allocation8 + $0x1a4] ss:$8 sps:$4 sm:$0xff]  }
 0xa9c   : > { %5588 = vmatpush1.bf16.msra.mxu1 %v9900_v62  ;;  %v9941_v62 = vld [vmem:[#allocation8 + $0x54] ss:$8 sps:$4 sm:$0xff]  }
 0xa9d   : > { %5182 = vrot.lane.b32.xlu1 %v11839_v1, %s10512_s23  ;;  %v5166_v20 = vpop.permute.xlu1 %5165  ;;  %5180 = vrot.lane.b32.xlu0 %v11841_v17, %s10512_s23  ;;  %v5164_v21 = vpop.permute.xlu0 %5163 }
 0xa9e   : > { %5589 = vmatprep.subr.bf16.mxu1 %v9905_v36 }
 0xaa0   : > { %5590 = vmatpush1.bf16.msra.mxu1 %v9903_v12 }
 0xaa1   : > { %5186 = vrot.lane.b32.xlu1 %v11845_v22, %s10512_s23  ;;  %v5170_v24 = vpop.permute.xlu1 %5169  ;;  %5184 = vrot.lane.b32.xlu0 %v11847_v23, %s10512_s23  ;;  %v5168_v50 = vpop.permute.xlu0 %5167 }
 0xaa2   : > { %v5175_v25 = vsel %vm5171_vm1, %v5170_v24, %v5166_v20  ;;  %v5174_v26 = vsel %vm5171_vm1, %v5168_v50, %v5164_v21  ;;  %v5173_v28 = vsel %vm5171_vm1, %v5166_v20, %v5170_v24  ;;  %v5172_v8 = vsel %vm5171_vm1, %v5164_v21, %v5168_v50  ;;  %v9911_v21 = vld [vmem:[#allocation8 + $0x1b4] ss:$8 sps:$4 sm:$0xff]   ;;  %5591 = vmatprep.subr.bf16.mxu1 %v9908_v18  ;;  %v9909_v24 = vld [vmem:[#allocation8 + $0x1b0] ss:$8 sps:$4 sm:$0xff]   ;;  %v9914_v50 = vld [vmem:[#allocation8 + $0x1c4] ss:$8 sps:$4 sm:$0xff]  }
 0xaa3   : > { %v11852_v27 = vmax.f32 %v5144_v30, %v5175_v25  ;;  %v11854_v41 = vmax.f32 %v5142_v10, %v5174_v26  ;;  %v11858_v31 = vmax.f32 %v5145_v13, %v5173_v28  ;;  %v11860_v32 = vmax.f32 %v5143_v38, %v5172_v8  ;;  %v9912_v25 = vld [vmem:[#allocation8 + $0x1c0] ss:$8 sps:$4 sm:$0xff]   ;;  %v9917_v26 = vld [vmem:[#allocation8 + $0x1d4] ss:$8 sps:$4 sm:$0xff]   ;;  %v9921_v28 = vld [vmem:[#allocation8 + $0x1f0] ss:$8 sps:$4 sm:$0xff]  }
 0xaa4   : > { %v9926_v8 = vld [vmem:[#allocation8 + $0x4] ss:$8 sps:$4 sm:$0xff]  }
 0xaa5   : > { %5199 = vrot.lane.b32.xlu1 %v11852_v27, %s10513_s22  ;;  %5197 = vrot.lane.b32.xlu0 %v11854_v41, %s10513_s22 }
 0xaa9   : > { %5203 = vrot.lane.b32.xlu1 %v11858_v31, %s10513_s22  ;;  %5201 = vrot.lane.b32.xlu0 %v11860_v32, %s10513_s22 }
 0xb0f   : > { %v5183_v61 = vpop.permute.xlu1 %5182  ;;  %v5181_v3 = vpop.permute.xlu0 %5180 }
 0xb13   : > { %v5187_v4 = vpop.permute.xlu1 %5186  ;;  %v5185_v5 = vpop.permute.xlu0 %5184 }
 0xb14   : > { %v5190_v6 = vsel %vm5188_vm2, %v5183_v61, %v5187_v4  ;;  %v5189_v7 = vsel %vm5188_vm2, %v5181_v3, %v5185_v5  ;;  %v5192_v10 = vsel %vm5188_vm2, %v5187_v4, %v5183_v61  ;;  %v5191_v37 = vsel %vm5188_vm2, %v5185_v5, %v5181_v3  ;;  %v9936_v3 = vld [vmem:[#allocation8 + $0x40] ss:$8 sps:$4 sm:$0xff]  }
 0xb15   : > { %v11866_v58 = vadd.f32 %v5190_v6, %v11839_v1  ;;  %v11869_v30 = vadd.f32 %v5189_v7, %v11841_v17  ;;  %v5196_v38 = vadd.f32 %v5192_v10, %v11845_v22  ;;  %v5194_v57 = vadd.f32 %v5191_v37, %v11847_v23  ;;  %v9906_v17 = vld [vmem:[#allocation8 + $0x1a0] ss:$8 sps:$4 sm:$0xff]  }
 0xb16   : > { %5592 = vmatpush1.bf16.msra.mxu1 %v9906_v17 }
 0xb17   : > { %5216 = vrot.lane.b32.xlu1 %v11866_v58, %s10514_s25  ;;  %v5200_v43 = vpop.permute.xlu1 %5199  ;;  %5214 = vrot.lane.b32.xlu0 %v11869_v30, %s10514_s25  ;;  %v5198_v13 = vpop.permute.xlu0 %5197 }
 0xb18   : > { %5593 = vmatprep.subr.bf16.mxu1 %v9911_v21 }
 0xb1a   : > { %5594 = vmatpush1.bf16.msra.mxu1 %v9909_v24 }
 0xb1b   : > { %5220 = vrot.lane.b32.xlu1 %v5196_v38, %s10514_s25  ;;  %v5204_v14 = vpop.permute.xlu1 %5203  ;;  %5218 = vrot.lane.b32.xlu0 %v5194_v57, %s10514_s25  ;;  %v5202_v46 = vpop.permute.xlu0 %5201 }
 0xb1c   : > { %v5209_v11 = vsel %vm5205_vm3, %v5204_v14, %v5200_v43  ;;  %v5208_v15 = vsel %vm5205_vm3, %v5202_v46, %v5198_v13  ;;  %v5207_v19 = vsel %vm5205_vm3, %v5200_v43, %v5204_v14  ;;  %v5206_v20 = vsel %vm5205_vm3, %v5198_v13, %v5202_v46  ;;  %5595 = vmatprep.subr.bf16.mxu1 %v9914_v50 }
 0xb1d   : > { %v11877_v16 = vmax.f32 %v11852_v27, %v5209_v11  ;;  %v11880_v1 = vmax.f32 %v11854_v41, %v5208_v15  ;;  %v11885_v22 = vmax.f32 %v11858_v31, %v5207_v19  ;;  %v11888_v23 = vmax.f32 %v11860_v32, %v5206_v20  ;;  %v9915_v27 = vld [vmem:[#allocation8 + $0x1d0] ss:$8 sps:$4 sm:$0xff]   ;;  %v9920_v41 = vld [vmem:[#allocation8 + $0x1e4] ss:$8 sps:$4 sm:$0xff]  }
 0xb1e   : > { %5596 = vmatpush1.bf16.msra.mxu1 %v9912_v25  ;;  %v5248_v32 = vadd.s32 128, %v11599_v33 }
 0xb1f   : > { %5233 = vrot.lane.b32.xlu1 %v11877_v16, %s10515_s17  ;;  %5231 = vrot.lane.b32.xlu0 %v11880_v1, %s10515_s17 }
 0xb20   : > { %5597 = vmatprep.subr.bf16.mxu1 %v9917_v26  ;;  %v5260_v53 = vand.u32 15, %v5248_v32 }
 0xb22   : > { %5598 = vmatpush1.bf16.msra.mxu1 %v9915_v27  ;;  %vm11902_vm14 = vcmp.eq.s32.totalorder %v5260_v53, 15 }
 0xb23   : > { %5237 = vrot.lane.b32.xlu1 %v11885_v22, %s10515_s17  ;;  %5235 = vrot.lane.b32.xlu0 %v11888_v23, %s10515_s17 }
 0xb24   : > { %5599 = vmatprep.subr.bf16.mxu1 %v9920_v41 }
 0xb26   : > { %5600 = vmatpush1.bf16.msra.mxu1 %v9918_v9 }
 0xb27   : > { %5601 = vmatprep.subr.bf16.mxu1 %v9923_v39 }
 0xb2a   : > { %5602 = vmatpush1.bf16.msra.mxu1 %v9921_v28 }
 0xb2b   : > { %5774 = vmatprep.subr.bf16.mxu1 %v9926_v8 }
 0xb89   : > { %v5217_v29 = vpop.permute.xlu1 %5216  ;;  %v5215_v31 = vpop.permute.xlu0 %5214 }
 0xb8d   : > { %v5221_v34 = vpop.permute.xlu1 %5220  ;;  %v5219_v35 = vpop.permute.xlu0 %5218 }
 0xb8e   : > { %v5224_v44 = vsel %vm5222_vm11, %v5217_v29, %v5221_v34  ;;  %v5226_v40 = vsel %vm5222_vm11, %v5221_v34, %v5217_v29  ;;  %v5223_v49 = vsel %vm5222_vm11, %v5215_v31, %v5219_v35  ;;  %v5225_v51 = vsel %vm5222_vm11, %v5219_v35, %v5215_v31  ;;  %v9924_v35 = vld [vmem:[#allocation8] ss:$8 sps:$4 sm:$0xff]  }
 0xb8f   : > { %v5229_v54 = vadd.f32 %v5224_v44, %v11866_v58  ;;  %v5230_v55 = vadd.f32 %v5226_v40, %v5196_v38  ;;  %v5227_v56 = vadd.f32 %v5223_v49, %v11869_v30  ;;  %v5228_v63 = vadd.f32 %v5225_v51, %v5194_v57  ;;  %v9929_v51 = vld [vmem:[#allocation8 + $0x14] ss:$8 sps:$4 sm:$0xff]  }
 0xb91   : > { %v5234_v59 = vpop.permute.xlu1 %5233  ;;  %v5232_v61 = vpop.permute.xlu0 %5231  ;;  %v5277_v0 = vmul.f32 0.0625, %v5229_v54  ;;  %v5278_v36 = vmul.f32 0.0625, %v5230_v55  ;;  %v5275_v4 = vmul.f32 0.0625, %v5227_v56  ;;  %v5276_v5 = vmul.f32 0.0625, %v5228_v63  ;;  %v9927_v54 = vld [vmem:[#allocation8 + $0x10] ss:$8 sps:$4 sm:$0xff]  }
 0xb92   : > { %v9932_v55 = vld [vmem:[#allocation8 + $0x24] ss:$8 sps:$4 sm:$0xff]   ;;  %v9930_v56 = vld [vmem:[#allocation8 + $0x20] ss:$8 sps:$4 sm:$0xff]   ;;  %v9935_v63 = vld [vmem:[#allocation8 + $0x34] ss:$8 sps:$4 sm:$0xff]  }
 0xb95   : > { %v5238_v6 = vpop.permute.xlu1 %5237  ;;  %v5236_v7 = vpop.permute.xlu0 %5235 }
 0xb96   : > { %v5241_v12 = vsel %vm5239_vm12, %v5234_v59, %v5238_v6  ;;  %v5243_v58 = vsel %vm5239_vm12, %v5238_v6, %v5234_v59  ;;  %v5240_v30 = vsel %vm5239_vm12, %v5232_v61, %v5236_v7  ;;  %v5242_v10 = vsel %vm5239_vm12, %v5236_v7, %v5232_v61  ;;  %v9933_v59 = vld [vmem:[#allocation8 + $0x30] ss:$8 sps:$4 sm:$0xff]   ;;  %v9938_v61 = vld [vmem:[#allocation8 + $0x44] ss:$8 sps:$4 sm:$0xff]  }
 0xb97   : > { %v5246_v33 = vmax.f32 %v11877_v16, %v5243_v58  ;;  %v5247_v37 = vmax.f32 %v11885_v22, %v5241_v12  ;;  %v5244_v43 = vmax.f32 %v11880_v1, %v5242_v10  ;;  %v5245_v13 = vmax.f32 %v11888_v23, %v5240_v30  ;;  %v9945_v6 = vld [vmem:[#allocation8 + $0x70] ss:$8 sps:$4 sm:$0xff]   ;;  %v9950_v7 = vld [vmem:[#allocation8 + $0x84] ss:$8 sps:$4 sm:$0xff]   ;;  %v9948_v12 = vld [vmem:[#allocation8 + $0x80] ss:$8 sps:$4 sm:$0xff]  }
 0xb98   : > { %v9953_v58 = vld [vmem:[#allocation8 + $0x94] ss:$8 sps:$4 sm:$0xff]   ;;  %v9951_v30 = vld [vmem:[#allocation8 + $0x90] ss:$8 sps:$4 sm:$0xff]   ;;  %v9956_v10 = vld [vmem:[#allocation8 + $0xa4] ss:$8 sps:$4 sm:$0xff]  }
 0xb99   : > { %v5281_v38 = vsel %vm11898_vm13, %v5246_v33, %v5277_v0  ;;  %v5282_v57 = vsel %vm11902_vm14, %v5247_v37, %v5278_v36  ;;  %v5279_v14 = vsel %vm11898_vm13, %v5244_v43, %v5275_v4  ;;  %v5280_v46 = vsel %vm11902_vm14, %v5245_v13, %v5276_v5  ;;  %v9939_v0 = vld [vmem:[#allocation8 + $0x50] ss:$8 sps:$4 sm:$0xff]   ;;  %v9944_v36 = vld [vmem:[#allocation8 + $0x64] ss:$8 sps:$4 sm:$0xff]   ;;  %v9942_v4 = vld [vmem:[#allocation8 + $0x60] ss:$8 sps:$4 sm:$0xff]  }
 0xb9a   : > { %v5290_v11 = vrot.slane %v5281_v38, 5  ;;  %v5292_v15 = vrot.slane %v5282_v57, 5  ;;  %v5288_v16 = vrot.slane %v5279_v14, 5  ;;  %v5289_v17 = vrot.slane %v5280_v46, 5  ;;  %v9947_v5 = vld [vmem:[#allocation8 + $0x74] ss:$8 sps:$4 sm:$0xff]  }
 0xb9b   : > { %v9954_v33 = vld [vmem:[#allocation8 + $0xa0] ss:$8 sps:$4 sm:$0xff]   ;;  %v9959_v37 = vld [vmem:[#allocation8 + $0xb4] ss:$8 sps:$4 sm:$0xff]   ;;  %v9957_v43 = vld [vmem:[#allocation8 + $0xb0] ss:$8 sps:$4 sm:$0xff]  }
 0xb9c   : > { %5304 = vst [vmem:[#allocation2 + $0x20] sm:$0x7] %v5290_v11  ;;  %5305 = vst [vmem:[#allocation2 + $0x28] sm:$0x7] %v5292_v15  ;;  %v11919_v1 = vsel %vm909_vm4, %v5288_v16, %v5290_v11  ;;  %v11922_v18 = vsel %vm909_vm4, %v5289_v17, %v5292_v15  ;;  %v9962_v13 = vld [vmem:[#allocation8 + $0xc4] ss:$8 sps:$4 sm:$0xff]  }
 0xb9d   : > { %5300 = vst [vmem:[#allocation2] sm:$0xf8] %v5288_v16  ;;  %5301 = vst [vmem:[#allocation2 + $0x8] sm:$0xf8] %v5289_v17  ;;  %v9960_v38 = vld [vmem:[#allocation8 + $0xc0] ss:$8 sps:$4 sm:$0xff]  }
 0xb9e   : > { %5302 = vst [vmem:[#allocation2 + $0x10] sm:$0xff] %v11919_v1  ;;  %v9965_v57 = vld [vmem:[#allocation8 + $0xd4] ss:$8 sps:$4 sm:$0xff]   ;;  %v9963_v14 = vld [vmem:[#allocation8 + $0xd0] ss:$8 sps:$4 sm:$0xff]  }
 0xb9f   : > { %v9968_v46 = vld [vmem:[#allocation8 + $0xe4] ss:$8 sps:$4 sm:$0xff]   ;;  %v9966_v11 = vld [vmem:[#allocation8 + $0xe0] ss:$8 sps:$4 sm:$0xff]   ;;  %v9971_v17 = vld [vmem:[#allocation8 + $0xf4] ss:$8 sps:$4 sm:$0xff]  }
 0xba3   : > { %v5347_v20 = vld [vmem:[#allocation2 + $0x28] sm:$0x1]  ;;  %v5346_v24 = vld [vmem:[#allocation2 + $0x20] sm:$0x1] }
 0xba4   : > { %v5345_v19 = vld [vmem:[#allocation2 + $0x8] sm:$0xfe]  ;;  %v5344_v21 = vld [vmem:[#allocation2] sm:$0xfe]  ;;  %v5351_v23 = vpack.c.bf16 %v5347_v20, %v5347_v20  ;;  %v5350_v25 = vpack.c.bf16 %v5346_v24, %v5346_v24 }
 0xba5   : > { %v5349_v22 = vpack.c.bf16 %v11922_v18, %v5345_v19  ;;  %v5348_v50 = vpack.c.bf16 %v11919_v1, %v5344_v21  ;;  %v5307_v34 = vld [vmem:[#allocation2 + $0x8] sm:$0xff] }
 0xba6   : > { %v5405_v27 = vshll.u32 %v5351_v23, 16  ;;  %v5393_v9 = vshll.u32 %v5350_v25, 16  ;;  %v5311_v53 = vpack.c.bf16 %v11922_v18, %v5307_v34  ;;  %v5818_v15 = vld [vmem:[#allocation2 + $0x8] sm:$0xfc]  ;;  %v5820_v16 = vld [vmem:[#allocation2 + $0x28] sm:$0x3] }
 0xba7   : > { %v5400_v26 = vshll.u32 %v5349_v22, 16  ;;  %v5388_v41 = vshll.u32 %v5348_v50, 16  ;;  %v5398_v39 = vshrl.u32 %v5349_v22, 16  ;;  %v5386_v8 = vshrl.u32 %v5348_v50, 16  ;;  %v9969_v21 = vld [vmem:[#allocation8 + $0xf0] ss:$8 sps:$4 sm:$0xff]  }
 0xba8   : > { %v5407_v32 = vrot.slane %v5405_v27, 1  ;;  %v5395_v40 = vrot.slane %v5393_v9, 1  ;;  %v5822_v19 = vpack.c.bf16 %v11922_v18, %v5818_v15  ;;  %v5824_v20 = vpack.c.bf16 %v5820_v16, %v5820_v16  ;;  %v9974_v22 = vld [vmem:[#allocation8 + $0x204] ss:$8 sps:$4 sm:$0xff]   ;;  %v9972_v25 = vld [vmem:[#allocation8 + $0x200] ss:$8 sps:$4 sm:$0xff]  }
 0xba9   : > { %v5402_v28 = vrot.slane %v5400_v26, 1  ;;  %v5390_v29 = vrot.slane %v5388_v41, 1  ;;  %v5306_v23 = vld [vmem:[#allocation2] sm:$0xff] }
 0xbaa   : > { %v5865_v24 = vrot.slane %v5822_v19, 1  ;;  %v5866_v50 = vrot.slane %v5824_v20, 1  ;;  %v5310_v26 = vpack.c.bf16 %v11919_v1, %v5306_v23  ;;  %v9977_v27 = vld [vmem:[#allocation8 + $0x214] ss:$8 sps:$4 sm:$0xff]   ;;  %v9975_v9 = vld [vmem:[#allocation8 + $0x210] ss:$8 sps:$4 sm:$0xff]  }
 0xbab   : > { %v5403_v31 = vor.u32 %v5402_v28, %v5398_v39  ;;  %v5391_v44 = vor.u32 %v5390_v29, %v5386_v8  ;;  %v9980_v39 = vld [vmem:[#allocation8 + $0x224] ss:$8 sps:$4 sm:$0xff]   ;;  %v9978_v28 = vld [vmem:[#allocation8 + $0x220] ss:$8 sps:$4 sm:$0xff]   ;;  %v9983_v8 = vld [vmem:[#allocation8 + $0x234] ss:$8 sps:$4 sm:$0xff]  }
 0xbac   : > { %v5867_v41 = vsel %vm1485_vm5, %v5865_v24, %v5866_v50  ;;  %v9981_v29 = vld [vmem:[#allocation8 + $0x230] ss:$8 sps:$4 sm:$0xff]   ;;  %v9989_v34 = vld [vmem:[#allocation8 + $0x254] ss:$8 sps:$4 sm:$0xff]   ;;  %v10022_v19 = vld [vmem:[#allocation8 + $0x304] ss:$8 sps:$4 sm:$0xff]  }
 0xbad   : > { %v5408_v49 = vsel %vm1007_vm6, %v5403_v31, %v5407_v32  ;;  %v5396_v52 = vsel %vm1007_vm6, %v5391_v44, %v5395_v40  ;;  %v9986_v31 = vld [vmem:[#allocation8 + $0x244] ss:$8 sps:$4 sm:$0xff]   ;;  %v9984_v32 = vld [vmem:[#allocation8 + $0x240] ss:$8 sps:$4 sm:$0xff]   ;;  %v10025_v50 = vld [vmem:[#allocation8 + $0x314] ss:$8 sps:$4 sm:$0xff]  }
 0xbae   : > { %5603 = vmatprep.mubr.bf16.mxu1 %v5408_v49  ;;  %v9992_v44 = vld [vmem:[#allocation8 + $0x264] ss:$8 sps:$4 sm:$0xff]   ;;  %v9990_v40 = vld [vmem:[#allocation8 + $0x260] ss:$8 sps:$4 sm:$0xff]   ;;  %v9995_v49 = vld [vmem:[#allocation8 + $0x274] ss:$8 sps:$4 sm:$0xff]  }
 0xbaf   : > { %5604 = vmatmul.mubr.bf16.vlgmr.msra.gmra.mrb[8].mxu1 %v5396_v52  ;;  %v9998_v52 = vld [vmem:[#allocation8 + $0x284] ss:$8 sps:$4 sm:$0xff]   ;;  %v10020_v24 = vld [vmem:[#allocation8 + $0x300] ss:$8 sps:$4 sm:$0xff]  }
 0xbb0   : > { %5775 = vmatpush1.bf16.msra.mxu1 %v9924_v35  ;;  %5806 = vmatprep.mubr.bf16.mxu1 %v5311_v53  ;;  %v9987_v35 = vld [vmem:[#allocation8 + $0x250] ss:$8 sps:$4 sm:$0xff]   ;;  %v9996_v53 = vld [vmem:[#allocation8 + $0x280] ss:$8 sps:$4 sm:$0xff]  }
 0xbb1   : > { %5776 = vmatprep.subr.bf16.mxu1 %v9929_v51  ;;  %v9993_v51 = vld [vmem:[#allocation8 + $0x270] ss:$8 sps:$4 sm:$0xff]  }
 0xbb4   : > { %5777 = vmatpush1.bf16.msra.mxu1 %v9927_v54  ;;  %v10001_v54 = vld [vmem:[#allocation8 + $0x294] ss:$8 sps:$4 sm:$0xff]  }
 0xbb5   : > { %5778 = vmatprep.subr.bf16.mxu1 %v9932_v55  ;;  %v9999_v55 = vld [vmem:[#allocation8 + $0x290] ss:$8 sps:$4 sm:$0xff]  }
 0xbb8   : > { %5779 = vmatpush1.bf16.msra.mxu1 %v9930_v56  ;;  %v10004_v56 = vld [vmem:[#allocation8 + $0x2a4] ss:$8 sps:$4 sm:$0xff]  }
 0xbb9   : > { %5780 = vmatprep.subr.bf16.mxu1 %v9935_v63  ;;  %v10002_v63 = vld [vmem:[#allocation8 + $0x2a0] ss:$8 sps:$4 sm:$0xff]  }
 0xbbc   : > { %5781 = vmatpush1.bf16.msra.mxu1 %v9933_v59  ;;  %v10007_v59 = vld [vmem:[#allocation8 + $0x2b4] ss:$8 sps:$4 sm:$0xff]  }
 0xbbd   : > { %5782 = vmatprep.subr.bf16.mxu1 %v9938_v61  ;;  %v10005_v61 = vld [vmem:[#allocation8 + $0x2b0] ss:$8 sps:$4 sm:$0xff]  }
 0xbc0   : > { %5783 = vmatpush1.bf16.msra.mxu1 %v9936_v3  ;;  %v10010_v3 = vld [vmem:[#allocation8 + $0x2c4] ss:$8 sps:$4 sm:$0xff]  }
 0xbc1   : > { %5784 = vmatprep.subr.bf16.mxu1 %v9941_v62  ;;  %v10008_v62 = vld [vmem:[#allocation8 + $0x2c0] ss:$8 sps:$4 sm:$0xff]  }
 0xbc4   : > { %5785 = vmatpush1.bf16.msra.mxu1 %v9939_v0  ;;  %v6078_v0 = vld [vmem:[#allocation2 + $0x8] sm:$0xf8] }
 0xbc5   : > { %5786 = vmatprep.subr.bf16.mxu1 %v9944_v36  ;;  %v6080_v36 = vld [vmem:[#allocation2 + $0x28] sm:$0x7] }
 0xbc8   : > { %5787 = vmatpush1.bf16.msra.mxu1 %v9942_v4  ;;  %v10013_v4 = vld [vmem:[#allocation8 + $0x2d4] ss:$8 sps:$4 sm:$0xff]  }
 0xbc9   : > { %5788 = vmatprep.subr.bf16.mxu1 %v9947_v5  ;;  %v6082_v5 = vpack.c.bf16 %v11922_v18, %v6078_v0  ;;  %v10061_v0 = vld [vmem:[#allocation8 + $0x3d4] ss:$8 sps:$4 sm:$0xff]  }
 0xbcc   : > { %5789 = vmatpush1.bf16.msra.mxu1 %v9945_v6  ;;  %v6084_v6 = vpack.c.bf16 %v6080_v36, %v6080_v36 }
 0xbcd   : > { %5790 = vmatprep.subr.bf16.mxu1 %v9950_v7  ;;  %v10011_v7 = vld [vmem:[#allocation8 + $0x2d0] ss:$8 sps:$4 sm:$0xff]  }
 0xbd0   : > { %5791 = vmatpush1.bf16.msra.mxu1 %v9948_v12  ;;  %v10016_v12 = vld [vmem:[#allocation8 + $0x2e4] ss:$8 sps:$4 sm:$0xff]  }
 0xbd1   : > { %5792 = vmatprep.subr.bf16.mxu1 %v9953_v58  ;;  %v5817_v58 = vld [vmem:[#allocation2] sm:$0xfc] }
 0xbd4   : > { %5793 = vmatpush1.bf16.msra.mxu1 %v9951_v30  ;;  %v5819_v30 = vld [vmem:[#allocation2 + $0x20] sm:$0x3] }
 0xbd5   : > { %5794 = vmatprep.subr.bf16.mxu1 %v9956_v10  ;;  %v6136_v10 = vshrl.u32 %v6082_v5, 16 }
 0xbd8   : > { %5795 = vmatpush1.bf16.msra.mxu1 %v9954_v33  ;;  %v6139_v33 = vshll.u32 %v6082_v5, 16  ;;  %v10059_v5 = vld [vmem:[#allocation8 + $0x3d0] ss:$8 sps:$4 sm:$0xff]  }
 0xbd9   : > { %5796 = vmatprep.subr.bf16.mxu1 %v9959_v37  ;;  %v6144_v37 = vshrl.u32 %v6084_v6, 16 }
 0xbdb   : > { %v6146_v15 = vrot.slane %v6144_v37, 1  ;;  %v6364_v37 = vld [vmem:[#allocation2 + $0x28] sm:$0xf] }
 0xbdc   : > { %5797 = vmatpush1.bf16.msra.mxu1 %v9957_v43  ;;  %v6147_v43 = vshll.u32 %v6084_v6, 16  ;;  %v10064_v6 = vld [vmem:[#allocation8 + $0x3e4] ss:$8 sps:$4 sm:$0xff]  }
 0xbdd   : > { %5798 = vmatprep.subr.bf16.mxu1 %v9962_v13  ;;  %v10014_v13 = vld [vmem:[#allocation8 + $0x2e0] ss:$8 sps:$4 sm:$0xff]  }
 0xbde   : > { %v6149_v16 = vrot.slane %v6147_v43, 2  ;;  %v10067_v43 = vld [vmem:[#allocation8 + $0x3f4] ss:$8 sps:$4 sm:$0xff]  }
 0xbe0   : > { %5799 = vmatpush1.bf16.msra.mxu1 %v9960_v38  ;;  %v10019_v38 = vld [vmem:[#allocation8 + $0x2f4] ss:$8 sps:$4 sm:$0xff]   ;;  %v6150_v23 = vor.u32 %v6149_v16, %v6146_v15  ;;  %v10065_v15 = vld [vmem:[#allocation8 + $0x3f0] ss:$8 sps:$4 sm:$0xff]   ;;  %v10070_v16 = vld [vmem:[#allocation8 + $0x404] ss:$8 sps:$4 sm:$0xff]  }
 0xbe1   : > { %5800 = vmatprep.subr.bf16.mxu1 %v9965_v57  ;;  %v5821_v57 = vpack.c.bf16 %v11919_v1, %v5817_v58 }
 0xbe3   : > { %v5862_v20 = vrot.slane %v5821_v57, 1 }
 0xbe4   : > { %5801 = vmatpush1.bf16.msra.mxu1 %v9963_v14  ;;  %v5823_v14 = vpack.c.bf16 %v5819_v30, %v5819_v30 }
 0xbe5   : > { %5802 = vmatprep.subr.bf16.mxu1 %v9968_v46  ;;  %v6138_v46 = vrot.slane %v6136_v10, 1  ;;  %v10062_v10 = vld [vmem:[#allocation8 + $0x3e0] ss:$8 sps:$4 sm:$0xff]  }
 0xbe8   : > { %5803 = vmatpush1.bf16.msra.mxu1 %v9966_v11  ;;  %v6141_v11 = vrot.slane %v6139_v33, 2  ;;  %v6362_v33 = vld [vmem:[#allocation2 + $0x8] sm:$0xf0] }
 0xbe9   : > { %5804 = vmatprep.subr.bf16.mxu1 %v9971_v17  ;;  %v10017_v17 = vld [vmem:[#allocation8 + $0x2f0] ss:$8 sps:$4 sm:$0xff]  }
 0xbec   : > { %5805 = vmatpush1.bf16.msra.mxu1 %v9969_v21  ;;  %v5863_v21 = vrot.slane %v5823_v14, 1 }
 0xbed   : > { %6030 = vmatprep.subr.bf16.mxu1 %v9974_v22  ;;  %v6142_v22 = vor.u32 %v6141_v11, %v6138_v46  ;;  %v6366_v46 = vpack.c.bf16 %v11922_v18, %v6362_v33  ;;  %v6368_v11 = vpack.c.bf16 %v6364_v37, %v6364_v37  ;;  %v10115_v33 = vld [vmem:[#allocation8 + $0x4f4] ss:$8 sps:$4 sm:$0xff]  }
 0xbef   : > { %5807 = vmatmul.mubr.bf16.vlgmr.msra.gmra.mrb[8].mxu1 %v5310_v26  ;;  %v6151_v26 = vsel %vm1742_vm7, %v6142_v22, %v6150_v23  ;;  %v10068_v22 = vld [vmem:[#allocation8 + $0x400] ss:$8 sps:$4 sm:$0xff]   ;;  %v10073_v23 = vld [vmem:[#allocation8 + $0x414] ss:$8 sps:$4 sm:$0xff]  }
 0xbf0   : > { %6031 = vmatpush1.bf16.msra.mxu1 %v9972_v25  ;;  %6062 = vmatprep.mubr.bf16.mxu1 %v5867_v41  ;;  %v5864_v25 = vsel %vm1485_vm5, %v5862_v20, %v5863_v21  ;;  %v10028_v41 = vld [vmem:[#allocation8 + $0x324] ss:$8 sps:$4 sm:$0xff]   ;;  %v6409_v20 = vrot.slane %v6366_v46, 2  ;;  %v6410_v21 = vrot.slane %v6368_v11, 2  ;;  %v10113_v46 = vld [vmem:[#allocation8 + $0x4f0] ss:$8 sps:$4 sm:$0xff]  }
 0xbf1   : > { %6032 = vmatprep.subr.bf16.mxu1 %v9977_v27  ;;  %v10023_v27 = vld [vmem:[#allocation8 + $0x310] ss:$8 sps:$4 sm:$0xff]   ;;  %v10118_v11 = vld [vmem:[#allocation8 + $0x504] ss:$8 sps:$4 sm:$0xff]  }
 0xbf4   : > { %6033 = vmatpush1.bf16.msra.mxu1 %v9975_v9  ;;  %v10026_v9 = vld [vmem:[#allocation8 + $0x320] ss:$8 sps:$4 sm:$0xff]  }
 0xbf5   : > { %6034 = vmatprep.subr.bf16.mxu1 %v9980_v39  ;;  %v10031_v39 = vld [vmem:[#allocation8 + $0x334] ss:$8 sps:$4 sm:$0xff]  }
 0xbf8   : > { %6035 = vmatpush1.bf16.msra.mxu1 %v9978_v28  ;;  %v10029_v28 = vld [vmem:[#allocation8 + $0x330] ss:$8 sps:$4 sm:$0xff]  }
 0xbf9   : > { %6036 = vmatprep.subr.bf16.mxu1 %v9983_v8  ;;  %v10034_v8 = vld [vmem:[#allocation8 + $0x344] ss:$8 sps:$4 sm:$0xff]  }
 0xbfc   : > { %6037 = vmatpush1.bf16.msra.mxu1 %v9981_v29  ;;  %v10032_v29 = vld [vmem:[#allocation8 + $0x340] ss:$8 sps:$4 sm:$0xff]  }
 0xbfd   : > { %6038 = vmatprep.subr.bf16.mxu1 %v9986_v31  ;;  %v10037_v31 = vld [vmem:[#allocation8 + $0x354] ss:$8 sps:$4 sm:$0xff]  }
 0xc00   : > { %6039 = vmatpush1.bf16.msra.mxu1 %v9984_v32  ;;  %v10035_v32 = vld [vmem:[#allocation8 + $0x350] ss:$8 sps:$4 sm:$0xff]  }
 0xc01   : > { %6040 = vmatprep.subr.bf16.mxu1 %v9989_v34  ;;  %v10040_v34 = vld [vmem:[#allocation8 + $0x364] ss:$8 sps:$4 sm:$0xff]  }
 0xc04   : > { %6041 = vmatpush1.bf16.msra.mxu1 %v9987_v35  ;;  %v10038_v35 = vld [vmem:[#allocation8 + $0x360] ss:$8 sps:$4 sm:$0xff]  }
 0xc05   : > { %6042 = vmatprep.subr.bf16.mxu1 %v9992_v44  ;;  %v10043_v44 = vld [vmem:[#allocation8 + $0x374] ss:$8 sps:$4 sm:$0xff]  }
 0xc08   : > { %6043 = vmatpush1.bf16.msra.mxu1 %v9990_v40  ;;  %v10041_v40 = vld [vmem:[#allocation8 + $0x370] ss:$8 sps:$4 sm:$0xff]  }
 0xc09   : > { %6044 = vmatprep.subr.bf16.mxu1 %v9995_v49  ;;  %v10046_v49 = vld [vmem:[#allocation8 + $0x384] ss:$8 sps:$4 sm:$0xff]  }
 0xc0c   : > { %6045 = vmatpush1.bf16.msra.mxu1 %v9993_v51  ;;  %v10044_v51 = vld [vmem:[#allocation8 + $0x380] ss:$8 sps:$4 sm:$0xff]  }
 0xc0d   : > { %6046 = vmatprep.subr.bf16.mxu1 %v9998_v52  ;;  %v10049_v52 = vld [vmem:[#allocation8 + $0x394] ss:$8 sps:$4 sm:$0xff]  }
 0xc10   : > { %6047 = vmatpush1.bf16.msra.mxu1 %v9996_v53  ;;  %v10047_v53 = vld [vmem:[#allocation8 + $0x390] ss:$8 sps:$4 sm:$0xff]  }
 0xc11   : > { %6048 = vmatprep.subr.bf16.mxu1 %v10001_v54  ;;  %v10052_v54 = vld [vmem:[#allocation8 + $0x3a4] ss:$8 sps:$4 sm:$0xff]  }
 0xc14   : > { %6049 = vmatpush1.bf16.msra.mxu1 %v9999_v55  ;;  %v10050_v55 = vld [vmem:[#allocation8 + $0x3a0] ss:$8 sps:$4 sm:$0xff]  }
 0xc15   : > { %6050 = vmatprep.subr.bf16.mxu1 %v10004_v56  ;;  %v10055_v56 = vld [vmem:[#allocation8 + $0x3b4] ss:$8 sps:$4 sm:$0xff]  }
 0xc18   : > { %6051 = vmatpush1.bf16.msra.mxu1 %v10002_v63  ;;  %v10053_v63 = vld [vmem:[#allocation8 + $0x3b0] ss:$8 sps:$4 sm:$0xff]  }
 0xc19   : > { %6052 = vmatprep.subr.bf16.mxu1 %v10007_v59  ;;  %v10058_v59 = vld [vmem:[#allocation8 + $0x3c4] ss:$8 sps:$4 sm:$0xff]  }
 0xc1c   : > { %6053 = vmatpush1.bf16.msra.mxu1 %v10005_v61  ;;  %v6077_v61 = vld [vmem:[#allocation2] sm:$0xf8] }
 0xc1d   : > { %6054 = vmatprep.subr.bf16.mxu1 %v10010_v3  ;;  %v6079_v3 = vld [vmem:[#allocation2 + $0x20] sm:$0x7]  ;;  %v6081_v36 = vpack.c.bf16 %v11919_v1, %v6077_v61  ;;  %v6624_v61 = vld [vmem:[#allocation2 + $0x28] sm:$0x1f] }
 0xc20   : > { %6055 = vmatpush1.bf16.msra.mxu1 %v10008_v62  ;;  %v10056_v62 = vld [vmem:[#allocation8 + $0x3c0] ss:$8 sps:$4 sm:$0xff]  }
 0xc21   : > { %6056 = vmatprep.subr.bf16.mxu1 %v10013_v4  ;;  %v6083_v4 = vpack.c.bf16 %v6079_v3, %v6079_v3  ;;  %v10109_v3 = vld [vmem:[#allocation8 + $0x4d4] ss:$8 sps:$4 sm:$0xff]  }
 0xc23   : > { %v6127_v58 = vshrl.u32 %v6083_v4, 16  ;;  %v6130_v30 = vshll.u32 %v6083_v4, 16  ;;  %v10112_v4 = vld [vmem:[#allocation8 + $0x4e4] ss:$8 sps:$4 sm:$0xff]  }
 0xc24   : > { %6057 = vmatpush1.bf16.msra.mxu1 %v10011_v7  ;;  %v6119_v7 = vshrl.u32 %v6081_v36, 16 }
 0xc25   : > { %6058 = vmatprep.subr.bf16.mxu1 %v10016_v12  ;;  %v6122_v12 = vshll.u32 %v6081_v36, 16  ;;  %v6129_v57 = vrot.slane %v6127_v58, 1  ;;  %v6132_v14 = vrot.slane %v6130_v30, 2  ;;  %v10107_v36 = vld [vmem:[#allocation8 + $0x4d0] ss:$8 sps:$4 sm:$0xff]  }
 0xc28   : > { %6059 = vmatpush1.bf16.msra.mxu1 %v10014_v13  ;;  %v6121_v13 = vrot.slane %v6119_v7, 1 }
 0xc29   : > { %6060 = vmatprep.subr.bf16.mxu1 %v10019_v38  ;;  %v6124_v38 = vrot.slane %v6122_v12, 2 }
 0xc2c   : > { %6061 = vmatpush1.bf16.msra.mxu1 %v10017_v17  ;;  %v6125_v17 = vor.u32 %v6124_v38, %v6121_v13 }
 0xc2d   : > { %6314 = vmatprep.subr.bf16.mxu1 %v10022_v19  ;;  %v6133_v19 = vor.u32 %v6132_v14, %v6129_v57 }
 0xc2f   : > { %6063 = vmatmul.mubr.bf16.vlgmr.msra.gmra.mrb[8].mxu1 %v5864_v25  ;;  %v10071_v25 = vld [vmem:[#allocation8 + $0x410] ss:$8 sps:$4 sm:$0xff]  }
 0xc30   : > { %6315 = vmatpush1.bf16.msra.mxu1 %v10020_v24  ;;  %6346 = vmatprep.mubr.bf16.mxu1 %v6151_v26  ;;  %v6134_v24 = vsel %vm1742_vm7, %v6125_v17, %v6133_v19  ;;  %v10076_v26 = vld [vmem:[#allocation8 + $0x424] ss:$8 sps:$4 sm:$0xff]  }
 0xc31   : > { %6316 = vmatprep.subr.bf16.mxu1 %v10025_v50  ;;  %v6411_v50 = vsel %vm2031_vm8, %v6409_v20, %v6410_v21  ;;  %v10116_v20 = vld [vmem:[#allocation8 + $0x500] ss:$8 sps:$4 sm:$0xff]   ;;  %v10121_v21 = vld [vmem:[#allocation8 + $0x514] ss:$8 sps:$4 sm:$0xff]  }
 0xc34   : > { %6317 = vmatpush1.bf16.msra.mxu1 %v10023_v27  ;;  %v10074_v27 = vld [vmem:[#allocation8 + $0x420] ss:$8 sps:$4 sm:$0xff]  }
 0xc35   : > { %6318 = vmatprep.subr.bf16.mxu1 %v10028_v41  ;;  %v10079_v41 = vld [vmem:[#allocation8 + $0x434] ss:$8 sps:$4 sm:$0xff]  }
 0xc38   : > { %6319 = vmatpush1.bf16.msra.mxu1 %v10026_v9  ;;  %v10077_v9 = vld [vmem:[#allocation8 + $0x430] ss:$8 sps:$4 sm:$0xff]  }
 0xc39   : > { %6320 = vmatprep.subr.bf16.mxu1 %v10031_v39  ;;  %v10082_v39 = vld [vmem:[#allocation8 + $0x444] ss:$8 sps:$4 sm:$0xff]  }
 0xc3c   : > { %6321 = vmatpush1.bf16.msra.mxu1 %v10029_v28  ;;  %v10080_v28 = vld [vmem:[#allocation8 + $0x440] ss:$8 sps:$4 sm:$0xff]  }
 0xc3d   : > { %6322 = vmatprep.subr.bf16.mxu1 %v10034_v8  ;;  %v10085_v8 = vld [vmem:[#allocation8 + $0x454] ss:$8 sps:$4 sm:$0xff]  }
 0xc40   : > { %6323 = vmatpush1.bf16.msra.mxu1 %v10032_v29  ;;  %v10083_v29 = vld [vmem:[#allocation8 + $0x450] ss:$8 sps:$4 sm:$0xff]  }
 0xc41   : > { %6324 = vmatprep.subr.bf16.mxu1 %v10037_v31  ;;  %v10088_v31 = vld [vmem:[#allocation8 + $0x464] ss:$8 sps:$4 sm:$0xff]  }
 0xc44   : > { %6325 = vmatpush1.bf16.msra.mxu1 %v10035_v32  ;;  %v10086_v32 = vld [vmem:[#allocation8 + $0x460] ss:$8 sps:$4 sm:$0xff]  }
 0xc45   : > { %6326 = vmatprep.subr.bf16.mxu1 %v10040_v34  ;;  %v10091_v34 = vld [vmem:[#allocation8 + $0x474] ss:$8 sps:$4 sm:$0xff]  }
 0xc48   : > { %6327 = vmatpush1.bf16.msra.mxu1 %v10038_v35  ;;  %v10089_v35 = vld [vmem:[#allocation8 + $0x470] ss:$8 sps:$4 sm:$0xff]  }
 0xc49   : > { %6328 = vmatprep.subr.bf16.mxu1 %v10043_v44  ;;  %v10094_v44 = vld [vmem:[#allocation8 + $0x484] ss:$8 sps:$4 sm:$0xff]  }
 0xc4c   : > { %6329 = vmatpush1.bf16.msra.mxu1 %v10041_v40  ;;  %v10092_v40 = vld [vmem:[#allocation8 + $0x480] ss:$8 sps:$4 sm:$0xff]  }
 0xc4d   : > { %6330 = vmatprep.subr.bf16.mxu1 %v10046_v49  ;;  %v10097_v49 = vld [vmem:[#allocation8 + $0x494] ss:$8 sps:$4 sm:$0xff]  }
 0xc50   : > { %6331 = vmatpush1.bf16.msra.mxu1 %v10044_v51  ;;  %v10095_v51 = vld [vmem:[#allocation8 + $0x490] ss:$8 sps:$4 sm:$0xff]  }
 0xc51   : > { %6332 = vmatprep.subr.bf16.mxu1 %v10049_v52  ;;  %v10100_v52 = vld [vmem:[#allocation8 + $0x4a4] ss:$8 sps:$4 sm:$0xff]  }
 0xc54   : > { %6333 = vmatpush1.bf16.msra.mxu1 %v10047_v53  ;;  %v10098_v53 = vld [vmem:[#allocation8 + $0x4a0] ss:$8 sps:$4 sm:$0xff]  }
 0xc55   : > { %6334 = vmatprep.subr.bf16.mxu1 %v10052_v54  ;;  %v10103_v54 = vld [vmem:[#allocation8 + $0x4b4] ss:$8 sps:$4 sm:$0xff]  }
 0xc58   : > { %6335 = vmatpush1.bf16.msra.mxu1 %v10050_v55  ;;  %v10101_v55 = vld [vmem:[#allocation8 + $0x4b0] ss:$8 sps:$4 sm:$0xff]  }
 0xc59   : > { %6336 = vmatprep.subr.bf16.mxu1 %v10055_v56  ;;  %v10106_v56 = vld [vmem:[#allocation8 + $0x4c4] ss:$8 sps:$4 sm:$0xff]  }
 0xc5c   : > { %6337 = vmatpush1.bf16.msra.mxu1 %v10053_v63  ;;  %v10104_v63 = vld [vmem:[#allocation8 + $0x4c0] ss:$8 sps:$4 sm:$0xff]  }
 0xc5d   : > { %6338 = vmatprep.subr.bf16.mxu1 %v10058_v59  ;;  %v6622_v59 = vld [vmem:[#allocation2 + $0x8] sm:$0xe0] }
 0xc60   : > { %6339 = vmatpush1.bf16.msra.mxu1 %v10056_v62  ;;  %v6626_v62 = vpack.c.bf16 %v11922_v18, %v6622_v59  ;;  %v10142_v59 = vld [vmem:[#allocation8 + $0x584] ss:$8 sps:$4 sm:$0xff]  }
 0xc61   : > { %6340 = vmatprep.subr.bf16.mxu1 %v10061_v0  ;;  %v6628_v0 = vpack.c.bf16 %v6624_v61, %v6624_v61  ;;  %v10140_v61 = vld [vmem:[#allocation8 + $0x580] ss:$8 sps:$4 sm:$0xff]  }
 0xc62   : > { %v6680_v7 = vshrl.u32 %v6626_v62, 16  ;;  %v6683_v12 = vshll.u32 %v6626_v62, 16  ;;  %v10143_v62 = vld [vmem:[#allocation8 + $0x590] ss:$8 sps:$4 sm:$0xff]  }
 0xc63   : > { %v6688_v58 = vshrl.u32 %v6628_v0, 16  ;;  %v6691_v30 = vshll.u32 %v6628_v0, 16  ;;  %v10148_v0 = vld [vmem:[#allocation8 + $0x5a4] ss:$8 sps:$4 sm:$0xff]  }
 0xc64   : > { %6341 = vmatpush1.bf16.msra.mxu1 %v10059_v5  ;;  %v6361_v5 = vld [vmem:[#allocation2] sm:$0xf0]  ;;  %v6682_v13 = vrot.slane %v6680_v7, 2  ;;  %v6685_v38 = vrot.slane %v6683_v12, 3 }
 0xc65   : > { %6342 = vmatprep.subr.bf16.mxu1 %v10064_v6  ;;  %v6363_v6 = vld [vmem:[#allocation2 + $0x20] sm:$0xf]  ;;  %v6365_v37 = vpack.c.bf16 %v11919_v1, %v6361_v5  ;;  %v6690_v57 = vrot.slane %v6688_v58, 2  ;;  %v6693_v14 = vrot.slane %v6691_v30, 3  ;;  %v6621_v7 = vld [vmem:[#allocation2] sm:$0xe0] }
 0xc66   : > { %v6686_v17 = vor.u32 %v6685_v38, %v6682_v13  ;;  %v10149_v5 = vld [vmem:[#allocation8 + $0x5b0] ss:$8 sps:$4 sm:$0xff]   ;;  %v10152_v58 = vld [vmem:[#allocation8 + $0x5c0] ss:$8 sps:$4 sm:$0xff]   ;;  %v10157_v30 = vld [vmem:[#allocation8 + $0x5d4] ss:$8 sps:$4 sm:$0xff]  }
 0xc67   : > { %v6694_v19 = vor.u32 %v6693_v14, %v6690_v57  ;;  %v6623_v12 = vld [vmem:[#allocation2 + $0x20] sm:$0x1f] }
 0xc68   : > { %6343 = vmatpush1.bf16.msra.mxu1 %v10062_v10  ;;  %v10110_v10 = vld [vmem:[#allocation8 + $0x4e0] ss:$8 sps:$4 sm:$0xff]  }
 0xc69   : > { %6344 = vmatprep.subr.bf16.mxu1 %v10067_v43  ;;  %v6367_v43 = vpack.c.bf16 %v6363_v6, %v6363_v6  ;;  %v10154_v6 = vld [vmem:[#allocation8 + $0x5c4] ss:$8 sps:$4 sm:$0xff]  }
 0xc6c   : > { %6345 = vmatpush1.bf16.msra.mxu1 %v10065_v15  ;;  %v6406_v15 = vrot.slane %v6365_v37, 2  ;;  %v10155_v37 = vld [vmem:[#allocation8 + $0x5d0] ss:$8 sps:$4 sm:$0xff]  }
 0xc6d   : > { %6574 = vmatprep.subr.bf16.mxu1 %v10070_v16  ;;  %v6407_v16 = vrot.slane %v6367_v43, 2  ;;  %v10160_v43 = vld [vmem:[#allocation8 + $0x5e4] ss:$8 sps:$4 sm:$0xff]  }
 0xc6f   : > { %6347 = vmatmul.mubr.bf16.vlgmr.msra.gmra.mrb[8].mxu1 %v6134_v24  ;;  %v8796_v24 = vld [vmem:[#allocation3] ss:$0 sm:$0xff] }
 0xc70   : > { %6575 = vmatpush1.bf16.msra.mxu1 %v10068_v22  ;;  %6606 = vmatprep.mubr.bf16.mxu1 %v6411_v50  ;;  %v6408_v22 = vsel %vm2031_vm8, %v6406_v15, %v6407_v16  ;;  %v10212_v50 = vld [vmem:[#allocation9] ss:$8 sps:$4 sm:$0xff]   ;;  %v6908_v15 = vld [vmem:[#allocation2 + $0x28] sm:$0x3f] }
 0xc71   : > { %6576 = vmatprep.subr.bf16.mxu1 %v10073_v23  ;;  %v6695_v23 = vsel %vm2288_vm9, %v6686_v17, %v6694_v19  ;;  %v10163_v16 = vld [vmem:[#allocation8 + $0x5f4] ss:$8 sps:$4 sm:$0xff]  }
 0xc74   : > { %6577 = vmatpush1.bf16.msra.mxu1 %v10071_v25  ;;  %v10119_v25 = vld [vmem:[#allocation8 + $0x510] ss:$8 sps:$4 sm:$0xff]  }
 0xc75   : > { %6578 = vmatprep.subr.bf16.mxu1 %v10076_v26  ;;  %v10214_v26 = vld [vmem:[#allocation9 + $0x4] ss:$8 sps:$4 sm:$0xff]  }
 0xc76   : > { %7649 = vmatprep.subr.bf16.mxu0 %v10214_v26 }
 0xc77   : > { %7650 = vmatpush1.bf16.msra.mxu0 %v10212_v50 }
 0xc78   : > { %6579 = vmatpush1.bf16.msra.mxu1 %v10074_v27  ;;  %v10217_v27 = vld [vmem:[#allocation9 + $0x14] ss:$8 sps:$4 sm:$0xff]  }
 0xc79   : > { %6580 = vmatprep.subr.bf16.mxu1 %v10079_v41  ;;  %v10124_v41 = vld [vmem:[#allocation8 + $0x524] ss:$8 sps:$4 sm:$0xff]   ;;  %7651 = vmatprep.subr.bf16.mxu0 %v10217_v27 }
 0xc7c   : > { %6581 = vmatpush1.bf16.msra.mxu1 %v10077_v9  ;;  %v10516_v9 = vmov 0  }
 0xc7d   : > { %6582 = vmatprep.subr.bf16.mxu1 %v10082_v39  ;;  %9106 = vset.pattern.permute.xlu0 %v10516_v9  ;;  %v10215_v39 = vld [vmem:[#allocation9 + $0x10] ss:$8 sps:$4 sm:$0xff]   ;;  %v10169_v9 = vld [vmem:[#allocation8 + $0x614] ss:$8 sps:$4 sm:$0xff]  }
 0xc7e   : > { %7171 = vperm.xlu0 %9106, %v8796_v24   ;;  %7652 = vmatpush1.bf16.msra.mxu0 %v10215_v39  ;;  %v10166_v24 = vld [vmem:[#allocation8 + $0x604] ss:$8 sps:$4 sm:$0xff]  }
 0xc80   : > { %6583 = vmatpush1.bf16.msra.mxu1 %v10080_v28  ;;  %v10122_v28 = vld [vmem:[#allocation8 + $0x520] ss:$8 sps:$4 sm:$0xff]  }
 0xc81   : > { %6584 = vmatprep.subr.bf16.mxu1 %v10085_v8  ;;  %v10220_v8 = vld [vmem:[#allocation9 + $0x24] ss:$8 sps:$4 sm:$0xff]  }
 0xc82   : > { %7653 = vmatprep.subr.bf16.mxu0 %v10220_v8  ;;  %v10172_v8 = vld [vmem:[#allocation8 + $0x624] ss:$8 sps:$4 sm:$0xff]  }
 0xc84   : > { %6585 = vmatpush1.bf16.msra.mxu1 %v10083_v29  ;;  %v10127_v29 = vld [vmem:[#allocation8 + $0x534] ss:$8 sps:$4 sm:$0xff]  }
 0xc85   : > { %6586 = vmatprep.subr.bf16.mxu1 %v10088_v31  ;;  %v10218_v31 = vld [vmem:[#allocation9 + $0x20] ss:$8 sps:$4 sm:$0xff]  }
 0xc86   : > { %7654 = vmatpush1.bf16.msra.mxu0 %v10218_v31  ;;  %v10175_v31 = vld [vmem:[#allocation8 + $0x634] ss:$8 sps:$4 sm:$0xff]  }
 0xc88   : > { %6587 = vmatpush1.bf16.msra.mxu1 %v10086_v32  ;;  %v10125_v32 = vld [vmem:[#allocation8 + $0x530] ss:$8 sps:$4 sm:$0xff]  }
 0xc89   : > { %6588 = vmatprep.subr.bf16.mxu1 %v10091_v34  ;;  %v10223_v34 = vld [vmem:[#allocation9 + $0x34] ss:$8 sps:$4 sm:$0xff]  }
 0xc8a   : > { %7655 = vmatprep.subr.bf16.mxu0 %v10223_v34  ;;  %v10178_v34 = vld [vmem:[#allocation8 + $0x644] ss:$8 sps:$4 sm:$0xff]  }
 0xc8c   : > { %6589 = vmatpush1.bf16.msra.mxu1 %v10089_v35  ;;  %v10130_v35 = vld [vmem:[#allocation8 + $0x544] ss:$8 sps:$4 sm:$0xff]  }
 0xc8d   : > { %6590 = vmatprep.subr.bf16.mxu1 %v10094_v44  ;;  %v10221_v44 = vld [vmem:[#allocation9 + $0x30] ss:$8 sps:$4 sm:$0xff]  }
 0xc8e   : > { %7656 = vmatpush1.bf16.msra.mxu0 %v10221_v44  ;;  %v10181_v44 = vld [vmem:[#allocation8 + $0x654] ss:$8 sps:$4 sm:$0xff]  }
 0xc90   : > { %6591 = vmatpush1.bf16.msra.mxu1 %v10092_v40  ;;  %v10128_v40 = vld [vmem:[#allocation8 + $0x540] ss:$8 sps:$4 sm:$0xff]  }
 0xc91   : > { %6592 = vmatprep.subr.bf16.mxu1 %v10097_v49  ;;  %v10226_v49 = vld [vmem:[#allocation9 + $0x44] ss:$8 sps:$4 sm:$0xff]  }
 0xc92   : > { %7657 = vmatprep.subr.bf16.mxu0 %v10226_v49  ;;  %v10184_v49 = vld [vmem:[#allocation8 + $0x664] ss:$8 sps:$4 sm:$0xff]  }
 0xc94   : > { %6593 = vmatpush1.bf16.msra.mxu1 %v10095_v51  ;;  %v10133_v51 = vld [vmem:[#allocation8 + $0x554] ss:$8 sps:$4 sm:$0xff]  }
 0xc95   : > { %6594 = vmatprep.subr.bf16.mxu1 %v10100_v52  ;;  %v10224_v52 = vld [vmem:[#allocation9 + $0x40] ss:$8 sps:$4 sm:$0xff]  }
 0xc96   : > { %7658 = vmatpush1.bf16.msra.mxu0 %v10224_v52  ;;  %v10187_v52 = vld [vmem:[#allocation8 + $0x674] ss:$8 sps:$4 sm:$0xff]  }
 0xc98   : > { %6595 = vmatpush1.bf16.msra.mxu1 %v10098_v53  ;;  %v10131_v53 = vld [vmem:[#allocation8 + $0x550] ss:$8 sps:$4 sm:$0xff]  }
 0xc99   : > { %6596 = vmatprep.subr.bf16.mxu1 %v10103_v54  ;;  %v10136_v54 = vld [vmem:[#allocation8 + $0x564] ss:$8 sps:$4 sm:$0xff]  }
 0xc9c   : > { %6597 = vmatpush1.bf16.msra.mxu1 %v10101_v55  ;;  %v10134_v55 = vld [vmem:[#allocation8 + $0x560] ss:$8 sps:$4 sm:$0xff]  }
 0xc9d   : > { %6598 = vmatprep.subr.bf16.mxu1 %v10106_v56  ;;  %v10139_v56 = vld [vmem:[#allocation8 + $0x574] ss:$8 sps:$4 sm:$0xff]  }
 0xca0   : > { %6599 = vmatpush1.bf16.msra.mxu1 %v10104_v63  ;;  %v10137_v63 = vld [vmem:[#allocation8 + $0x570] ss:$8 sps:$4 sm:$0xff]  }
 0xca1   : > { %6600 = vmatprep.subr.bf16.mxu1 %v10109_v3  ;;  %v10145_v3 = vld [vmem:[#allocation8 + $0x594] ss:$8 sps:$4 sm:$0xff]  }
 0xca4   : > { %6601 = vmatpush1.bf16.msra.mxu1 %v10107_v36  ;;  %v10146_v36 = vld [vmem:[#allocation8 + $0x5a0] ss:$8 sps:$4 sm:$0xff]  }
 0xca5   : > { %6602 = vmatprep.subr.bf16.mxu1 %v10112_v4  ;;  %v10151_v4 = vld [vmem:[#allocation8 + $0x5b4] ss:$8 sps:$4 sm:$0xff]  }
 0xca8   : > { %6603 = vmatpush1.bf16.msra.mxu1 %v10110_v10  ;;  %v6625_v10 = vpack.c.bf16 %v11919_v1, %v6621_v7  ;;  %v6905_v7 = vld [vmem:[#allocation2] sm:$0xc0] }
 0xca9   : > { %6604 = vmatprep.subr.bf16.mxu1 %v10115_v33  ;;  %v6627_v33 = vpack.c.bf16 %v6623_v12, %v6623_v12  ;;  %v6907_v12 = vld [vmem:[#allocation2 + $0x20] sm:$0x3f] }
 0xcaa   : > { %v6663_v13 = vshrl.u32 %v6625_v10, 16  ;;  %v6666_v38 = vshll.u32 %v6625_v10, 16  ;;  %v10332_v10 = vld [vmem:[#allocation2 + $0x10] sm:$0xff] }
 0xcab   : > { %v6671_v57 = vshrl.u32 %v6627_v33, 16  ;;  %v6674_v14 = vshll.u32 %v6627_v33, 16  ;;  %v6909_v33 = vpack.c.bf16 %v10332_v10, %v6905_v7 }
 0xcac   : > { %6605 = vmatpush1.bf16.msra.mxu1 %v10113_v46  ;;  %v10158_v46 = vld [vmem:[#allocation8 + $0x5e0] ss:$8 sps:$4 sm:$0xff]   ;;  %v6665_v17 = vrot.slane %v6663_v13, 2  ;;  %v6668_v19 = vrot.slane %v6666_v38, 3 }
 0xcad   : > { %6858 = vmatprep.subr.bf16.mxu1 %v10118_v11  ;;  %v6906_v11 = vld [vmem:[#allocation2 + $0x8] sm:$0xc0]  ;;  %v6950_v13 = vrot.slane %v6909_v33, 3 }
 0xcae   : > { %v6910_v1 = vpack.c.bf16 %v11922_v18, %v6906_v11  ;;  %v6669_v50 = vor.u32 %v6668_v19, %v6665_v17  ;;  %v10167_v18 = vld [vmem:[#allocation8 + $0x610] ss:$8 sps:$4 sm:$0xff]   ;;  %v10232_v11 = vld [vmem:[#allocation9 + $0x64] ss:$8 sps:$4 sm:$0xff]  }
 0xcaf   : > { %6607 = vmatmul.mubr.bf16.vlgmr.msra.gmra.mrb[8].mxu1 %v6408_v22  ;;  %v6912_v22 = vpack.c.bf16 %v6908_v15, %v6908_v15  ;;  %v10230_v15 = vld [vmem:[#allocation9 + $0x60] ss:$8 sps:$4 sm:$0xff]   ;;  %v10233_v17 = vld [vmem:[#allocation9 + $0x70] ss:$8 sps:$4 sm:$0xff]   ;;  %v10238_v19 = vld [vmem:[#allocation9 + $0x84] ss:$8 sps:$4 sm:$0xff]  }
 0xcb0   : > { %6859 = vmatpush1.bf16.msra.mxu1 %v10116_v20  ;;  %6890 = vmatprep.mubr.bf16.mxu1 %v6695_v23  ;;  %v6673_v20 = vrot.slane %v6671_v57, 2  ;;  %v10161_v23 = vld [vmem:[#allocation8 + $0x5f0] ss:$8 sps:$4 sm:$0xff]   ;;  %v6953_v26 = vrot.slane %v6910_v1, 3 }
 0xcb1   : > { %6860 = vmatprep.subr.bf16.mxu1 %v10121_v21  ;;  %v6676_v21 = vrot.slane %v6674_v14, 3  ;;  %v6954_v27 = vrot.slane %v6912_v22, 3  ;;  %v10229_v14 = vld [vmem:[#allocation9 + $0x54] ss:$8 sps:$4 sm:$0xff]   ;;  %v10239_v1 = vld [vmem:[#allocation9 + $0x90] ss:$8 sps:$4 sm:$0xff]  }
 0xcb2   : > { %7659 = vmatprep.subr.bf16.mxu0 %v10229_v14  ;;  %v10244_v22 = vld [vmem:[#allocation9 + $0xa4] ss:$8 sps:$4 sm:$0xff]  }
 0xcb4   : > { %6861 = vmatpush1.bf16.msra.mxu1 %v10119_v25  ;;  %v6677_v25 = vor.u32 %v6676_v21, %v6673_v20  ;;  %v10236_v20 = vld [vmem:[#allocation9 + $0x80] ss:$8 sps:$4 sm:$0xff]   ;;  %v10241_v21 = vld [vmem:[#allocation9 + $0x94] ss:$8 sps:$4 sm:$0xff]  }
 0xcb5   : > { %6862 = vmatprep.subr.bf16.mxu1 %v10124_v41  ;;  %v10164_v41 = vld [vmem:[#allocation8 + $0x600] ss:$8 sps:$4 sm:$0xff]  }
 0xcb6   : > { %v6678_v39 = vsel %vm2288_vm9, %v6669_v50, %v6677_v25  ;;  %v10245_v50 = vld [vmem:[#allocation9 + $0xb0] ss:$8 sps:$4 sm:$0xff]   ;;  %v10250_v25 = vld [vmem:[#allocation9 + $0xc4] ss:$8 sps:$4 sm:$0xff]  }
 0xcb8   : > { %6863 = vmatpush1.bf16.msra.mxu1 %v10122_v28  ;;  %v6955_v28 = vsel %vm2577_vm10, %v6953_v26, %v6954_v27  ;;  %v10248_v26 = vld [vmem:[#allocation9 + $0xc0] ss:$8 sps:$4 sm:$0xff]   ;;  %v10253_v27 = vld [vmem:[#allocation9 + $0xd4] ss:$8 sps:$4 sm:$0xff]  }
 0xcb9   : > { %6864 = vmatprep.subr.bf16.mxu1 %v10127_v29  ;;  %v10170_v29 = vld [vmem:[#allocation8 + $0x620] ss:$8 sps:$4 sm:$0xff]  }
 0xcbc   : > { %6865 = vmatpush1.bf16.msra.mxu1 %v10125_v32  ;;  %v10173_v32 = vld [vmem:[#allocation8 + $0x630] ss:$8 sps:$4 sm:$0xff]  }
 0xcbd   : > { %6866 = vmatprep.subr.bf16.mxu1 %v10130_v35  ;;  %v10176_v35 = vld [vmem:[#allocation8 + $0x640] ss:$8 sps:$4 sm:$0xff]  }
 0xcc0   : > { %6867 = vmatpush1.bf16.msra.mxu1 %v10128_v40  ;;  %v10179_v40 = vld [vmem:[#allocation8 + $0x650] ss:$8 sps:$4 sm:$0xff]  }
 0xcc1   : > { %6868 = vmatprep.subr.bf16.mxu1 %v10133_v51  ;;  %v10182_v51 = vld [vmem:[#allocation8 + $0x660] ss:$8 sps:$4 sm:$0xff]  }
 0xcc4   : > { %6869 = vmatpush1.bf16.msra.mxu1 %v10131_v53  ;;  %v10185_v53 = vld [vmem:[#allocation8 + $0x670] ss:$8 sps:$4 sm:$0xff]  }
 0xcc5   : > { %6870 = vmatprep.subr.bf16.mxu1 %v10136_v54  ;;  %v10190_v54 = vld [vmem:[#allocation8 + $0x684] ss:$8 sps:$4 sm:$0xff]  }
 0xcc8   : > { %6871 = vmatpush1.bf16.msra.mxu1 %v10134_v55  ;;  %v10188_v55 = vld [vmem:[#allocation8 + $0x680] ss:$8 sps:$4 sm:$0xff]  }
 0xcc9   : > { %6872 = vmatprep.subr.bf16.mxu1 %v10139_v56  ;;  %v10193_v56 = vld [vmem:[#allocation8 + $0x694] ss:$8 sps:$4 sm:$0xff]  }
 0xccc   : > { %6873 = vmatpush1.bf16.msra.mxu1 %v10137_v63  ;;  %v10191_v63 = vld [vmem:[#allocation8 + $0x690] ss:$8 sps:$4 sm:$0xff]  }
 0xccd   : > { %6874 = vmatprep.subr.bf16.mxu1 %v10142_v59  ;;  %v10196_v59 = vld [vmem:[#allocation8 + $0x6a4] ss:$8 sps:$4 sm:$0xff]  }
 0xcd0   : > { %6875 = vmatpush1.bf16.msra.mxu1 %v10140_v61  ;;  %v10194_v61 = vld [vmem:[#allocation8 + $0x6a0] ss:$8 sps:$4 sm:$0xff]  }
 0xcd1   : > { %6876 = vmatprep.subr.bf16.mxu1 %v10145_v3  ;;  %v10199_v3 = vld [vmem:[#allocation8 + $0x6b4] ss:$8 sps:$4 sm:$0xff]  }
 0xcd4   : > { %6877 = vmatpush1.bf16.msra.mxu1 %v10143_v62  ;;  %v10197_v62 = vld [vmem:[#allocation8 + $0x6b0] ss:$8 sps:$4 sm:$0xff]  }
 0xcd5   : > { %6878 = vmatprep.subr.bf16.mxu1 %v10148_v0  ;;  %v10202_v0 = vld [vmem:[#allocation8 + $0x6c4] ss:$8 sps:$4 sm:$0xff]  }
 0xcd8   : > { %6879 = vmatpush1.bf16.msra.mxu1 %v10146_v36  ;;  %v10200_v36 = vld [vmem:[#allocation8 + $0x6c0] ss:$8 sps:$4 sm:$0xff]  }
 0xcd9   : > { %6880 = vmatprep.subr.bf16.mxu1 %v10151_v4  ;;  %v10205_v4 = vld [vmem:[#allocation8 + $0x6d4] ss:$8 sps:$4 sm:$0xff]  }
 0xcdc   : > { %6881 = vmatpush1.bf16.msra.mxu1 %v10149_v5  ;;  %v10203_v5 = vld [vmem:[#allocation8 + $0x6d0] ss:$8 sps:$4 sm:$0xff]  }
 0xcdd   : > { %6882 = vmatprep.subr.bf16.mxu1 %v10154_v6  ;;  %v10208_v6 = vld [vmem:[#allocation8 + $0x6e4] ss:$8 sps:$4 sm:$0xff]  }
 0xce0   : > { %6883 = vmatpush1.bf16.msra.mxu1 %v10152_v58  ;;  %v10206_v58 = vld [vmem:[#allocation8 + $0x6e0] ss:$8 sps:$4 sm:$0xff]  }
 0xce1   : > { %6884 = vmatprep.subr.bf16.mxu1 %v10157_v30  ;;  %v10211_v30 = vld [vmem:[#allocation8 + $0x6f4] ss:$8 sps:$4 sm:$0xff]  }
 0xce4   : > { %6885 = vmatpush1.bf16.msra.mxu1 %v10155_v37  ;;  %v6911_v37 = vpack.c.bf16 %v6907_v12, %v6907_v12 }
 0xce5   : > { %6886 = vmatprep.subr.bf16.mxu1 %v10160_v43  ;;  %v10209_v43 = vld [vmem:[#allocation8 + $0x6f0] ss:$8 sps:$4 sm:$0xff]  }
 0xce6   : > { %v6951_v38 = vrot.slane %v6911_v37, 3 }
 0xce8   : > { %6887 = vmatpush1.bf16.msra.mxu1 %v10158_v46  ;;  %v6952_v57 = vsel %vm2577_vm10, %v6950_v13, %v6951_v38  ;;  %v10227_v46 = vld [vmem:[#allocation9 + $0x50] ss:$8 sps:$4 sm:$0xff]  }
 0xce9   : > { %6888 = vmatprep.subr.bf16.mxu1 %v10163_v16  ;;  %7660 = vmatpush1.bf16.msra.mxu0 %v10227_v46  ;;  %v10235_v16 = vld [vmem:[#allocation9 + $0x74] ss:$8 sps:$4 sm:$0xff]  }
 0xcea   : > { %7661 = vmatprep.subr.bf16.mxu0 %v10232_v11 }
 0xcec   : > { %6889 = vmatpush1.bf16.msra.mxu1 %v10161_v23  ;;  %v10242_v23 = vld [vmem:[#allocation9 + $0xa0] ss:$8 sps:$4 sm:$0xff]  }
 0xced   : > { %7118 = vmatprep.subr.bf16.mxu1 %v10166_v24  ;;  %7662 = vmatpush1.bf16.msra.mxu0 %v10230_v15  ;;  %v10247_v24 = vld [vmem:[#allocation9 + $0xb4] ss:$8 sps:$4 sm:$0xff]  }
 0xcee   : > { %7663 = vmatprep.subr.bf16.mxu0 %v10235_v16 }
 0xcef   : > { %6891 = vmatmul.mubr.bf16.vlgmr.msra.gmra.mrb[8].mxu1 %v6678_v39  ;;  %v10254_v39 = vld [vmem:[#allocation9 + $0xe0] ss:$8 sps:$4 sm:$0xff]  }
 0xcf0   : > { %7119 = vmatpush1.bf16.msra.mxu1 %v10164_v41  ;;  %7150 = vmatprep.mubr.bf16.mxu1 %v6955_v28  ;;  %v10251_v41 = vld [vmem:[#allocation9 + $0xd0] ss:$8 sps:$4 sm:$0xff]   ;;  %v10259_v28 = vld [vmem:[#allocation9 + $0xf4] ss:$8 sps:$4 sm:$0xff]  }
 0xcf1   : > { %7120 = vmatprep.subr.bf16.mxu1 %v10169_v9  ;;  %7664 = vmatpush1.bf16.msra.mxu0 %v10233_v17  ;;  %v10256_v9 = vld [vmem:[#allocation9 + $0xe4] ss:$8 sps:$4 sm:$0xff]  }
 0xcf2   : > { %7665 = vmatprep.subr.bf16.mxu0 %v10238_v19 }
 0xcf4   : > { %7121 = vmatpush1.bf16.msra.mxu1 %v10167_v18  ;;  %v10257_v18 = vld [vmem:[#allocation9 + $0xf0] ss:$8 sps:$4 sm:$0xff]  }
 0xcf5   : > { %7122 = vmatprep.subr.bf16.mxu1 %v10172_v8  ;;  %7666 = vmatpush1.bf16.msra.mxu0 %v10236_v20 }
 0xcf6   : > { %7667 = vmatprep.subr.bf16.mxu0 %v10241_v21 }
 0xcf8   : > { %7123 = vmatpush1.bf16.msra.mxu1 %v10170_v29 }
 0xcf9   : > { %7124 = vmatprep.subr.bf16.mxu1 %v10175_v31  ;;  %7668 = vmatpush1.bf16.msra.mxu0 %v10239_v1 }
 0xcfa   : > { %7669 = vmatprep.subr.bf16.mxu0 %v10244_v22 }
 0xcfc   : > { %7125 = vmatpush1.bf16.msra.mxu1 %v10173_v32 }
 0xcfd   : > { %7126 = vmatprep.subr.bf16.mxu1 %v10178_v34  ;;  %7670 = vmatpush1.bf16.msra.mxu0 %v10242_v23  ;;  %v7172_v8 = vpop.permute.xlu0 %7171  ;;  %v7692_v23 = vld [vmem:[%s12018_s0] sm:$0x3] }
 0xcfe   : > { %7671 = vmatprep.subr.bf16.mxu0 %v10247_v24  ;;  %v7697_v24 = vrot.slane %v7692_v23, %v10999_v45 }
 0xd00   : > { %7127 = vmatpush1.bf16.msra.mxu1 %v10176_v35 }
 0xd01   : > { %7128 = vmatprep.subr.bf16.mxu1 %v10181_v44  ;;  %7672 = vmatpush1.bf16.msra.mxu0 %v10245_v50  ;;  %v7701_v50 = vrot.slane %v7692_v23, %v11005_v47 }
 0xd02   : > { %7673 = vmatprep.subr.bf16.mxu0 %v10250_v25 }
 0xd04   : > { %7129 = vmatpush1.bf16.msra.mxu1 %v10179_v40 }
 0xd05   : > { %7130 = vmatprep.subr.bf16.mxu1 %v10184_v49  ;;  %7674 = vmatpush1.bf16.msra.mxu0 %v10248_v26 }
 0xd06   : > { %7675 = vmatprep.subr.bf16.mxu0 %v10253_v27 }
 0xd08   : > { %7131 = vmatpush1.bf16.msra.mxu1 %v10182_v51 }
 0xd09   : > { %7132 = vmatprep.subr.bf16.mxu1 %v10187_v52  ;;  %7676 = vmatpush1.bf16.msra.mxu0 %v10251_v41 }
 0xd0a   : > { %7677 = vmatprep.subr.bf16.mxu0 %v10256_v9 }
 0xd0c   : > { %7133 = vmatpush1.bf16.msra.mxu1 %v10185_v53 }
 0xd0d   : > { %7134 = vmatprep.subr.bf16.mxu1 %v10190_v54  ;;  %7678 = vmatpush1.bf16.msra.mxu0 %v10254_v39 }
 0xd0e   : > { %7679 = vmatprep.subr.bf16.mxu0 %v10259_v28 }
 0xd10   : > { %7135 = vmatpush1.bf16.msra.mxu1 %v10188_v55 }
 0xd11   : > { %7136 = vmatprep.subr.bf16.mxu1 %v10193_v56  ;;  %7680 = vmatpush1.bf16.msra.mxu0 %v10257_v18 }
 0xd14   : > { %7137 = vmatpush1.bf16.msra.mxu1 %v10191_v63 }
 0xd15   : > { %7138 = vmatprep.subr.bf16.mxu1 %v10196_v59 }
 0xd18   : > { %7139 = vmatpush1.bf16.msra.mxu1 %v10194_v61 }
 0xd19   : > { %7140 = vmatprep.subr.bf16.mxu1 %v10199_v3 }
 0xd1c   : > { %7141 = vmatpush1.bf16.msra.mxu1 %v10197_v62 }
 0xd1d   : > { %7142 = vmatprep.subr.bf16.mxu1 %v10202_v0 }
 0xd20   : > { %7143 = vmatpush1.bf16.msra.mxu1 %v10200_v36 }
 0xd21   : > { %7144 = vmatprep.subr.bf16.mxu1 %v10205_v4 }
 0xd24   : > { %7145 = vmatpush1.bf16.msra.mxu1 %v10203_v5 }
 0xd25   : > { %7146 = vmatprep.subr.bf16.mxu1 %v10208_v6 }
 0xd28   : > { %7147 = vmatpush1.bf16.msra.mxu1 %v10206_v58 }
 0xd29   : > { %7148 = vmatprep.subr.bf16.mxu1 %v10211_v30 }
 0xd2c   : > { %7149 = vmatpush1.bf16.msra.mxu1 %v10209_v43 }
 0xd2f   : > { %7151 = vmatmul.mubr.bf16.vlgmr.msra.gmra.mrb[8].mxu1 %v6952_v57 }
 0xe02   : > { %v7152_v29 = vpop.f32.mrb[8].mxu1 }
 0xe03   : > { %v7174_v31 = vadd.f32 %v7172_v8, %v7152_v29  ;;  %v7154_v32 = vpop.f32.mrb[9].mxu1 }
 0xe04   : > { %v7175_v34 = vadd.f32 %v7172_v8, %v7154_v32  ;;  %v7156_v35 = vpop.f32.mrb[10].mxu1 }
 0xe05   : > { %v7178_v44 = vand.u32 2147483647, %v7174_v31  ;;  %v7176_v40 = vadd.f32 %v7172_v8, %v7156_v35  ;;  %v7158_v49 = vpop.f32.mrb[11].mxu1  ;;  %vm7202_vm4 = vcmp.ge.f32.partialorder %v7174_v31, 0.0 }
 0xe06   : > { %v7179_v51 = vand.u32 2147483647, %v7175_v34  ;;  %v7177_v52 = vadd.f32 %v7172_v8, %v7158_v49  ;;  %vm7203_vm5 = vcmp.ge.f32.partialorder %v7175_v34, 0.0 }
 0xe07   : > { %v7182_v53 = vsub.f32 0.0, %v7178_v44  ;;  %v7180_v54 = vand.u32 2147483647, %v7176_v40  ;;  %vm7204_vm6 = vcmp.ge.f32.partialorder %v7176_v40, 0.0 }
 0xe08   : > { %v7183_v55 = vsub.f32 0.0, %v7179_v51  ;;  %v7181_v56 = vand.u32 2147483647, %v7177_v52  ;;  %vm7205_vm7 = vcmp.ge.f32.partialorder %v7177_v52, 0.0 }
 0xe09   : > { %v7186_v63 = vmul.f32 1.442695, %v7182_v53  ;;  %v7184_v59 = vsub.f32 0.0, %v7180_v54 }
 0xe0a   : > { %v7188_v61 = vmul.f32 1.442695, %v7183_v55  ;;  %v7185_v3 = vsub.f32 0.0, %v7181_v56 }
 0xe0b   : > { %10300 = vpow2.f32 %v7186_v63  ;;  %v7190_v62 = vmul.f32 1.442695, %v7184_v59 }
 0xe0c   : > { %10302 = vpow2.f32 %v7188_v61  ;;  %v7192_v0 = vmul.f32 1.442695, %v7185_v3 }
 0xe0d   : > { %10304 = vpow2.f32 %v7190_v62 }
 0xe0e   : > { %10306 = vpow2.f32 %v7192_v0 }
 0xe15   : > { %v10301_v36 = vpop.eup %10300 }
 0xe16   : > { %v10303_v4 = vpop.eup %10302  ;;  %v7194_v5 = vadd.f32 1.0, %v10301_v36 }
 0xe17   : > { %v10305_v6 = vpop.eup %10304  ;;  %v7195_v7 = vadd.f32 1.0, %v10303_v4 }
 0xe18   : > { %v10307_v12 = vpop.eup %10306  ;;  %10308 = vrcp.f32 %v7194_v5  ;;  %v7196_v58 = vadd.f32 1.0, %v10305_v6 }
 0xe19   : > { %10310 = vrcp.f32 %v7195_v7  ;;  %v7197_v30 = vadd.f32 1.0, %v10307_v12 }
 0xe1a   : > { %10312 = vrcp.f32 %v7196_v58 }
 0xe1b   : > { %10314 = vrcp.f32 %v7197_v30 }
 0xe22   : > { %v10309_v10 = vpop.eup %10308 }
 0xe23   : > { %v10311_v33 = vpop.eup %10310  ;;  %v7206_v37 = vsub.f32 1.0, %v10309_v10 }
 0xe24   : > { %v10313_v43 = vpop.eup %10312  ;;  %v7207_v13 = vsub.f32 1.0, %v10311_v33 }
 0xe25   : > { %v10315_v38 = vpop.eup %10314  ;;  %v7210_v57 = vsel %vm7202_vm4, %v10309_v10, %v7206_v37  ;;  %v7208_v14 = vsub.f32 1.0, %v10313_v43 }
 0xe26   : > { %v7211_v46 = vsel %vm7203_vm5, %v10311_v33, %v7207_v13  ;;  %v7209_v11 = vsub.f32 1.0, %v10315_v38  ;;  %v7214_v16 = vmul.f32 %v7210_v57, %v11808_v42 }
 0xe27   : > { %v7212_v15 = vsel %vm7204_vm6, %v10313_v43, %v7208_v14  ;;  %v7215_v20 = vmul.f32 %v7211_v46, %v11819_v60 }
 0xe28   : > { %v7216_v17 = vmul.f32 %v7212_v15, %v11811_v48  ;;  %v7213_v19 = vsel %vm7205_vm7, %v10315_v38, %v7209_v11  ;;  %v10333_v38 = vld [vmem:[%s10791_s21] sm:$0xff]  ;;  %v10334_v11 = vld [vmem:[%s10791_s21 + $0x8] sm:$0xff] }
 0xe29   : > { %v7217_v21 = vmul.f32 %v7213_v19, %v11822_v2 }
 0xe2a   : > { %v7218_v1 = vpack.c.bf16 %v7216_v17, %v7214_v16  ;;  %v10335_v17 = vld [vmem:[%s10791_s21 + $0x10] sm:$0xff] }
 0xe2b   : > { %v7219_v22 = vpack.c.bf16 %v7217_v21, %v7215_v20  ;;  %v10336_v21 = vld [vmem:[%s10791_s21 + $0x18] sm:$0xff] }
 0xe2d   : > { %7681 = vmatprep.mubr.bf16.mxu0 %v7219_v22 }
 0xe2e   : > { %7682 = vmatmul.mubr.bf16.vlgmr.msra.gmra.mrb[16].mxu0 %v7218_v1 }
 0xf01   : > { %v7683_v42 = vpop.f32.mrb[16].mxu0 }
 0xf02   : > { %v7704_v25 = vadd.f32 %v7697_v24, %v7683_v42  ;;  %v7685_v48 = vpop.f32.mrb[17].mxu0 }
 0xf03   : > { %v7705_v26 = vadd.f32 %v7701_v50, %v7685_v48  ;;  %v7687_v27 = vpop.f32.mrb[18].mxu0 }
 0xf04   : > { %v7708_v60 = vmin.f32 %v7704_v25, 20.0  ;;  %v7706_v41 = vadd.f32 %v7697_v24, %v7687_v27  ;;  %v7689_v2 = vpop.f32.mrb[19].mxu0  ;;  %vm7748_vm8 = vcmp.gt.f32.partialorder %v7704_v25, 20.0 }
 0xf05   : > { %v7709_v9 = vmin.f32 %v7705_v26, 20.0  ;;  %v11959_v39 = vadd.f32 %v7701_v50, %v7689_v2  ;;  %vm7749_vm9 = vcmp.gt.f32.partialorder %v7705_v26, 20.0 }
 0xf06   : > { %v7712_v28 = vmul.f32 1.442695, %v7708_v60  ;;  %v7710_v18 = vmin.f32 %v7706_v41, 20.0  ;;  %vm7750_vm10 = vcmp.gt.f32.partialorder %v7706_v41, 20.0 }
 0xf07   : > { %v7714_v8 = vmul.f32 1.442695, %v7709_v9  ;;  %v7711_v29 = vmin.f32 %v11959_v39, 20.0  ;;  %vm7751_vm15 = vcmp.gt.f32.partialorder %v11959_v39, 20.0 }
 0xf08   : > { %10316 = vpow2.f32 %v7712_v28  ;;  %v7716_v45 = vmul.f32 1.442695, %v7710_v18 }
 0xf09   : > { %10318 = vpow2.f32 %v7714_v8  ;;  %v7718_v47 = vmul.f32 1.442695, %v7711_v29 }
 0xf0a   : > { %10320 = vpow2.f32 %v7716_v45 }
 0xf0b   : > { %10322 = vpow2.f32 %v7718_v47 }
 0xf12   : > { %v10317_v31 = vpop.eup %10316 }
 0xf13   : > { %v10319_v32 = vpop.eup %10318  ;;  %v7720_v34 = vadd.f32 1.0, %v10317_v31 }
 0xf14   : > { %v10321_v35 = vpop.eup %10320  ;;  %v7721_v44 = vadd.f32 1.0, %v10319_v32 }
 0xf15   : > { %v10323_v40 = vpop.eup %10322  ;;  %v7724_v49 = vmul.f32 %v7720_v34, %v7720_v34  ;;  %v7722_v51 = vadd.f32 1.0, %v10321_v35 }
 0xf16   : > { %v7725_v52 = vmul.f32 %v7721_v44, %v7721_v44  ;;  %v7723_v53 = vadd.f32 1.0, %v10323_v40 }
 0xf17   : > { %v7736_v54 = vadd.f32 1.0, %v7724_v49  ;;  %v7726_v55 = vmul.f32 %v7722_v51, %v7722_v51  ;;  %v8861_v3 = vadd.f32 -1.0, %v7724_v49 }
 0xf18   : > { %v7737_v56 = vadd.f32 1.0, %v7725_v52  ;;  %v7727_v63 = vmul.f32 %v7723_v53, %v7723_v53  ;;  %v8862_v62 = vadd.f32 -1.0, %v7725_v52 }
 0xf19   : > { %10324 = vrcp.f32 %v7736_v54  ;;  %v7738_v59 = vadd.f32 1.0, %v7726_v55  ;;  %v8863_v0 = vadd.f32 -1.0, %v7726_v55  ;;  %v7732_v4 = vmul.f32 %v8861_v3, %v7704_v25 }
 0xf1a   : > { %10326 = vrcp.f32 %v7737_v56  ;;  %v7739_v61 = vadd.f32 1.0, %v7727_v63  ;;  %v8864_v36 = vadd.f32 -1.0, %v7727_v63  ;;  %v7733_v6 = vmul.f32 %v8862_v62, %v7705_v26 }
 0xf1b   : > { %10328 = vrcp.f32 %v7738_v59  ;;  %v7734_v58 = vmul.f32 %v8863_v0, %v7706_v41 }
 0xf1c   : > { %10330 = vrcp.f32 %v7739_v61  ;;  %v7735_v33 = vmul.f32 %v8864_v36, %v11959_v39 }
 0xf23   : > { %v10325_v5 = vpop.eup %10324 }
 0xf24   : > { %v10327_v7 = vpop.eup %10326  ;;  %v7744_v12 = vmul.f32 %v10325_v5, %v7732_v4 }
 0xf25   : > { %v10329_v30 = vpop.eup %10328  ;;  %v7745_v10 = vmul.f32 %v10327_v7, %v7733_v6 }
 0xf26   : > { %v10331_v37 = vpop.eup %10330  ;;  %v7752_v43 = vsel %vm7748_vm8, %v7704_v25, %v7744_v12  ;;  %v7746_v13 = vmul.f32 %v10329_v30, %v7734_v58 }
 0xf27   : > { %v7756_v57 = vadd.f32 %v10333_v38, %v7752_v43  ;;  %v7753_v14 = vsel %vm7749_vm9, %v7705_v26, %v7745_v10  ;;  %v7747_v46 = vmul.f32 %v10331_v37, %v7735_v33 }
 0xf28   : > { %v7757_v15 = vadd.f32 %v10334_v11, %v7753_v14  ;;  %v7754_v16 = vsel %vm7750_vm10, %v7706_v41, %v7746_v13 }
 0xf29   : > { %7760 = vst [vmem:[%s596_s20] sm:$0xff] %v7756_v57  ;;  %v7758_v19 = vadd.f32 %v10335_v17, %v7754_v16  ;;  %v7755_v20 = vsel %vm7751_vm15, %v11959_v39, %v7747_v46 }
 0xf2a   : > { %7761 = vst [vmem:[%s596_s20 + $0x8] sm:$0xff] %v7757_v15  ;;  %v7759_v1 = vadd.f32 %v10336_v21, %v7755_v20 }
 0xf2b   : > { %7762 = vst [vmem:[%s596_s20 + $0x10] sm:$0xff] %v7758_v19 }
 0xf2c   : > { %7763 = vst [vmem:[%s596_s20 + $0x18] sm:$0xff] %v7759_v1 }
 0xf2d PF: > { %s12020_s24 = sld [smem:[#allocation15_spill]] }
 0xf33   : > { %s31_s23 = sadd.s32 1, %s12020_s24  }
 0xf34   : > { %p28_p6 = scmp.ge.s32.totalorder %s31_s23, 4  }
 0xf36   :  { %30 = sbr.rel (!%p28_p6) target bundleno = 8 (0x8), region = 153 }
 0xf3d   :  { %7785 = vsyncpa [#allocation5], 1 }
 0xf3e   :  { %7787 = vsyncpa [#allocation5 + $0x1], 1 }
 0xf3f   :  { %7788 = vsyncpa [#allocation7], 1 }
 0xf40   :  { %7789 = vsyncpa [#allocation10], 1 }

</bundles_post_ra>
